<compile_context>
chip_gen: v7x
topology: tpu7x:2x2x1
jax: 0.10.0
libtpu: 0.0.40
codegen_flags: <defaults>
</compile_context>

<pallas_src>
import functools
import numpy as np
import jax
import jax.numpy as jnp
from jax import lax
from jax.experimental import pallas as pl
from jax.experimental.pallas import tpu as pltpu

LN_EPS = 1e-6
BN_EPS = 1e-5

# bf16 halves HBM bytes and runs the MXU at full rate; accumulation stays f32.
# Set to jnp.float32 for bit-closer agreement with the PyTorch f32 reference.
COMPUTE_DTYPE = jnp.bfloat16

FINAL_MAX_ROWS = 8192      # cap on pixel rows per grid step (final kernel)
CONV_MAX_ROWGROUPS = 1024  # cap on image rows per grid step (conv kernels)


# ----------------------------- in-kernel math ------------------------------
def _erf(x):
    # Abramowitz & Stegun 7.1.26 (|err| < 1.5e-7): f32-accurate erf for GELU.
    p = np.float32(0.3275911)
    a1 = np.float32(0.254829592)
    a2 = np.float32(-0.284496736)
    a3 = np.float32(1.421413741)
    a4 = np.float32(-1.453152027)
    a5 = np.float32(1.061405429)
    ax = jnp.abs(x)
    t = 1.0 / (1.0 + p * ax)
    poly = ((((a5 * t + a4) * t + a3) * t + a2) * t + a1) * t
    y = 1.0 - poly * jnp.exp(-ax * ax)
    return jnp.where(x >= 0, y, -y)


def _gelu(x):
    return 0.5 * x * (1.0 + _erf(x * np.float32(1.0 / np.sqrt(2.0))))


# --------------------------- VMEM / tile planning ---------------------------
def _round_up(v, m):
    return ((v + m - 1) // m) * m


_VMEM_PLAN = None


def _vmem_plan():
    """(budget, limit) bytes.  Generation-aware: ~40/96 MiB on 128-MiB-VMEM
    parts (v5e/v6e), ~20/48 MiB on 64-MiB parts (v7x)."""
    global _VMEM_PLAN
    if _VMEM_PLAN is None:
        cap = 64 * 1024 * 1024
        try:
            info = pltpu.get_tpu_info()
            cap = int(getattr(info, "vmem_capacity_bytes", cap)) or cap
        except Exception:
            pass
        budget = (cap * 5) // 16
        limit = min((cap * 3) // 4, 100 * 1024 * 1024)
        _VMEM_PLAN = (budget, limit)
    return _VMEM_PLAN


def _plan_units(n, per_unit_bytes, fixed_bytes, align, budget,
                min_grid=4, max_units=None):
    """Pick an outer-dim tile: as many units as fit the VMEM budget, aligned,
    capped so the grid keeps >= min_grid steps (v7x megacore + double-buffer
    pipelining).  An exact divisor of the padded extent is preferred only when
    it is within 2x of the budget-derived tile (else pad a tail block)."""
    per_unit_bytes = max(int(per_unit_bytes), 1)
    align = max(int(align), 1)
    avail = max(int(budget) - int(fixed_bytes), per_unit_bytes * align)
    tile = max((avail // per_unit_bytes) // align * align, align)
    if max_units is not None:
        tile = min(tile, max(align, (int(max_units) // align) * align))
    n_al = _round_up(max(int(n), 1), align)
    tile = min(tile, n_al)
    if n_al >= align * min_grid:
        tile = min(tile, max(align, (n_al // min_grid) // align * align))
    t = tile
    while t >= align:
        if n_al % t == 0:
            if 2 * t >= tile:
                tile = t
            break
        t -= align
    return tile, _round_up(int(n), tile)


def _itemsize(dt):
    return np.dtype(dt).itemsize


# ------------------------------ Pallas kernels ------------------------------
def _dual_dirconv_kernel(xa_ref, xb_ref, wa_ref, wb_ref, ba_ref, bb_ref,
                         oa_ref, ob_ref):
    """Two independent 9-tap 1-D convs (taps assembled in-kernel, no im2col).

    xa/xb: (R, S+8, C) halo-padded image rows;  wa/wb: (9, C, F) tap weights;
    ba/bb: (1, F) f32 biases;  oa/ob: (R, S, F) outputs.
    """
    ktaps = wa_ref.shape[0]
    s_out = oa_ref.shape[1]
    f = oa_ref.shape[2]
    wa = [wa_ref[t] for t in range(ktaps)]          # (C, F) each
    wb = [wb_ref[t] for t in range(ktaps)]
    ba = ba_ref[...]
    bb = bb_ref[...]

    def row_body(r, carry):
        xa_row = xa_ref[r]                           # (S+8, C)
        xb_row = xb_ref[r]
        acc_a = jnp.zeros((s_out, f), jnp.float32)
        acc_b = jnp.zeros((s_out, f), jnp.float32)
        for t in range(ktaps):                       # static tap loop -> MXU dots
            acc_a = acc_a + jnp.dot(xa_row[t:t + s_out, :], wa[t],
                                    preferred_element_type=jnp.float32)
            acc_b = acc_b + jnp.dot(xb_row[t:t + s_out, :], wb[t],
                                    preferred_element_type=jnp.float32)
        oa_ref[r] = (acc_a + ba).astype(oa_ref.dtype)
        ob_ref[r] = (acc_b + bb).astype(ob_ref.dtype)
        return carry

    lax.fori_loop(0, oa_ref.shape[0], row_body, 0)


def _final_kernel(x1_ref, x2_ref, x3_ref, x4_ref, z_ref, w_ref,
                  cb_ref, g_ref, lb_ref, o_ref):
    """Final 1x1 conv as four partial dots + ASPP contribution, then
    channels-first LayerNorm (two-pass moments) and exact-erf GELU."""
    w = w_ref[...]                                   # (4, F, F)
    y = z_ref[...].astype(jnp.float32) + cb_ref[...]
    y = y + jnp.dot(x1_ref[...], w[0], preferred_element_type=jnp.float32)
    y = y + jnp.dot(x2_ref[...], w[1], preferred_element_type=jnp.float32)
    y = y + jnp.dot(x3_ref[...], w[2], preferred_element_type=jnp.float32)
    y = y + jnp.dot(x4_ref[...], w[3], preferred_element_type=jnp.float32)
    inv_f = np.float32(1.0 / y.shape[-1])
    mu = jnp.sum(y, axis=-1, keepdims=True) * inv_f
    d = y - mu
    var = jnp.sum(d * d, axis=-1, keepdims=True) * inv_f
    yn = d * lax.rsqrt(var + np.float32(LN_EPS))     # rsqrt -> EUP slot
    yn = g_ref[...] * yn + lb_ref[...]
    o_ref[...] = _gelu(yn).astype(o_ref.dtype)


# ------------------------------ kernel wrappers ------------------------------
def _pad_rows(a, n_pad):
    n = a.shape[0]
    if n_pad == n:
        return a
    pad = [(0, n_pad - n)] + [(0, 0)] * (a.ndim - 1)
    return jnp.pad(a, pad)


def dual_dirconv(xa, xb, wta, wtb, ba, bb):
    """xa, xb: (N, S+taps-1, C) halo-padded rows; wt*: (taps, C, F); b*: (F,).
    Returns (N, S, F) per branch (COMPUTE_DTYPE)."""
    assert xa.shape == xb.shape
    n, sp, c = xa.shape
    taps = wta.shape[0]
    s = sp - (taps - 1)
    f = wta.shape[-1]
    cd = COMPUTE_DTYPE
    ib = _itemsize(cd)

    per_unit = 4 * sp * c * ib + 4 * s * f * ib + 8 * s * f   # in/out dbl-buf + accum
    fixed = 4 * taps * c * f * ib + 8 * f * 4 + (1 << 16)     # weights/biases + slack
    budget, limit = _vmem_plan()
    tile, n_pad = _plan_units(n, per_unit, fixed, 8, budget,
                              min_grid=4, max_units=CONV_MAX_ROWGROUPS)

    xa = _pad_rows(xa.astype(cd), n_pad)
    xb = _pad_rows(xb.astype(cd), n_pad)
    oa, ob = pl.pallas_call(
        _dual_dirconv_kernel,
        out_shape=(jax.ShapeDtypeStruct((n_pad, s, f), cd),
                   jax.ShapeDtypeStruct((n_pad, s, f), cd)),
        grid=(n_pad // tile,),
        in_specs=[
            pl.BlockSpec((tile, sp, c), lambda i: (i, 0, 0)),
            pl.BlockSpec((tile, sp, c), lambda i: (i, 0, 0)),
            pl.BlockSpec((taps, c, f), lambda i: (0, 0, 0)),
            pl.BlockSpec((taps, c, f), lambda i: (0, 0, 0)),
            pl.BlockSpec((1, f), lambda i: (0, 0)),
            pl.BlockSpec((1, f), lambda i: (0, 0)),
        ],
        out_specs=(pl.BlockSpec((tile, s, f), lambda i: (i, 0, 0)),
                   pl.BlockSpec((tile, s, f), lambda i: (i, 0, 0))),
        compiler_params=pltpu.CompilerParams(
            dimension_semantics=("parallel",),
            vmem_limit_bytes=limit),
    )(xa, xb, wta.astype(cd), wtb.astype(cd),
      ba.reshape(1, f).astype(jnp.float32), bb.reshape(1, f).astype(jnp.float32))
    return oa[:n], ob[:n]


def fused_final(x1, x2, x3, x4, z56, w_stack, conv_b, ln_w, ln_b):
    """y = x1@W1 + x2@W2 + x3@W3 + x4@W4 + z56 + b -> LN(channels) -> GELU."""
    n, f = x1.shape
    cd = COMPUTE_DTYPE
    ib = _itemsize(cd)
    sub = 16 if ib < 4 else 8                         # bf16 sublane packing

    per_unit = 10 * f * ib + 8 * f + 24 * f           # 5 bf16 ins, f32 out, temps
    fixed = 8 * f * f * ib + 12 * f * 4 + (1 << 16)
    budget, limit = _vmem_plan()
    tile, n_pad = _plan_units(n, per_unit, fixed, sub, budget,
                              min_grid=4, max_units=FINAL_MAX_ROWS)

    def prep(a):
        return _pad_rows(a.astype(cd), n_pad)

    x1, x2, x3, x4, z56 = map(prep, (x1, x2, x3, x4, z56))
    out = pl.pallas_call(
        _final_kernel,
        out_shape=jax.ShapeDtypeStruct((n_pad, f), jnp.float32),
        grid=(n_pad // tile,),
        in_specs=[
            pl.BlockSpec((tile, f), lambda i: (i, 0)),
            pl.BlockSpec((tile, f), lambda i: (i, 0)),
            pl.BlockSpec((tile, f), lambda i: (i, 0)),
            pl.BlockSpec((tile, f), lambda i: (i, 0)),
            pl.BlockSpec((tile, f), lambda i: (i, 0)),
            pl.BlockSpec((4, f, f), lambda i: (0, 0, 0)),
            pl.BlockSpec((1, f), lambda i: (0, 0)),
            pl.BlockSpec((1, f), lambda i: (0, 0)),
            pl.BlockSpec((1, f), lambda i: (0, 0)),
        ],
        out_specs=pl.BlockSpec((tile, f), lambda i: (i, 0)),
        compiler_params=pltpu.CompilerParams(
            dimension_semantics=("parallel",),
            vmem_limit_bytes=limit),
    )(x1, x2, x3, x4, z56, w_stack.astype(cd),
      conv_b.reshape(1, f).astype(jnp.float32),
      ln_w.reshape(1, f).astype(jnp.float32),
      ln_b.reshape(1, f).astype(jnp.float32))
    return out[:n]


# ------------------------------ XLA glue (NHWC) ------------------------------
def _shear_h(x_nhwc):
    # h_transform: out[b,h,d,c] = x[b,h,d-h,c] if 0 <= d-h < W else 0
    b, h, w, c = x_nhwc.shape
    hh = jnp.arange(h)[:, None]
    dd = jnp.arange(2 * w - 1)[None, :]
    src = dd - hh
    valid = (src >= 0) & (src < w)
    g = x_nhwc[:, hh, jnp.clip(src, 0, w - 1), :]     # (B, H, 2W-1, C)
    return jnp.where(valid[None, :, :, None], g, 0.0)


def _shear_v(x_nhwc):
    # v_transform: out[b,d,w,c] = x[b,d-w,w,c] if 0 <= d-w < H else 0
    b, h, w, c = x_nhwc.shape
    dd = jnp.arange(2 * h - 1)[:, None]
    ww = jnp.arange(w)[None, :]
    src = dd - ww
    valid = (src >= 0) & (src < h)
    g = x_nhwc[:, jnp.clip(src, 0, h - 1), ww, :]     # (B, 2H-1, W, C)
    return jnp.where(valid[None, :, :, None], g, 0.0)


def adaptive_pool_matrix(out_size, in_size):
    m = np.zeros((out_size, in_size), np.float32)
    for i in range(out_size):
        s = (i * in_size) // out_size
        e = -((-(i + 1) * in_size) // out_size)
        m[i, s:e] = 1.0 / (e - s)
    return jnp.asarray(m)


def bilinear_matrix(out_size, in_size):
    # F.interpolate(mode='bilinear', align_corners=False) 1-D weights.
    m = np.zeros((out_size, in_size), np.float32)
    scale = in_size / out_size
    for i in range(out_size):
        src = max((i + 0.5) * scale - 0.5, 0.0)
        i0 = int(np.floor(src))
        lam = src - i0
        i0 = min(i0, in_size - 1)
        i1 = min(i0 + 1, in_size - 1)
        m[i, i0] += 1.0 - lam
        m[i, i1] += lam
    return jnp.asarray(m)


def _aspp_vectors(x_nhwc, conv_w, bn_g, bn_b, bn_m, bn_v, pool_h):
    """ASPPPoolingH/W with eval-mode BN folded; returns the per-line vector
    (B, H, F) or (B, W, F) BEFORE the spatial broadcast (tiny -> plain XLA)."""
    b, h, w, c = x_nhwc.shape
    f = conv_w.shape[0]
    if pool_h:                       # AdaptiveAvgPool2d((32, 1))
        red = jnp.mean(x_nhwc, axis=2)                       # (B, H, C)
        pmat, bil = adaptive_pool_matrix(32, h), bilinear_matrix(h, 32)
    else:                            # AdaptiveAvgPool2d((1, 32))
        red = jnp.mean(x_nhwc, axis=1)                       # (B, W, C)
        pmat, bil = adaptive_pool_matrix(32, w), bilinear_matrix(w, 32)
    pooled = jnp.einsum('os,bsc->boc', pmat, red)            # (B, 32, C)
    scale = bn_g / jnp.sqrt(bn_v + BN_EPS)
    w_fold = conv_w.reshape(f, c).T * scale[None, :]         # (C, F)
    b_fold = bn_b - bn_m * scale                             # (F,)
    y = jax.nn.gelu(pooled @ w_fold + b_fold, approximate=False)
    return jnp.einsum('so,bof->bsf', bil, y)                 # (B, H|W, F)


# ------------------------------ MCIF forward ---------------------------------
def mcif_forward(x, params, inp=False):
    b, c, h, w = x.shape
    assert h == w, "MCIF's shear/inverse-shear reshapes require H == W"
    f = params['d1_w'].shape[0]
    assert params['conv_w'].shape[1] == 6 * f

    x_nhwc = jnp.transpose(x, (0, 2, 3, 1))                   # (B, H, W, C)

    # tap-weight tensors (9, C, F): wt[j, c, f] == W[f, c, ...taps[j]...]
    wt1 = jnp.transpose(params['d1_w'][:, :, 0, :], (2, 1, 0))
    wt2 = jnp.transpose(params['d2_w'][:, :, :, 0], (2, 1, 0))
    wt3 = jnp.transpose(params['d3_w'][:, :, :, 0], (2, 1, 0))
    wt4 = jnp.transpose(params['d4_w'][:, :, 0, :], (2, 1, 0))

    # --- deconv1 (W-dir) + deconv2 (H-dir via transpose): one fused launch ---
    xa = jnp.pad(x_nhwc, ((0, 0), (0, 0), (4, 4), (0, 0))).reshape(b * h, w + 8, c)
    xbt = jnp.transpose(x_nhwc, (0, 2, 1, 3))                 # (B, W, H, C)
    xb = jnp.pad(xbt, ((0, 0), (0, 0), (4, 4), (0, 0))).reshape(b * w, h + 8, c)
    o1, o2t = dual_dirconv(xa, xb, wt1, wt2, params['d1_b'], params['d2_b'])
    x1 = o1.reshape(b, h, w, f)
    x2 = jnp.transpose(o2t.reshape(b, w, h, f), (0, 2, 1, 3))

    # --- deconv3 / deconv4 on the sheared grids: one fused launch ------------
    ht = _shear_h(x_nhwc)                                     # (B, H, 2W-1, C)
    vt = _shear_v(x_nhwc)                                     # (B, 2H-1, W, C)
    htT = jnp.transpose(ht, (0, 2, 1, 3))                     # (B, 2W-1, H, C)
    xc3 = jnp.pad(htT, ((0, 0), (0, 0), (4, 4), (0, 0))).reshape(b * (2 * w - 1), h + 8, c)
    xc4 = jnp.pad(vt, ((0, 0), (0, 0), (4, 4), (0, 0))).reshape(b * (2 * h - 1), w + 8, c)
    o3t, o4 = dual_dirconv(xc3, xc4, wt3, wt4, params['d3_b'], params['d4_b'])
    y3 = jnp.transpose(o3t.reshape(b, 2 * w - 1, h, f), (0, 2, 1, 3))  # (B,H,2W-1,F)
    y4 = o4.reshape(b, 2 * h - 1, w, f)
    hh = jnp.arange(h)[:, None]
    ww = jnp.arange(w)[None, :]
    x3 = y3[:, hh, hh + ww, :]                                # inv_h_transform
    x4 = y4[:, hh + ww, ww, :]                                # inv_v_transform

    # --- final 1x1 conv weights split per concat group -----------------------
    wc = params['conv_w'].reshape(f, 6 * f)                   # (F_out, 6F_in)
    w_stack = jnp.stack([wc[:, 0 * f:1 * f].T, wc[:, 1 * f:2 * f].T,
                         wc[:, 2 * f:3 * f].T, wc[:, 3 * f:4 * f].T], axis=0)

    # --- ASPP branches folded straight into output-space contributions -------
    up_h = _aspp_vectors(x_nhwc, params['ah_w'], params['ah_g'], params['ah_b'],
                         params['ah_m'], params['ah_v'], pool_h=True)   # (B,H,F)
    up_w = _aspp_vectors(x_nhwc, params['aw_w'], params['aw_g'], params['aw_b'],
                         params['aw_m'], params['aw_v'], pool_h=False)  # (B,W,F)
    c5 = up_h @ wc[:, 4 * f:5 * f].T                          # (B, H, F)
    c6 = up_w @ wc[:, 5 * f:6 * f].T                          # (B, W, F)
    z56 = c5[:, :, None, :] + c6[:, None, :, :]               # (B, H, W, F)

    # --- fused 1x1 conv + LayerNorm + GELU (no 6F concat through HBM) --------
    n = b * h * w
    y = fused_final(x1.reshape(n, f), x2.reshape(n, f), x3.reshape(n, f),
                    x4.reshape(n, f), z56.reshape(n, f), w_stack,
                    params['conv_b'], params['ln_w'], params['ln_b'])
    out = y.reshape(b, h, w, f)
    if inp:
        # Pointwise conv/LN/GELU commute with nearest x2 upsampling, so the
        # repeat happens after the kernel on the F-wide output (4x fewer bytes).
        out = jnp.repeat(jnp.repeat(out, 2, axis=1), 2, axis=2)
    return jnp.transpose(out, (0, 3, 1, 2))                   # back to NCHW


def init_params(key, in_channels, n_filters):
    c, f = in_channels, n_filters
    ks = jax.random.split(key, 8)

    def wgt(k, shape):
        fan_in = int(np.prod(shape[1:]))
        return jax.random.normal(k, shape, jnp.float32) / np.sqrt(fan_in)

    return dict(
        d1_w=wgt(ks[0], (f, c, 1, 9)), d1_b=jnp.zeros((f,), jnp.float32),
        d2_w=wgt(ks[1], (f, c, 9, 1)), d2_b=jnp.zeros((f,), jnp.float32),
        d3_w=wgt(ks[2], (f, c, 9, 1)), d3_b=jnp.zeros((f,), jnp.float32),
        d4_w=wgt(ks[3], (f, c, 1, 9)), d4_b=jnp.zeros((f,), jnp.float32),
        ah_w=wgt(ks[4], (f, c, 1, 1)),
        ah_g=jnp.ones((f,), jnp.float32), ah_b=jnp.zeros((f,), jnp.float32),
        ah_m=jnp.zeros((f,), jnp.float32), ah_v=jnp.ones((f,), jnp.float32),
        aw_w=wgt(ks[5], (f, c, 1, 1)),
        aw_g=jnp.ones((f,), jnp.float32), aw_b=jnp.zeros((f,), jnp.float32),
        aw_m=jnp.zeros((f,), jnp.float32), aw_v=jnp.ones((f,), jnp.float32),
        conv_w=wgt(ks[6], (f, 6 * c, 1, 1)),
        conv_b=jax.random.normal(ks[7], (f,), jnp.float32) * 0.1,
        ln_w=jnp.ones((f,), jnp.float32), ln_b=jnp.zeros((f,), jnp.float32),
    )


if __name__ == "__main__":
    key = jax.random.PRNGKey(0)
    k_p, k_x = jax.random.split(key)
    # MCIF's own reshapes require H == W and in_channels == n_filters.
    B, C, S = 2, 4, 16
    params = init_params(k_p, C, C)
    x = jax.random.normal(k_x, (B, C, S, S), jnp.float32)
    fwd = jax.jit(functools.partial(mcif_forward, inp=False))
    out = fwd(x, params)
    jax.block_until_ready(out)
    assert out.shape == (B, C, S, S) and out.dtype == jnp.float32
    assert bool(jnp.all(jnp.isfinite(out)))
    print("KERNEL_OK")
</pallas_src>

<mosaic_0001>
module attributes {stable_mosaic.version = 11 : i64} {
  func.func @_dual_dirconv_kernel(%arg0: i32, %arg1: memref<16x24x4xbf16, #tpu.memory_space<vmem>>, %arg2: memref<16x24x4xbf16, #tpu.memory_space<vmem>>, %arg3: memref<9x4x4xbf16, #tpu.memory_space<vmem>>, %arg4: memref<9x4x4xbf16, #tpu.memory_space<vmem>>, %arg5: memref<1x4xf32, #tpu.memory_space<vmem>>, %arg6: memref<1x4xf32, #tpu.memory_space<vmem>>, %arg7: memref<16x16x4xbf16, #tpu.memory_space<vmem>>, %arg8: memref<16x16x4xbf16, #tpu.memory_space<vmem>>) attributes {dimension_semantics = [#tpu.dimension_semantics<parallel>], iteration_bounds = array<i64: 4>, scalar_prefetch = 0 : i64, scratch_operands = 0 : i64, tpu.core_type = #tpu.core_type<tc>, window_params = [{transform_indices = @transform_0, window_bounds = array<i64: 16, 24, 4>}, {transform_indices = @transform_1, window_bounds = array<i64: 16, 24, 4>}, {pipeline_mode = #tpu.pipeline_mode<synchronous>, transform_indices = @transform_2, window_bounds = array<i64: 9, 4, 4>}, {pipeline_mode = #tpu.pipeline_mode<synchronous>, transform_indices = @transform_3, window_bounds = array<i64: 9, 4, 4>}, {pipeline_mode = #tpu.pipeline_mode<synchronous>, transform_indices = @transform_4, window_bounds = array<i64: 1, 4>}, {pipeline_mode = #tpu.pipeline_mode<synchronous>, transform_indices = @transform_5, window_bounds = array<i64: 1, 4>}, {transform_indices = @transform_6, window_bounds = array<i64: 16, 16, 4>}, {transform_indices = @transform_7, window_bounds = array<i64: 16, 16, 4>}]} {
    %c0 = arith.constant 0 : index
    %c0_0 = arith.constant 0 : index
    %c0_1 = arith.constant 0 : index
    %0 = vector.load %arg3[%c0, %c0_0, %c0_1] : memref<9x4x4xbf16, #tpu.memory_space<vmem>>, vector<1x4x4xbf16>
    %1 = vector.shape_cast %0 : vector<1x4x4xbf16> to vector<4x4xbf16>
    %c1 = arith.constant 1 : index
    %c0_2 = arith.constant 0 : index
    %c0_3 = arith.constant 0 : index
    %2 = vector.load %arg3[%c1, %c0_2, %c0_3] : memref<9x4x4xbf16, #tpu.memory_space<vmem>>, vector<1x4x4xbf16>
    %3 = vector.shape_cast %2 : vector<1x4x4xbf16> to vector<4x4xbf16>
    %c2 = arith.constant 2 : index
    %c0_4 = arith.constant 0 : index
    %c0_5 = arith.constant 0 : index
    %4 = vector.load %arg3[%c2, %c0_4, %c0_5] : memref<9x4x4xbf16, #tpu.memory_space<vmem>>, vector<1x4x4xbf16>
    %5 = vector.shape_cast %4 : vector<1x4x4xbf16> to vector<4x4xbf16>
    %c3 = arith.constant 3 : index
    %c0_6 = arith.constant 0 : index
    %c0_7 = arith.constant 0 : index
    %6 = vector.load %arg3[%c3, %c0_6, %c0_7] : memref<9x4x4xbf16, #tpu.memory_space<vmem>>, vector<1x4x4xbf16>
    %7 = vector.shape_cast %6 : vector<1x4x4xbf16> to vector<4x4xbf16>
    %c4 = arith.constant 4 : index
    %c0_8 = arith.constant 0 : index
    %c0_9 = arith.constant 0 : index
    %8 = vector.load %arg3[%c4, %c0_8, %c0_9] : memref<9x4x4xbf16, #tpu.memory_space<vmem>>, vector<1x4x4xbf16>
    %9 = vector.shape_cast %8 : vector<1x4x4xbf16> to vector<4x4xbf16>
    %c5 = arith.constant 5 : index
    %c0_10 = arith.constant 0 : index
    %c0_11 = arith.constant 0 : index
    %10 = vector.load %arg3[%c5, %c0_10, %c0_11] : memref<9x4x4xbf16, #tpu.memory_space<vmem>>, vector<1x4x4xbf16>
    %11 = vector.shape_cast %10 : vector<1x4x4xbf16> to vector<4x4xbf16>
    %c6 = arith.constant 6 : index
    %c0_12 = arith.constant 0 : index
    %c0_13 = arith.constant 0 : index
    %12 = vector.load %arg3[%c6, %c0_12, %c0_13] : memref<9x4x4xbf16, #tpu.memory_space<vmem>>, vector<1x4x4xbf16>
    %13 = vector.shape_cast %12 : vector<1x4x4xbf16> to vector<4x4xbf16>
    %c7 = arith.constant 7 : index
    %c0_14 = arith.constant 0 : index
    %c0_15 = arith.constant 0 : index
    %14 = vector.load %arg3[%c7, %c0_14, %c0_15] : memref<9x4x4xbf16, #tpu.memory_space<vmem>>, vector<1x4x4xbf16>
    %15 = vector.shape_cast %14 : vector<1x4x4xbf16> to vector<4x4xbf16>
    %c8 = arith.constant 8 : index
    %c0_16 = arith.constant 0 : index
    %c0_17 = arith.constant 0 : index
    %16 = vector.load %arg3[%c8, %c0_16, %c0_17] : memref<9x4x4xbf16, #tpu.memory_space<vmem>>, vector<1x4x4xbf16>
    %17 = vector.shape_cast %16 : vector<1x4x4xbf16> to vector<4x4xbf16>
    %c0_18 = arith.constant 0 : index
    %c0_19 = arith.constant 0 : index
    %c0_20 = arith.constant 0 : index
    %18 = vector.load %arg4[%c0_18, %c0_19, %c0_20] : memref<9x4x4xbf16, #tpu.memory_space<vmem>>, vector<1x4x4xbf16>
    %19 = vector.shape_cast %18 : vector<1x4x4xbf16> to vector<4x4xbf16>
    %c1_21 = arith.constant 1 : index
    %c0_22 = arith.constant 0 : index
    %c0_23 = arith.constant 0 : index
    %20 = vector.load %arg4[%c1_21, %c0_22, %c0_23] : memref<9x4x4xbf16, #tpu.memory_space<vmem>>, vector<1x4x4xbf16>
    %21 = vector.shape_cast %20 : vector<1x4x4xbf16> to vector<4x4xbf16>
    %c2_24 = arith.constant 2 : index
    %c0_25 = arith.constant 0 : index
    %c0_26 = arith.constant 0 : index
    %22 = vector.load %arg4[%c2_24, %c0_25, %c0_26] : memref<9x4x4xbf16, #tpu.memory_space<vmem>>, vector<1x4x4xbf16>
    %23 = vector.shape_cast %22 : vector<1x4x4xbf16> to vector<4x4xbf16>
    %c3_27 = arith.constant 3 : index
    %c0_28 = arith.constant 0 : index
    %c0_29 = arith.constant 0 : index
    %24 = vector.load %arg4[%c3_27, %c0_28, %c0_29] : memref<9x4x4xbf16, #tpu.memory_space<vmem>>, vector<1x4x4xbf16>
    %25 = vector.shape_cast %24 : vector<1x4x4xbf16> to vector<4x4xbf16>
    %c4_30 = arith.constant 4 : index
    %c0_31 = arith.constant 0 : index
    %c0_32 = arith.constant 0 : index
    %26 = vector.load %arg4[%c4_30, %c0_31, %c0_32] : memref<9x4x4xbf16, #tpu.memory_space<vmem>>, vector<1x4x4xbf16>
    %27 = vector.shape_cast %26 : vector<1x4x4xbf16> to vector<4x4xbf16>
    %c5_33 = arith.constant 5 : index
    %c0_34 = arith.constant 0 : index
    %c0_35 = arith.constant 0 : index
    %28 = vector.load %arg4[%c5_33, %c0_34, %c0_35] : memref<9x4x4xbf16, #tpu.memory_space<vmem>>, vector<1x4x4xbf16>
    %29 = vector.shape_cast %28 : vector<1x4x4xbf16> to vector<4x4xbf16>
    %c6_36 = arith.constant 6 : index
    %c0_37 = arith.constant 0 : index
    %c0_38 = arith.constant 0 : index
    %30 = vector.load %arg4[%c6_36, %c0_37, %c0_38] : memref<9x4x4xbf16, #tpu.memory_space<vmem>>, vector<1x4x4xbf16>
    %31 = vector.shape_cast %30 : vector<1x4x4xbf16> to vector<4x4xbf16>
    %c7_39 = arith.constant 7 : index
    %c0_40 = arith.constant 0 : index
    %c0_41 = arith.constant 0 : index
    %32 = vector.load %arg4[%c7_39, %c0_40, %c0_41] : memref<9x4x4xbf16, #tpu.memory_space<vmem>>, vector<1x4x4xbf16>
    %33 = vector.shape_cast %32 : vector<1x4x4xbf16> to vector<4x4xbf16>
    %c8_42 = arith.constant 8 : index
    %c0_43 = arith.constant 0 : index
    %c0_44 = arith.constant 0 : index
    %34 = vector.load %arg4[%c8_42, %c0_43, %c0_44] : memref<9x4x4xbf16, #tpu.memory_space<vmem>>, vector<1x4x4xbf16>
    %35 = vector.shape_cast %34 : vector<1x4x4xbf16> to vector<4x4xbf16>
    %c0_45 = arith.constant 0 : index
    %c0_46 = arith.constant 0 : index
    %36 = vector.load %arg5[%c0_45, %c0_46] : memref<1x4xf32, #tpu.memory_space<vmem>>, vector<1x4xf32>
    %c0_47 = arith.constant 0 : index
    %c0_48 = arith.constant 0 : index
    %37 = vector.load %arg6[%c0_47, %c0_48] : memref<1x4xf32, #tpu.memory_space<vmem>>, vector<1x4xf32>
    %c0_i32 = arith.constant 0 : i32
    %c16_i32 = arith.constant 16 : i32
    %38 = arith.addi %c0_i32, %c16_i32 : i32
    %c1_i32 = arith.constant 1 : i32
    scf.for %arg9 = %c0_i32 to %38 step %c1_i32  : i32 {
      %39 = arith.index_cast %arg9 : i32 to index
      %c0_50 = arith.constant 0 : index
      %c0_51 = arith.constant 0 : index
      %40 = vector.load %arg1[%39, %c0_50, %c0_51] : memref<16x24x4xbf16, #tpu.memory_space<vmem>>, vector<1x24x4xbf16>
      %41 = vector.shape_cast %40 : vector<1x24x4xbf16> to vector<24x4xbf16>
      %42 = arith.index_cast %arg9 : i32 to index
      %c0_52 = arith.constant 0 : index
      %c0_53 = arith.constant 0 : index
      %43 = vector.load %arg2[%42, %c0_52, %c0_53] : memref<16x24x4xbf16, #tpu.memory_space<vmem>>, vector<1x24x4xbf16>
      %44 = vector.shape_cast %43 : vector<1x24x4xbf16> to vector<24x4xbf16>
      %cst = arith.constant 0.000000e+00 : f32
      %45 = vector.broadcast %cst : f32 to vector<16x4xf32>
      %cst_54 = arith.constant 0.000000e+00 : f32
      %46 = vector.broadcast %cst_54 : f32 to vector<16x4xf32>
      %47 = vector.extract_strided_slice %41 {offsets = [0, 0], sizes = [16, 4], strides = [1, 1]} : vector<24x4xbf16> to vector<16x4xbf16>
      %cst_55 = arith.constant dense<0.000000e+00> : vector<16x4xf32>
      %48 = tpu.matmul %47, %1, %cst_55 {dimension_numbers = #tpu.dot_dimension_numbers<[1], [0], [0], [1], [0, 0, 1, 1], [], []>} : vector<16x4xbf16>, vector<4x4xbf16>, vector<16x4xf32> -> vector<16x4xf32>
      %49 = arith.addf %45, %48 : vector<16x4xf32>
      %50 = vector.extract_strided_slice %44 {offsets = [0, 0], sizes = [16, 4], strides = [1, 1]} : vector<24x4xbf16> to vector<16x4xbf16>
      %cst_56 = arith.constant dense<0.000000e+00> : vector<16x4xf32>
      %51 = tpu.matmul %50, %19, %cst_56 {dimension_numbers = #tpu.dot_dimension_numbers<[1], [0], [0], [1], [0, 0, 1, 1], [], []>} : vector<16x4xbf16>, vector<4x4xbf16>, vector<16x4xf32> -> vector<16x4xf32>
      %52 = arith.addf %46, %51 : vector<16x4xf32>
      %53 = vector.extract_strided_slice %41 {offsets = [1, 0], sizes = [16, 4], strides = [1, 1]} : vector<24x4xbf16> to vector<16x4xbf16>
      %cst_57 = arith.constant dense<0.000000e+00> : vector<16x4xf32>
      %54 = tpu.matmul %53, %3, %cst_57 {dimension_numbers = #tpu.dot_dimension_numbers<[1], [0], [0], [1], [0, 0, 1, 1], [], []>} : vector<16x4xbf16>, vector<4x4xbf16>, vector<16x4xf32> -> vector<16x4xf32>
      %55 = arith.addf %49, %54 : vector<16x4xf32>
      %56 = vector.extract_strided_slice %44 {offsets = [1, 0], sizes = [16, 4], strides = [1, 1]} : vector<24x4xbf16> to vector<16x4xbf16>
      %cst_58 = arith.constant dense<0.000000e+00> : vector<16x4xf32>
      %57 = tpu.matmul %56, %21, %cst_58 {dimension_numbers = #tpu.dot_dimension_numbers<[1], [0], [0], [1], [0, 0, 1, 1], [], []>} : vector<16x4xbf16>, vector<4x4xbf16>, vector<16x4xf32> -> vector<16x4xf32>
      %58 = arith.addf %52, %57 : vector<16x4xf32>
      %59 = vector.extract_strided_slice %41 {offsets = [2, 0], sizes = [16, 4], strides = [1, 1]} : vector<24x4xbf16> to vector<16x4xbf16>
      %cst_59 = arith.constant dense<0.000000e+00> : vector<16x4xf32>
      %60 = tpu.matmul %59, %5, %cst_59 {dimension_numbers = #tpu.dot_dimension_numbers<[1], [0], [0], [1], [0, 0, 1, 1], [], []>} : vector<16x4xbf16>, vector<4x4xbf16>, vector<16x4xf32> -> vector<16x4xf32>
      %61 = arith.addf %55, %60 : vector<16x4xf32>
      %62 = vector.extract_strided_slice %44 {offsets = [2, 0], sizes = [16, 4], strides = [1, 1]} : vector<24x4xbf16> to vector<16x4xbf16>
      %cst_60 = arith.constant dense<0.000000e+00> : vector<16x4xf32>
      %63 = tpu.matmul %62, %23, %cst_60 {dimension_numbers = #tpu.dot_dimension_numbers<[1], [0], [0], [1], [0, 0, 1, 1], [], []>} : vector<16x4xbf16>, vector<4x4xbf16>, vector<16x4xf32> -> vector<16x4xf32>
      %64 = arith.addf %58, %63 : vector<16x4xf32>
      %65 = vector.extract_strided_slice %41 {offsets = [3, 0], sizes = [16, 4], strides = [1, 1]} : vector<24x4xbf16> to vector<16x4xbf16>
      %cst_61 = arith.constant dense<0.000000e+00> : vector<16x4xf32>
      %66 = tpu.matmul %65, %7, %cst_61 {dimension_numbers = #tpu.dot_dimension_numbers<[1], [0], [0], [1], [0, 0, 1, 1], [], []>} : vector<16x4xbf16>, vector<4x4xbf16>, vector<16x4xf32> -> vector<16x4xf32>
      %67 = arith.addf %61, %66 : vector<16x4xf32>
      %68 = vector.extract_strided_slice %44 {offsets = [3, 0], sizes = [16, 4], strides = [1, 1]} : vector<24x4xbf16> to vector<16x4xbf16>
      %cst_62 = arith.constant dense<0.000000e+00> : vector<16x4xf32>
      %69 = tpu.matmul %68, %25, %cst_62 {dimension_numbers = #tpu.dot_dimension_numbers<[1], [0], [0], [1], [0, 0, 1, 1], [], []>} : vector<16x4xbf16>, vector<4x4xbf16>, vector<16x4xf32> -> vector<16x4xf32>
      %70 = arith.addf %64, %69 : vector<16x4xf32>
      %71 = vector.extract_strided_slice %41 {offsets = [4, 0], sizes = [16, 4], strides = [1, 1]} : vector<24x4xbf16> to vector<16x4xbf16>
      %cst_63 = arith.constant dense<0.000000e+00> : vector<16x4xf32>
      %72 = tpu.matmul %71, %9, %cst_63 {dimension_numbers = #tpu.dot_dimension_numbers<[1], [0], [0], [1], [0, 0, 1, 1], [], []>} : vector<16x4xbf16>, vector<4x4xbf16>, vector<16x4xf32> -> vector<16x4xf32>
      %73 = arith.addf %67, %72 : vector<16x4xf32>
      %74 = vector.extract_strided_slice %44 {offsets = [4, 0], sizes = [16, 4], strides = [1, 1]} : vector<24x4xbf16> to vector<16x4xbf16>
      %cst_64 = arith.constant dense<0.000000e+00> : vector<16x4xf32>
      %75 = tpu.matmul %74, %27, %cst_64 {dimension_numbers = #tpu.dot_dimension_numbers<[1], [0], [0], [1], [0, 0, 1, 1], [], []>} : vector<16x4xbf16>, vector<4x4xbf16>, vector<16x4xf32> -> vector<16x4xf32>
      %76 = arith.addf %70, %75 : vector<16x4xf32>
      %77 = vector.extract_strided_slice %41 {offsets = [5, 0], sizes = [16, 4], strides = [1, 1]} : vector<24x4xbf16> to vector<16x4xbf16>
      %cst_65 = arith.constant dense<0.000000e+00> : vector<16x4xf32>
      %78 = tpu.matmul %77, %11, %cst_65 {dimension_numbers = #tpu.dot_dimension_numbers<[1], [0], [0], [1], [0, 0, 1, 1], [], []>} : vector<16x4xbf16>, vector<4x4xbf16>, vector<16x4xf32> -> vector<16x4xf32>
      %79 = arith.addf %73, %78 : vector<16x4xf32>
      %80 = vector.extract_strided_slice %44 {offsets = [5, 0], sizes = [16, 4], strides = [1, 1]} : vector<24x4xbf16> to vector<16x4xbf16>
      %cst_66 = arith.constant dense<0.000000e+00> : vector<16x4xf32>
      %81 = tpu.matmul %80, %29, %cst_66 {dimension_numbers = #tpu.dot_dimension_numbers<[1], [0], [0], [1], [0, 0, 1, 1], [], []>} : vector<16x4xbf16>, vector<4x4xbf16>, vector<16x4xf32> -> vector<16x4xf32>
      %82 = arith.addf %76, %81 : vector<16x4xf32>
      %83 = vector.extract_strided_slice %41 {offsets = [6, 0], sizes = [16, 4], strides = [1, 1]} : vector<24x4xbf16> to vector<16x4xbf16>
      %cst_67 = arith.constant dense<0.000000e+00> : vector<16x4xf32>
      %84 = tpu.matmul %83, %13, %cst_67 {dimension_numbers = #tpu.dot_dimension_numbers<[1], [0], [0], [1], [0, 0, 1, 1], [], []>} : vector<16x4xbf16>, vector<4x4xbf16>, vector<16x4xf32> -> vector<16x4xf32>
      %85 = arith.addf %79, %84 : vector<16x4xf32>
      %86 = vector.extract_strided_slice %44 {offsets = [6, 0], sizes = [16, 4], strides = [1, 1]} : vector<24x4xbf16> to vector<16x4xbf16>
      %cst_68 = arith.constant dense<0.000000e+00> : vector<16x4xf32>
      %87 = tpu.matmul %86, %31, %cst_68 {dimension_numbers = #tpu.dot_dimension_numbers<[1], [0], [0], [1], [0, 0, 1, 1], [], []>} : vector<16x4xbf16>, vector<4x4xbf16>, vector<16x4xf32> -> vector<16x4xf32>
      %88 = arith.addf %82, %87 : vector<16x4xf32>
      %89 = vector.extract_strided_slice %41 {offsets = [7, 0], sizes = [16, 4], strides = [1, 1]} : vector<24x4xbf16> to vector<16x4xbf16>
      %cst_69 = arith.constant dense<0.000000e+00> : vector<16x4xf32>
      %90 = tpu.matmul %89, %15, %cst_69 {dimension_numbers = #tpu.dot_dimension_numbers<[1], [0], [0], [1], [0, 0, 1, 1], [], []>} : vector<16x4xbf16>, vector<4x4xbf16>, vector<16x4xf32> -> vector<16x4xf32>
      %91 = arith.addf %85, %90 : vector<16x4xf32>
      %92 = vector.extract_strided_slice %44 {offsets = [7, 0], sizes = [16, 4], strides = [1, 1]} : vector<24x4xbf16> to vector<16x4xbf16>
      %cst_70 = arith.constant dense<0.000000e+00> : vector<16x4xf32>
      %93 = tpu.matmul %92, %33, %cst_70 {dimension_numbers = #tpu.dot_dimension_numbers<[1], [0], [0], [1], [0, 0, 1, 1], [], []>} : vector<16x4xbf16>, vector<4x4xbf16>, vector<16x4xf32> -> vector<16x4xf32>
      %94 = arith.addf %88, %93 : vector<16x4xf32>
      %95 = vector.extract_strided_slice %41 {offsets = [8, 0], sizes = [16, 4], strides = [1, 1]} : vector<24x4xbf16> to vector<16x4xbf16>
      %cst_71 = arith.constant dense<0.000000e+00> : vector<16x4xf32>
      %96 = tpu.matmul %95, %17, %cst_71 {dimension_numbers = #tpu.dot_dimension_numbers<[1], [0], [0], [1], [0, 0, 1, 1], [], []>} : vector<16x4xbf16>, vector<4x4xbf16>, vector<16x4xf32> -> vector<16x4xf32>
      %97 = arith.addf %91, %96 : vector<16x4xf32>
      %98 = vector.extract_strided_slice %44 {offsets = [8, 0], sizes = [16, 4], strides = [1, 1]} : vector<24x4xbf16> to vector<16x4xbf16>
      %cst_72 = arith.constant dense<0.000000e+00> : vector<16x4xf32>
      %99 = tpu.matmul %98, %35, %cst_72 {dimension_numbers = #tpu.dot_dimension_numbers<[1], [0], [0], [1], [0, 0, 1, 1], [], []>} : vector<16x4xbf16>, vector<4x4xbf16>, vector<16x4xf32> -> vector<16x4xf32>
      %100 = arith.addf %94, %99 : vector<16x4xf32>
      %101 = vector.broadcast %36 : vector<1x4xf32> to vector<16x4xf32>
      %102 = arith.addf %97, %101 : vector<16x4xf32>
      %103 = arith.truncf %102 : vector<16x4xf32> to vector<16x4xbf16>
      %104 = arith.index_cast %arg9 : i32 to index
      %c0_73 = arith.constant 0 : index
      %c0_74 = arith.constant 0 : index
      %105 = vector.load %arg7[%104, %c0_73, %c0_74] : memref<16x16x4xbf16, #tpu.memory_space<vmem>>, vector<1x16x4xbf16>
      %106 = vector.shape_cast %105 : vector<1x16x4xbf16> to vector<16x4xbf16>
      %107 = vector.shape_cast %103 : vector<16x4xbf16> to vector<1x16x4xbf16>
      tpu.vector_store %arg7[%104, %c0_73, %c0_74], %107 {strides = array<i32>} : memref<16x16x4xbf16, #tpu.memory_space<vmem>>, vector<1x16x4xbf16>,
      %108 = vector.broadcast %37 : vector<1x4xf32> to vector<16x4xf32>
      %109 = arith.addf %100, %108 : vector<16x4xf32>
      %110 = arith.truncf %109 : vector<16x4xf32> to vector<16x4xbf16>
      %111 = arith.index_cast %arg9 : i32 to index
      %c0_75 = arith.constant 0 : index
      %c0_76 = arith.constant 0 : index
      %112 = vector.load %arg8[%111, %c0_75, %c0_76] : memref<16x16x4xbf16, #tpu.memory_space<vmem>>, vector<1x16x4xbf16>
      %113 = vector.shape_cast %112 : vector<1x16x4xbf16> to vector<16x4xbf16>
      %114 = vector.shape_cast %110 : vector<16x4xbf16> to vector<1x16x4xbf16>
      tpu.vector_store %arg8[%111, %c0_75, %c0_76], %114 {strides = array<i32>} : memref<16x16x4xbf16, #tpu.memory_space<vmem>>, vector<1x16x4xbf16>,
    }
    %c16_i32_49 = arith.constant 16 : i32
    return
  }
  func.func @transform_0(%arg0: i32) -> (i32, i32, i32) {
    %c0_i32 = arith.constant 0 : i32
    %c0_i32_0 = arith.constant 0 : i32
    %c0_i32_1 = arith.constant 0 : i32
    return %arg0, %c0_i32, %c0_i32_0 : i32, i32, i32
  }
  func.func @transform_1(%arg0: i32) -> (i32, i32, i32) {
    %c0_i32 = arith.constant 0 : i32
    %c0_i32_0 = arith.constant 0 : i32
    %c0_i32_1 = arith.constant 0 : i32
    return %arg0, %c0_i32, %c0_i32_0 : i32, i32, i32
  }
  func.func @transform_2(%arg0: i32) -> (i32, i32, i32) {
    %c0_i32 = arith.constant 0 : i32
    %c0_i32_0 = arith.constant 0 : i32
    %c0_i32_1 = arith.constant 0 : i32
    %c0_i32_2 = arith.constant 0 : i32
    return %c0_i32, %c0_i32_0, %c0_i32_1 : i32, i32, i32
  }
  func.func @transform_3(%arg0: i32) -> (i32, i32, i32) {
    %c0_i32 = arith.constant 0 : i32
    %c0_i32_0 = arith.constant 0 : i32
    %c0_i32_1 = arith.constant 0 : i32
    %c0_i32_2 = arith.constant 0 : i32
    return %c0_i32, %c0_i32_0, %c0_i32_1 : i32, i32, i32
  }
  func.func @transform_4(%arg0: i32) -> (i32, i32) {
    %c0_i32 = arith.constant 0 : i32
    %c0_i32_0 = arith.constant 0 : i32
    %c0_i32_1 = arith.constant 0 : i32
    return %c0_i32, %c0_i32_0 : i32, i32
  }
  func.func @transform_5(%arg0: i32) -> (i32, i32) {
    %c0_i32 = arith.constant 0 : i32
    %c0_i32_0 = arith.constant 0 : i32
    %c0_i32_1 = arith.constant 0 : i32
    return %c0_i32, %c0_i32_0 : i32, i32
  }
  func.func @transform_6(%arg0: i32) -> (i32, i32, i32) {
    %c0_i32 = arith.constant 0 : i32
    %c0_i32_0 = arith.constant 0 : i32
    %c0_i32_1 = arith.constant 0 : i32
    return %arg0, %c0_i32, %c0_i32_0 : i32, i32, i32
  }
  func.func @transform_7(%arg0: i32) -> (i32, i32, i32) {
    %c0_i32 = arith.constant 0 : i32
    %c0_i32_0 = arith.constant 0 : i32
    %c0_i32_1 = arith.constant 0 : i32
    return %arg0, %c0_i32, %c0_i32_0 : i32, i32, i32
  }
}

module attributes {stable_mosaic.version = 11 : i64} {
  func.func @_dual_dirconv_kernel(%arg0: i32, %arg1: memref<8x24x4xbf16, #tpu.memory_space<vmem>>, %arg2: memref<8x24x4xbf16, #tpu.memory_space<vmem>>, %arg3: memref<9x4x4xbf16, #tpu.memory_space<vmem>>, %arg4: memref<9x4x4xbf16, #tpu.memory_space<vmem>>, %arg5: memref<1x4xf32, #tpu.memory_space<vmem>>, %arg6: memref<1x4xf32, #tpu.memory_space<vmem>>, %arg7: memref<8x16x4xbf16, #tpu.memory_space<vmem>>, %arg8: memref<8x16x4xbf16, #tpu.memory_space<vmem>>) attributes {dimension_semantics = [#tpu.dimension_semantics<parallel>], iteration_bounds = array<i64: 4>, scalar_prefetch = 0 : i64, scratch_operands = 0 : i64, tpu.core_type = #tpu.core_type<tc>, window_params = [{transform_indices = @transform_0, window_bounds = array<i64: 8, 24, 4>}, {transform_indices = @transform_1, window_bounds = array<i64: 8, 24, 4>}, {pipeline_mode = #tpu.pipeline_mode<synchronous>, transform_indices = @transform_2, window_bounds = array<i64: 9, 4, 4>}, {pipeline_mode = #tpu.pipeline_mode<synchronous>, transform_indices = @transform_3, window_bounds = array<i64: 9, 4, 4>}, {pipeline_mode = #tpu.pipeline_mode<synchronous>, transform_indices = @transform_4, window_bounds = array<i64: 1, 4>}, {pipeline_mode = #tpu.pipeline_mode<synchronous>, transform_indices = @transform_5, window_bounds = array<i64: 1, 4>}, {transform_indices = @transform_6, window_bounds = array<i64: 8, 16, 4>}, {transform_indices = @transform_7, window_bounds = array<i64: 8, 16, 4>}]} {
    %c0 = arith.constant 0 : index
    %c0_0 = arith.constant 0 : index
    %c0_1 = arith.constant 0 : index
    %0 = vector.load %arg3[%c0, %c0_0, %c0_1] : memref<9x4x4xbf16, #tpu.memory_space<vmem>>, vector<1x4x4xbf16>
    %1 = vector.shape_cast %0 : vector<1x4x4xbf16> to vector<4x4xbf16>
    %c1 = arith.constant 1 : index
    %c0_2 = arith.constant 0 : index
    %c0_3 = arith.constant 0 : index
    %2 = vector.load %arg3[%c1, %c0_2, %c0_3] : memref<9x4x4xbf16, #tpu.memory_space<vmem>>, vector<1x4x4xbf16>
    %3 = vector.shape_cast %2 : vector<1x4x4xbf16> to vector<4x4xbf16>
    %c2 = arith.constant 2 : index
    %c0_4 = arith.constant 0 : index
    %c0_5 = arith.constant 0 : index
    %4 = vector.load %arg3[%c2, %c0_4, %c0_5] : memref<9x4x4xbf16, #tpu.memory_space<vmem>>, vector<1x4x4xbf16>
    %5 = vector.shape_cast %4 : vector<1x4x4xbf16> to vector<4x4xbf16>
    %c3 = arith.constant 3 : index
    %c0_6 = arith.constant 0 : index
    %c0_7 = arith.constant 0 : index
    %6 = vector.load %arg3[%c3, %c0_6, %c0_7] : memref<9x4x4xbf16, #tpu.memory_space<vmem>>, vector<1x4x4xbf16>
    %7 = vector.shape_cast %6 : vector<1x4x4xbf16> to vector<4x4xbf16>
    %c4 = arith.constant 4 : index
    %c0_8 = arith.constant 0 : index
    %c0_9 = arith.constant 0 : index
    %8 = vector.load %arg3[%c4, %c0_8, %c0_9] : memref<9x4x4xbf16, #tpu.memory_space<vmem>>, vector<1x4x4xbf16>
    %9 = vector.shape_cast %8 : vector<1x4x4xbf16> to vector<4x4xbf16>
    %c5 = arith.constant 5 : index
    %c0_10 = arith.constant 0 : index
    %c0_11 = arith.constant 0 : index
    %10 = vector.load %arg3[%c5, %c0_10, %c0_11] : memref<9x4x4xbf16, #tpu.memory_space<vmem>>, vector<1x4x4xbf16>
    %11 = vector.shape_cast %10 : vector<1x4x4xbf16> to vector<4x4xbf16>
    %c6 = arith.constant 6 : index
    %c0_12 = arith.constant 0 : index
    %c0_13 = arith.constant 0 : index
    %12 = vector.load %arg3[%c6, %c0_12, %c0_13] : memref<9x4x4xbf16, #tpu.memory_space<vmem>>, vector<1x4x4xbf16>
    %13 = vector.shape_cast %12 : vector<1x4x4xbf16> to vector<4x4xbf16>
    %c7 = arith.constant 7 : index
    %c0_14 = arith.constant 0 : index
    %c0_15 = arith.constant 0 : index
    %14 = vector.load %arg3[%c7, %c0_14, %c0_15] : memref<9x4x4xbf16, #tpu.memory_space<vmem>>, vector<1x4x4xbf16>
    %15 = vector.shape_cast %14 : vector<1x4x4xbf16> to vector<4x4xbf16>
    %c8 = arith.constant 8 : index
    %c0_16 = arith.constant 0 : index
    %c0_17 = arith.constant 0 : index
    %16 = vector.load %arg3[%c8, %c0_16, %c0_17] : memref<9x4x4xbf16, #tpu.memory_space<vmem>>, vector<1x4x4xbf16>
    %17 = vector.shape_cast %16 : vector<1x4x4xbf16> to vector<4x4xbf16>
    %c0_18 = arith.constant 0 : index
    %c0_19 = arith.constant 0 : index
    %c0_20 = arith.constant 0 : index
    %18 = vector.load %arg4[%c0_18, %c0_19, %c0_20] : memref<9x4x4xbf16, #tpu.memory_space<vmem>>, vector<1x4x4xbf16>
    %19 = vector.shape_cast %18 : vector<1x4x4xbf16> to vector<4x4xbf16>
    %c1_21 = arith.constant 1 : index
    %c0_22 = arith.constant 0 : index
    %c0_23 = arith.constant 0 : index
    %20 = vector.load %arg4[%c1_21, %c0_22, %c0_23] : memref<9x4x4xbf16, #tpu.memory_space<vmem>>, vector<1x4x4xbf16>
    %21 = vector.shape_cast %20 : vector<1x4x4xbf16> to vector<4x4xbf16>
    %c2_24 = arith.constant 2 : index
    %c0_25 = arith.constant 0 : index
    %c0_26 = arith.constant 0 : index
    %22 = vector.load %arg4[%c2_24, %c0_25, %c0_26] : memref<9x4x4xbf16, #tpu.memory_space<vmem>>, vector<1x4x4xbf16>
    %23 = vector.shape_cast %22 : vector<1x4x4xbf16> to vector<4x4xbf16>
    %c3_27 = arith.constant 3 : index
    %c0_28 = arith.constant 0 : index
    %c0_29 = arith.constant 0 : index
    %24 = vector.load %arg4[%c3_27, %c0_28, %c0_29] : memref<9x4x4xbf16, #tpu.memory_space<vmem>>, vector<1x4x4xbf16>
    %25 = vector.shape_cast %24 : vector<1x4x4xbf16> to vector<4x4xbf16>
    %c4_30 = arith.constant 4 : index
    %c0_31 = arith.constant 0 : index
    %c0_32 = arith.constant 0 : index
    %26 = vector.load %arg4[%c4_30, %c0_31, %c0_32] : memref<9x4x4xbf16, #tpu.memory_space<vmem>>, vector<1x4x4xbf16>
    %27 = vector.shape_cast %26 : vector<1x4x4xbf16> to vector<4x4xbf16>
    %c5_33 = arith.constant 5 : index
    %c0_34 = arith.constant 0 : index
    %c0_35 = arith.constant 0 : index
    %28 = vector.load %arg4[%c5_33, %c0_34, %c0_35] : memref<9x4x4xbf16, #tpu.memory_space<vmem>>, vector<1x4x4xbf16>
    %29 = vector.shape_cast %28 : vector<1x4x4xbf16> to vector<4x4xbf16>
    %c6_36 = arith.constant 6 : index
    %c0_37 = arith.constant 0 : index
    %c0_38 = arith.constant 0 : index
    %30 = vector.load %arg4[%c6_36, %c0_37, %c0_38] : memref<9x4x4xbf16, #tpu.memory_space<vmem>>, vector<1x4x4xbf16>
    %31 = vector.shape_cast %30 : vector<1x4x4xbf16> to vector<4x4xbf16>
    %c7_39 = arith.constant 7 : index
    %c0_40 = arith.constant 0 : index
    %c0_41 = arith.constant 0 : index
    %32 = vector.load %arg4[%c7_39, %c0_40, %c0_41] : memref<9x4x4xbf16, #tpu.memory_space<vmem>>, vector<1x4x4xbf16>
    %33 = vector.shape_cast %32 : vector<1x4x4xbf16> to vector<4x4xbf16>
    %c8_42 = arith.constant 8 : index
    %c0_43 = arith.constant 0 : index
    %c0_44 = arith.constant 0 : index
    %34 = vector.load %arg4[%c8_42, %c0_43, %c0_44] : memref<9x4x4xbf16, #tpu.memory_space<vmem>>, vector<1x4x4xbf16>
    %35 = vector.shape_cast %34 : vector<1x4x4xbf16> to vector<4x4xbf16>
    %c0_45 = arith.constant 0 : index
    %c0_46 = arith.constant 0 : index
    %36 = vector.load %arg5[%c0_45, %c0_46] : memref<1x4xf32, #tpu.memory_space<vmem>>, vector<1x4xf32>
    %c0_47 = arith.constant 0 : index
    %c0_48 = arith.constant 0 : index
    %37 = vector.load %arg6[%c0_47, %c0_48] : memref<1x4xf32, #tpu.memory_space<vmem>>, vector<1x4xf32>
    %c0_i32 = arith.constant 0 : i32
    %c8_i32 = arith.constant 8 : i32
    %38 = arith.addi %c0_i32, %c8_i32 : i32
    %c1_i32 = arith.constant 1 : i32
    scf.for %arg9 = %c0_i32 to %38 step %c1_i32  : i32 {
      %39 = arith.index_cast %arg9 : i32 to index
      %c0_50 = arith.constant 0 : index
      %c0_51 = arith.constant 0 : index
      %40 = vector.load %arg1[%39, %c0_50, %c0_51] : memref<8x24x4xbf16, #tpu.memory_space<vmem>>, vector<1x24x4xbf16>
      %41 = vector.shape_cast %40 : vector<1x24x4xbf16> to vector<24x4xbf16>
      %42 = arith.index_cast %arg9 : i32 to index
      %c0_52 = arith.constant 0 : index
      %c0_53 = arith.constant 0 : index
      %43 = vector.load %arg2[%42, %c0_52, %c0_53] : memref<8x24x4xbf16, #tpu.memory_space<vmem>>, vector<1x24x4xbf16>
      %44 = vector.shape_cast %43 : vector<1x24x4xbf16> to vector<24x4xbf16>
      %cst = arith.constant 0.000000e+00 : f32
      %45 = vector.broadcast %cst : f32 to vector<16x4xf32>
      %cst_54 = arith.constant 0.000000e+00 : f32
      %46 = vector.broadcast %cst_54 : f32 to vector<16x4xf32>
      %47 = vector.extract_strided_slice %41 {offsets = [0, 0], sizes = [16, 4], strides = [1, 1]} : vector<24x4xbf16> to vector<16x4xbf16>
      %cst_55 = arith.constant dense<0.000000e+00> : vector<16x4xf32>
      %48 = tpu.matmul %47, %1, %cst_55 {dimension_numbers = #tpu.dot_dimension_numbers<[1], [0], [0], [1], [0, 0, 1, 1], [], []>} : vector<16x4xbf16>, vector<4x4xbf16>, vector<16x4xf32> -> vector<16x4xf32>
      %49 = arith.addf %45, %48 : vector<16x4xf32>
      %50 = vector.extract_strided_slice %44 {offsets = [0, 0], sizes = [16, 4], strides = [1, 1]} : vector<24x4xbf16> to vector<16x4xbf16>
      %cst_56 = arith.constant dense<0.000000e+00> : vector<16x4xf32>
      %51 = tpu.matmul %50, %19, %cst_56 {dimension_numbers = #tpu.dot_dimension_numbers<[1], [0], [0], [1], [0, 0, 1, 1], [], []>} : vector<16x4xbf16>, vector<4x4xbf16>, vector<16x4xf32> -> vector<16x4xf32>
      %52 = arith.addf %46, %51 : vector<16x4xf32>
      %53 = vector.extract_strided_slice %41 {offsets = [1, 0], sizes = [16, 4], strides = [1, 1]} : vector<24x4xbf16> to vector<16x4xbf16>
      %cst_57 = arith.constant dense<0.000000e+00> : vector<16x4xf32>
      %54 = tpu.matmul %53, %3, %cst_57 {dimension_numbers = #tpu.dot_dimension_numbers<[1], [0], [0], [1], [0, 0, 1, 1], [], []>} : vector<16x4xbf16>, vector<4x4xbf16>, vector<16x4xf32> -> vector<16x4xf32>
      %55 = arith.addf %49, %54 : vector<16x4xf32>
      %56 = vector.extract_strided_slice %44 {offsets = [1, 0], sizes = [16, 4], strides = [1, 1]} : vector<24x4xbf16> to vector<16x4xbf16>
      %cst_58 = arith.constant dense<0.000000e+00> : vector<16x4xf32>
      %57 = tpu.matmul %56, %21, %cst_58 {dimension_numbers = #tpu.dot_dimension_numbers<[1], [0], [0], [1], [0, 0, 1, 1], [], []>} : vector<16x4xbf16>, vector<4x4xbf16>, vector<16x4xf32> -> vector<16x4xf32>
      %58 = arith.addf %52, %57 : vector<16x4xf32>
      %59 = vector.extract_strided_slice %41 {offsets = [2, 0], sizes = [16, 4], strides = [1, 1]} : vector<24x4xbf16> to vector<16x4xbf16>
      %cst_59 = arith.constant dense<0.000000e+00> : vector<16x4xf32>
      %60 = tpu.matmul %59, %5, %cst_59 {dimension_numbers = #tpu.dot_dimension_numbers<[1], [0], [0], [1], [0, 0, 1, 1], [], []>} : vector<16x4xbf16>, vector<4x4xbf16>, vector<16x4xf32> -> vector<16x4xf32>
      %61 = arith.addf %55, %60 : vector<16x4xf32>
      %62 = vector.extract_strided_slice %44 {offsets = [2, 0], sizes = [16, 4], strides = [1, 1]} : vector<24x4xbf16> to vector<16x4xbf16>
      %cst_60 = arith.constant dense<0.000000e+00> : vector<16x4xf32>
      %63 = tpu.matmul %62, %23, %cst_60 {dimension_numbers = #tpu.dot_dimension_numbers<[1], [0], [0], [1], [0, 0, 1, 1], [], []>} : vector<16x4xbf16>, vector<4x4xbf16>, vector<16x4xf32> -> vector<16x4xf32>
      %64 = arith.addf %58, %63 : vector<16x4xf32>
      %65 = vector.extract_strided_slice %41 {offsets = [3, 0], sizes = [16, 4], strides = [1, 1]} : vector<24x4xbf16> to vector<16x4xbf16>
      %cst_61 = arith.constant dense<0.000000e+00> : vector<16x4xf32>
      %66 = tpu.matmul %65, %7, %cst_61 {dimension_numbers = #tpu.dot_dimension_numbers<[1], [0], [0], [1], [0, 0, 1, 1], [], []>} : vector<16x4xbf16>, vector<4x4xbf16>, vector<16x4xf32> -> vector<16x4xf32>
      %67 = arith.addf %61, %66 : vector<16x4xf32>
      %68 = vector.extract_strided_slice %44 {offsets = [3, 0], sizes = [16, 4], strides = [1, 1]} : vector<24x4xbf16> to vector<16x4xbf16>
      %cst_62 = arith.constant dense<0.000000e+00> : vector<16x4xf32>
      %69 = tpu.matmul %68, %25, %cst_62 {dimension_numbers = #tpu.dot_dimension_numbers<[1], [0], [0], [1], [0, 0, 1, 1], [], []>} : vector<16x4xbf16>, vector<4x4xbf16>, vector<16x4xf32> -> vector<16x4xf32>
      %70 = arith.addf %64, %69 : vector<16x4xf32>
      %71 = vector.extract_strided_slice %41 {offsets = [4, 0], sizes = [16, 4], strides = [1, 1]} : vector<24x4xbf16> to vector<16x4xbf16>
      %cst_63 = arith.constant dense<0.000000e+00> : vector<16x4xf32>
      %72 = tpu.matmul %71, %9, %cst_63 {dimension_numbers = #tpu.dot_dimension_numbers<[1], [0], [0], [1], [0, 0, 1, 1], [], []>} : vector<16x4xbf16>, vector<4x4xbf16>, vector<16x4xf32> -> vector<16x4xf32>
      %73 = arith.addf %67, %72 : vector<16x4xf32>
      %74 = vector.extract_strided_slice %44 {offsets = [4, 0], sizes = [16, 4], strides = [1, 1]} : vector<24x4xbf16> to vector<16x4xbf16>
      %cst_64 = arith.constant dense<0.000000e+00> : vector<16x4xf32>
      %75 = tpu.matmul %74, %27, %cst_64 {dimension_numbers = #tpu.dot_dimension_numbers<[1], [0], [0], [1], [0, 0, 1, 1], [], []>} : vector<16x4xbf16>, vector<4x4xbf16>, vector<16x4xf32> -> vector<16x4xf32>
      %76 = arith.addf %70, %75 : vector<16x4xf32>
      %77 = vector.extract_strided_slice %41 {offsets = [5, 0], sizes = [16, 4], strides = [1, 1]} : vector<24x4xbf16> to vector<16x4xbf16>
      %cst_65 = arith.constant dense<0.000000e+00> : vector<16x4xf32>
      %78 = tpu.matmul %77, %11, %cst_65 {dimension_numbers = #tpu.dot_dimension_numbers<[1], [0], [0], [1], [0, 0, 1, 1], [], []>} : vector<16x4xbf16>, vector<4x4xbf16>, vector<16x4xf32> -> vector<16x4xf32>
      %79 = arith.addf %73, %78 : vector<16x4xf32>
      %80 = vector.extract_strided_slice %44 {offsets = [5, 0], sizes = [16, 4], strides = [1, 1]} : vector<24x4xbf16> to vector<16x4xbf16>
      %cst_66 = arith.constant dense<0.000000e+00> : vector<16x4xf32>
      %81 = tpu.matmul %80, %29, %cst_66 {dimension_numbers = #tpu.dot_dimension_numbers<[1], [0], [0], [1], [0, 0, 1, 1], [], []>} : vector<16x4xbf16>, vector<4x4xbf16>, vector<16x4xf32> -> vector<16x4xf32>
      %82 = arith.addf %76, %81 : vector<16x4xf32>
      %83 = vector.extract_strided_slice %41 {offsets = [6, 0], sizes = [16, 4], strides = [1, 1]} : vector<24x4xbf16> to vector<16x4xbf16>
      %cst_67 = arith.constant dense<0.000000e+00> : vector<16x4xf32>
      %84 = tpu.matmul %83, %13, %cst_67 {dimension_numbers = #tpu.dot_dimension_numbers<[1], [0], [0], [1], [0, 0, 1, 1], [], []>} : vector<16x4xbf16>, vector<4x4xbf16>, vector<16x4xf32> -> vector<16x4xf32>
      %85 = arith.addf %79, %84 : vector<16x4xf32>
      %86 = vector.extract_strided_slice %44 {offsets = [6, 0], sizes = [16, 4], strides = [1, 1]} : vector<24x4xbf16> to vector<16x4xbf16>
      %cst_68 = arith.constant dense<0.000000e+00> : vector<16x4xf32>
      %87 = tpu.matmul %86, %31, %cst_68 {dimension_numbers = #tpu.dot_dimension_numbers<[1], [0], [0], [1], [0, 0, 1, 1], [], []>} : vector<16x4xbf16>, vector<4x4xbf16>, vector<16x4xf32> -> vector<16x4xf32>
      %88 = arith.addf %82, %87 : vector<16x4xf32>
      %89 = vector.extract_strided_slice %41 {offsets = [7, 0], sizes = [16, 4], strides = [1, 1]} : vector<24x4xbf16> to vector<16x4xbf16>
      %cst_69 = arith.constant dense<0.000000e+00> : vector<16x4xf32>
      %90 = tpu.matmul %89, %15, %cst_69 {dimension_numbers = #tpu.dot_dimension_numbers<[1], [0], [0], [1], [0, 0, 1, 1], [], []>} : vector<16x4xbf16>, vector<4x4xbf16>, vector<16x4xf32> -> vector<16x4xf32>
      %91 = arith.addf %85, %90 : vector<16x4xf32>
      %92 = vector.extract_strided_slice %44 {offsets = [7, 0], sizes = [16, 4], strides = [1, 1]} : vector<24x4xbf16> to vector<16x4xbf16>
      %cst_70 = arith.constant dense<0.000000e+00> : vector<16x4xf32>
      %93 = tpu.matmul %92, %33, %cst_70 {dimension_numbers = #tpu.dot_dimension_numbers<[1], [0], [0], [1], [0, 0, 1, 1], [], []>} : vector<16x4xbf16>, vector<4x4xbf16>, vector<16x4xf32> -> vector<16x4xf32>
      %94 = arith.addf %88, %93 : vector<16x4xf32>
      %95 = vector.extract_strided_slice %41 {offsets = [8, 0], sizes = [16, 4], strides = [1, 1]} : vector<24x4xbf16> to vector<16x4xbf16>
      %cst_71 = arith.constant dense<0.000000e+00> : vector<16x4xf32>
      %96 = tpu.matmul %95, %17, %cst_71 {dimension_numbers = #tpu.dot_dimension_numbers<[1], [0], [0], [1], [0, 0, 1, 1], [], []>} : vector<16x4xbf16>, vector<4x4xbf16>, vector<16x4xf32> -> vector<16x4xf32>
      %97 = arith.addf %91, %96 : vector<16x4xf32>
      %98 = vector.extract_strided_slice %44 {offsets = [8, 0], sizes = [16, 4], strides = [1, 1]} : vector<24x4xbf16> to vector<16x4xbf16>
      %cst_72 = arith.constant dense<0.000000e+00> : vector<16x4xf32>
      %99 = tpu.matmul %98, %35, %cst_72 {dimension_numbers = #tpu.dot_dimension_numbers<[1], [0], [0], [1], [0, 0, 1, 1], [], []>} : vector<16x4xbf16>, vector<4x4xbf16>, vector<16x4xf32> -> vector<16x4xf32>
      %100 = arith.addf %94, %99 : vector<16x4xf32>
      %101 = vector.broadcast %36 : vector<1x4xf32> to vector<16x4xf32>
      %102 = arith.addf %97, %101 : vector<16x4xf32>
      %103 = arith.truncf %102 : vector<16x4xf32> to vector<16x4xbf16>
      %104 = arith.index_cast %arg9 : i32 to index
      %c0_73 = arith.constant 0 : index
      %c0_74 = arith.constant 0 : index
      %105 = vector.load %arg7[%104, %c0_73, %c0_74] : memref<8x16x4xbf16, #tpu.memory_space<vmem>>, vector<1x16x4xbf16>
      %106 = vector.shape_cast %105 : vector<1x16x4xbf16> to vector<16x4xbf16>
      %107 = vector.shape_cast %103 : vector<16x4xbf16> to vector<1x16x4xbf16>
      tpu.vector_store %arg7[%104, %c0_73, %c0_74], %107 {strides = array<i32>} : memref<8x16x4xbf16, #tpu.memory_space<vmem>>, vector<1x16x4xbf16>,
      %108 = vector.broadcast %37 : vector<1x4xf32> to vector<16x4xf32>
      %109 = arith.addf %100, %108 : vector<16x4xf32>
      %110 = arith.truncf %109 : vector<16x4xf32> to vector<16x4xbf16>
      %111 = arith.index_cast %arg9 : i32 to index
      %c0_75 = arith.constant 0 : index
      %c0_76 = arith.constant 0 : index
      %112 = vector.load %arg8[%111, %c0_75, %c0_76] : memref<8x16x4xbf16, #tpu.memory_space<vmem>>, vector<1x16x4xbf16>
      %113 = vector.shape_cast %112 : vector<1x16x4xbf16> to vector<16x4xbf16>
      %114 = vector.shape_cast %110 : vector<16x4xbf16> to vector<1x16x4xbf16>
      tpu.vector_store %arg8[%111, %c0_75, %c0_76], %114 {strides = array<i32>} : memref<8x16x4xbf16, #tpu.memory_space<vmem>>, vector<1x16x4xbf16>,
    }
    %c8_i32_49 = arith.constant 8 : i32
    return
  }
  func.func @transform_0(%arg0: i32) -> (i32, i32, i32) {
    %c0_i32 = arith.constant 0 : i32
    %c0_i32_0 = arith.constant 0 : i32
    %c0_i32_1 = arith.constant 0 : i32
    return %arg0, %c0_i32, %c0_i32_0 : i32, i32, i32
  }
  func.func @transform_1(%arg0: i32) -> (i32, i32, i32) {
    %c0_i32 = arith.constant 0 : i32
    %c0_i32_0 = arith.constant 0 : i32
    %c0_i32_1 = arith.constant 0 : i32
    return %arg0, %c0_i32, %c0_i32_0 : i32, i32, i32
  }
  func.func @transform_2(%arg0: i32) -> (i32, i32, i32) {
    %c0_i32 = arith.constant 0 : i32
    %c0_i32_0 = arith.constant 0 : i32
    %c0_i32_1 = arith.constant 0 : i32
    %c0_i32_2 = arith.constant 0 : i32
    return %c0_i32, %c0_i32_0, %c0_i32_1 : i32, i32, i32
  }
  func.func @transform_3(%arg0: i32) -> (i32, i32, i32) {
    %c0_i32 = arith.constant 0 : i32
    %c0_i32_0 = arith.constant 0 : i32
    %c0_i32_1 = arith.constant 0 : i32
    %c0_i32_2 = arith.constant 0 : i32
    return %c0_i32, %c0_i32_0, %c0_i32_1 : i32, i32, i32
  }
  func.func @transform_4(%arg0: i32) -> (i32, i32) {
    %c0_i32 = arith.constant 0 : i32
    %c0_i32_0 = arith.constant 0 : i32
    %c0_i32_1 = arith.constant 0 : i32
    return %c0_i32, %c0_i32_0 : i32, i32
  }
  func.func @transform_5(%arg0: i32) -> (i32, i32) {
    %c0_i32 = arith.constant 0 : i32
    %c0_i32_0 = arith.constant 0 : i32
    %c0_i32_1 = arith.constant 0 : i32
    return %c0_i32, %c0_i32_0 : i32, i32
  }
  func.func @transform_6(%arg0: i32) -> (i32, i32, i32) {
    %c0_i32 = arith.constant 0 : i32
    %c0_i32_0 = arith.constant 0 : i32
    %c0_i32_1 = arith.constant 0 : i32
    return %arg0, %c0_i32, %c0_i32_0 : i32, i32, i32
  }
  func.func @transform_7(%arg0: i32) -> (i32, i32, i32) {
    %c0_i32 = arith.constant 0 : i32
    %c0_i32_0 = arith.constant 0 : i32
    %c0_i32_1 = arith.constant 0 : i32
    return %arg0, %c0_i32, %c0_i32_0 : i32, i32, i32
  }
}

module attributes {stable_mosaic.version = 11 : i64} {
  func.func @_final_kernel(%arg0: i32, %arg1: memref<128x4xbf16, #tpu.memory_space<vmem>>, %arg2: memref<128x4xbf16, #tpu.memory_space<vmem>>, %arg3: memref<128x4xbf16, #tpu.memory_space<vmem>>, %arg4: memref<128x4xbf16, #tpu.memory_space<vmem>>, %arg5: memref<128x4xbf16, #tpu.memory_space<vmem>>, %arg6: memref<4x4x4xbf16, #tpu.memory_space<vmem>>, %arg7: memref<1x4xf32, #tpu.memory_space<vmem>>, %arg8: memref<1x4xf32, #tpu.memory_space<vmem>>, %arg9: memref<1x4xf32, #tpu.memory_space<vmem>>, %arg10: memref<128x4xf32, #tpu.memory_space<vmem>>) attributes {dimension_semantics = [#tpu.dimension_semantics<parallel>], iteration_bounds = array<i64: 4>, scalar_prefetch = 0 : i64, scratch_operands = 0 : i64, tpu.core_type = #tpu.core_type<tc>, window_params = [{transform_indices = @transform_0, window_bounds = array<i64: 128, 4>}, {transform_indices = @transform_1, window_bounds = array<i64: 128, 4>}, {transform_indices = @transform_2, window_bounds = array<i64: 128, 4>}, {transform_indices = @transform_3, window_bounds = array<i64: 128, 4>}, {transform_indices = @transform_4, window_bounds = array<i64: 128, 4>}, {pipeline_mode = #tpu.pipeline_mode<synchronous>, transform_indices = @transform_5, window_bounds = array<i64: 4, 4, 4>}, {pipeline_mode = #tpu.pipeline_mode<synchronous>, transform_indices = @transform_6, window_bounds = array<i64: 1, 4>}, {pipeline_mode = #tpu.pipeline_mode<synchronous>, transform_indices = @transform_7, window_bounds = array<i64: 1, 4>}, {pipeline_mode = #tpu.pipeline_mode<synchronous>, transform_indices = @transform_8, window_bounds = array<i64: 1, 4>}, {transform_indices = @transform_9, window_bounds = array<i64: 128, 4>}]} {
    %c0 = arith.constant 0 : index
    %c0_0 = arith.constant 0 : index
    %c0_1 = arith.constant 0 : index
    %0 = vector.load %arg6[%c0, %c0_0, %c0_1] : memref<4x4x4xbf16, #tpu.memory_space<vmem>>, vector<4x4x4xbf16>
    %c0_2 = arith.constant 0 : index
    %c0_3 = arith.constant 0 : index
    %1 = vector.load %arg5[%c0_2, %c0_3] : memref<128x4xbf16, #tpu.memory_space<vmem>>, vector<128x4xbf16>
    %2 = arith.extf %1 : vector<128x4xbf16> to vector<128x4xf32>
    %c0_4 = arith.constant 0 : index
    %c0_5 = arith.constant 0 : index
    %3 = vector.load %arg7[%c0_4, %c0_5] : memref<1x4xf32, #tpu.memory_space<vmem>>, vector<1x4xf32>
    %4 = vector.broadcast %3 : vector<1x4xf32> to vector<128x4xf32>
    %5 = arith.addf %2, %4 : vector<128x4xf32>
    %c0_6 = arith.constant 0 : index
    %c0_7 = arith.constant 0 : index
    %6 = vector.load %arg1[%c0_6, %c0_7] : memref<128x4xbf16, #tpu.memory_space<vmem>>, vector<128x4xbf16>
    %7 = vector.extract_strided_slice %0 {offsets = [0, 0, 0], sizes = [1, 4, 4], strides = [1, 1, 1]} : vector<4x4x4xbf16> to vector<1x4x4xbf16>
    %8 = vector.shape_cast %7 : vector<1x4x4xbf16> to vector<4x4xbf16>
    %cst = arith.constant dense<0.000000e+00> : vector<128x4xf32>
    %9 = tpu.matmul %6, %8, %cst {dimension_numbers = #tpu.dot_dimension_numbers<[1], [0], [0], [1], [0, 0, 1, 1], [], []>} : vector<128x4xbf16>, vector<4x4xbf16>, vector<128x4xf32> -> vector<128x4xf32>
    %10 = arith.addf %5, %9 : vector<128x4xf32>
    %c0_8 = arith.constant 0 : index
    %c0_9 = arith.constant 0 : index
    %11 = vector.load %arg2[%c0_8, %c0_9] : memref<128x4xbf16, #tpu.memory_space<vmem>>, vector<128x4xbf16>
    %12 = vector.extract_strided_slice %0 {offsets = [1, 0, 0], sizes = [1, 4, 4], strides = [1, 1, 1]} : vector<4x4x4xbf16> to vector<1x4x4xbf16>
    %13 = vector.shape_cast %12 : vector<1x4x4xbf16> to vector<4x4xbf16>
    %cst_10 = arith.constant dense<0.000000e+00> : vector<128x4xf32>
    %14 = tpu.matmul %11, %13, %cst_10 {dimension_numbers = #tpu.dot_dimension_numbers<[1], [0], [0], [1], [0, 0, 1, 1], [], []>} : vector<128x4xbf16>, vector<4x4xbf16>, vector<128x4xf32> -> vector<128x4xf32>
    %15 = arith.addf %10, %14 : vector<128x4xf32>
    %c0_11 = arith.constant 0 : index
    %c0_12 = arith.constant 0 : index
    %16 = vector.load %arg3[%c0_11, %c0_12] : memref<128x4xbf16, #tpu.memory_space<vmem>>, vector<128x4xbf16>
    %17 = vector.extract_strided_slice %0 {offsets = [2, 0, 0], sizes = [1, 4, 4], strides = [1, 1, 1]} : vector<4x4x4xbf16> to vector<1x4x4xbf16>
    %18 = vector.shape_cast %17 : vector<1x4x4xbf16> to vector<4x4xbf16>
    %cst_13 = arith.constant dense<0.000000e+00> : vector<128x4xf32>
    %19 = tpu.matmul %16, %18, %cst_13 {dimension_numbers = #tpu.dot_dimension_numbers<[1], [0], [0], [1], [0, 0, 1, 1], [], []>} : vector<128x4xbf16>, vector<4x4xbf16>, vector<128x4xf32> -> vector<128x4xf32>
    %20 = arith.addf %15, %19 : vector<128x4xf32>
    %c0_14 = arith.constant 0 : index
    %c0_15 = arith.constant 0 : index
    %21 = vector.load %arg4[%c0_14, %c0_15] : memref<128x4xbf16, #tpu.memory_space<vmem>>, vector<128x4xbf16>
    %22 = vector.extract_strided_slice %0 {offsets = [3, 0, 0], sizes = [1, 4, 4], strides = [1, 1, 1]} : vector<4x4x4xbf16> to vector<1x4x4xbf16>
    %23 = vector.shape_cast %22 : vector<1x4x4xbf16> to vector<4x4xbf16>
    %cst_16 = arith.constant dense<0.000000e+00> : vector<128x4xf32>
    %24 = tpu.matmul %21, %23, %cst_16 {dimension_numbers = #tpu.dot_dimension_numbers<[1], [0], [0], [1], [0, 0, 1, 1], [], []>} : vector<128x4xbf16>, vector<4x4xbf16>, vector<128x4xf32> -> vector<128x4xf32>
    %25 = arith.addf %20, %24 : vector<128x4xf32>
    %cst_17 = arith.constant dense<0.000000e+00> : vector<128xf32>
    %26 = vector.multi_reduction <add>, %25, %cst_17 [1] : vector<128x4xf32> to vector<128xf32>
    %27 = vector.shape_cast %26 : vector<128xf32> to vector<128x1xf32>
    %cst_18 = arith.constant 2.500000e-01 : f32
    %28 = vector.broadcast %cst_18 : f32 to vector<128x1xf32>
    %29 = arith.mulf %27, %28 : vector<128x1xf32>
    %30 = vector.broadcast %29 : vector<128x1xf32> to vector<128x4xf32>
    %31 = arith.subf %25, %30 : vector<128x4xf32>
    %32 = arith.mulf %31, %31 : vector<128x4xf32>
    %cst_19 = arith.constant dense<0.000000e+00> : vector<128xf32>
    %33 = vector.multi_reduction <add>, %32, %cst_19 [1] : vector<128x4xf32> to vector<128xf32>
    %34 = vector.shape_cast %33 : vector<128xf32> to vector<128x1xf32>
    %cst_20 = arith.constant 2.500000e-01 : f32
    %35 = vector.broadcast %cst_20 : f32 to vector<128x1xf32>
    %36 = arith.mulf %34, %35 : vector<128x1xf32>
    %cst_21 = arith.constant 9.99999997E-7 : f32
    %37 = vector.broadcast %cst_21 : f32 to vector<128x1xf32>
    %38 = arith.addf %36, %37 : vector<128x1xf32>
    %39 = math.rsqrt %38 : vector<128x1xf32>
    %40 = vector.broadcast %39 : vector<128x1xf32> to vector<128x4xf32>
    %41 = arith.mulf %31, %40 : vector<128x4xf32>
    %c0_22 = arith.constant 0 : index
    %c0_23 = arith.constant 0 : index
    %42 = vector.load %arg8[%c0_22, %c0_23] : memref<1x4xf32, #tpu.memory_space<vmem>>, vector<1x4xf32>
    %43 = vector.broadcast %42 : vector<1x4xf32> to vector<128x4xf32>
    %44 = arith.mulf %43, %41 : vector<128x4xf32>
    %c0_24 = arith.constant 0 : index
    %c0_25 = arith.constant 0 : index
    %45 = vector.load %arg9[%c0_24, %c0_25] : memref<1x4xf32, #tpu.memory_space<vmem>>, vector<1x4xf32>
    %46 = vector.broadcast %45 : vector<1x4xf32> to vector<128x4xf32>
    %47 = arith.addf %44, %46 : vector<128x4xf32>
    %cst_26 = arith.constant 5.000000e-01 : f32
    %48 = vector.broadcast %cst_26 : f32 to vector<128x4xf32>
    %49 = arith.mulf %48, %47 : vector<128x4xf32>
    %cst_27 = arith.constant 0.707106769 : f32
    %50 = vector.broadcast %cst_27 : f32 to vector<128x4xf32>
    %51 = arith.mulf %47, %50 : vector<128x4xf32>
    %52 = math.absf %51 : vector<128x4xf32>
    %cst_28 = arith.constant 0.327591091 : f32
    %53 = vector.broadcast %cst_28 : f32 to vector<128x4xf32>
    %54 = arith.mulf %53, %52 : vector<128x4xf32>
    %cst_29 = arith.constant 1.000000e+00 : f32
    %55 = vector.broadcast %cst_29 : f32 to vector<128x4xf32>
    %56 = arith.addf %55, %54 : vector<128x4xf32>
    %cst_30 = arith.constant 1.000000e+00 : f32
    %57 = vector.broadcast %cst_30 : f32 to vector<128x4xf32>
    %58 = arith.divf %57, %56 : vector<128x4xf32>
    %cst_31 = arith.constant 1.06140542 : f32
    %59 = vector.broadcast %cst_31 : f32 to vector<128x4xf32>
    %60 = arith.mulf %59, %58 : vector<128x4xf32>
    %cst_32 = arith.constant -1.45315206 : f32
    %61 = vector.broadcast %cst_32 : f32 to vector<128x4xf32>
    %62 = arith.addf %60, %61 : vector<128x4xf32>
    %63 = arith.mulf %62, %58 : vector<128x4xf32>
    %cst_33 = arith.constant 1.42141378 : f32
    %64 = vector.broadcast %cst_33 : f32 to vector<128x4xf32>
    %65 = arith.addf %63, %64 : vector<128x4xf32>
    %66 = arith.mulf %65, %58 : vector<128x4xf32>
    %cst_34 = arith.constant -0.284496725 : f32
    %67 = vector.broadcast %cst_34 : f32 to vector<128x4xf32>
    %68 = arith.addf %66, %67 : vector<128x4xf32>
    %69 = arith.mulf %68, %58 : vector<128x4xf32>
    %cst_35 = arith.constant 0.254829586 : f32
    %70 = vector.broadcast %cst_35 : f32 to vector<128x4xf32>
    %71 = arith.addf %69, %70 : vector<128x4xf32>
    %72 = arith.mulf %71, %58 : vector<128x4xf32>
    %cst_36 = arith.constant 0.000000e+00 : f32
    %73 = vector.broadcast %cst_36 : f32 to vector<128x4xf32>
    %74 = arith.subf %73, %52 : vector<128x4xf32>
    %75 = arith.mulf %74, %52 : vector<128x4xf32>
    %76 = math.exp %75 : vector<128x4xf32>
    %77 = arith.mulf %72, %76 : vector<128x4xf32>
    %cst_37 = arith.constant 1.000000e+00 : f32
    %78 = vector.broadcast %cst_37 : f32 to vector<128x4xf32>
    %79 = arith.subf %78, %77 : vector<128x4xf32>
    %cst_38 = arith.constant 0.000000e+00 : f32
    %80 = vector.broadcast %cst_38 : f32 to vector<128x4xf32>
    %81 = arith.cmpf oge, %51, %80 : vector<128x4xf32>
    %cst_39 = arith.constant 0.000000e+00 : f32
    %82 = vector.broadcast %cst_39 : f32 to vector<128x4xf32>
    %83 = arith.subf %82, %79 : vector<128x4xf32>
    %84 = arith.select %81, %79, %83 : vector<128x4xi1>, vector<128x4xf32>
    %cst_40 = arith.constant 1.000000e+00 : f32
    %85 = vector.broadcast %cst_40 : f32 to vector<128x4xf32>
    %86 = arith.addf %85, %84 : vector<128x4xf32>
    %87 = arith.mulf %49, %86 : vector<128x4xf32>
    %c0_41 = arith.constant 0 : index
    %c0_42 = arith.constant 0 : index
    %88 = vector.load %arg10[%c0_41, %c0_42] : memref<128x4xf32, #tpu.memory_space<vmem>>, vector<128x4xf32>
    tpu.vector_store %arg10[%c0_41, %c0_42], %87 {strides = array<i32>} : memref<128x4xf32, #tpu.memory_space<vmem>>, vector<128x4xf32>,
    return
  }
  func.func @transform_0(%arg0: i32) -> (i32, i32) {
    %c0_i32 = arith.constant 0 : i32
    %c0_i32_0 = arith.constant 0 : i32
    return %arg0, %c0_i32 : i32, i32
  }
  func.func @transform_1(%arg0: i32) -> (i32, i32) {
    %c0_i32 = arith.constant 0 : i32
    %c0_i32_0 = arith.constant 0 : i32
    return %arg0, %c0_i32 : i32, i32
  }
  func.func @transform_2(%arg0: i32) -> (i32, i32) {
    %c0_i32 = arith.constant 0 : i32
    %c0_i32_0 = arith.constant 0 : i32
    return %arg0, %c0_i32 : i32, i32
  }
  func.func @transform_3(%arg0: i32) -> (i32, i32) {
    %c0_i32 = arith.constant 0 : i32
    %c0_i32_0 = arith.constant 0 : i32
    return %arg0, %c0_i32 : i32, i32
  }
  func.func @transform_4(%arg0: i32) -> (i32, i32) {
    %c0_i32 = arith.constant 0 : i32
    %c0_i32_0 = arith.constant 0 : i32
    return %arg0, %c0_i32 : i32, i32
  }
  func.func @transform_5(%arg0: i32) -> (i32, i32, i32) {
    %c0_i32 = arith.constant 0 : i32
    %c0_i32_0 = arith.constant 0 : i32
    %c0_i32_1 = arith.constant 0 : i32
    %c0_i32_2 = arith.constant 0 : i32
    return %c0_i32, %c0_i32_0, %c0_i32_1 : i32, i32, i32
  }
  func.func @transform_6(%arg0: i32) -> (i32, i32) {
    %c0_i32 = arith.constant 0 : i32
    %c0_i32_0 = arith.constant 0 : i32
    %c0_i32_1 = arith.constant 0 : i32
    return %c0_i32, %c0_i32_0 : i32, i32
  }
  func.func @transform_7(%arg0: i32) -> (i32, i32) {
    %c0_i32 = arith.constant 0 : i32
    %c0_i32_0 = arith.constant 0 : i32
    %c0_i32_1 = arith.constant 0 : i32
    return %c0_i32, %c0_i32_0 : i32, i32
  }
  func.func @transform_8(%arg0: i32) -> (i32, i32) {
    %c0_i32 = arith.constant 0 : i32
    %c0_i32_0 = arith.constant 0 : i32
    %c0_i32_1 = arith.constant 0 : i32
    return %c0_i32, %c0_i32_0 : i32, i32
  }
  func.func @transform_9(%arg0: i32) -> (i32, i32) {
    %c0_i32 = arith.constant 0 : i32
    %c0_i32_0 = arith.constant 0 : i32
    return %arg0, %c0_i32 : i32, i32
  }
}

</mosaic_0001>

<bundles_post_ra>
// kernel: mcif_forward.4
= control target key start
LH: loop header
LB: loop body
LE: loop exit
PB: predicated region body
PF: predicated region fallthrough
CT: control target
= control target key end

     0   :  { %s1835_s24 = smov 0   ;;  %s2207_s0 = inlined_call_operand.vmem [shape: bf16[64,24,4], index: 0, kind: input, shape index: {}]   ;;  %s2208_s1 = inlined_call_operand.vmem [shape: bf16[64,24,4], index: 1, kind: input, shape index: {}]   ;;  %s2209_s2 = inlined_call_operand.vmem [shape: bf16[9,4,4], index: 2, kind: input, shape index: {}]   ;;  %s2210_s3 = inlined_call_operand.vmem [shape: bf16[9,4,4], index: 3, kind: input, shape index: {}]   ;;  %s2211_s4 = inlined_call_operand.vmem [shape: f32[1,4], index: 4, kind: input, shape index: {}]   ;;  %s2212_s5 = inlined_call_operand.vmem [shape: f32[1,4], index: 5, kind: input, shape index: {}]   ;;  %s2213_s6 = inlined_call_operand.vmem [shape: bf16[64,16,4], index: 6, kind: output, shape index: {0}]   ;;  %s2214_s7 = inlined_call_operand.vmem [shape: bf16[64,16,4], index: 7, kind: output, shape index: {1}]  }
   0x1 LB: > { %s1530_s25 = sadd.s32 4294967295, %s1787_s24   ;;  %p1534_p0 = scmp.ge.s32.totalorder %s1787_s24, 1  ;;  %s1787_s24 = sphi %s1835_s24, %s18_s24  }
   0x2   : > { %p254_p1 = scmp.lt.s32.totalorder %s1787_s24, 5 }
   0x4   : > { %p255_p2 = pnand %p1534_p0, %p254_p1 }
   0x5   : > { %s1535_s26 = sshll.u32 (!%p255_p2), %s1530_s25, 4  ;;  %v1846_v0 = vld [vmem:[%s2209_s2] sm:$0x3] (!%p255_p2)  ;;  %v1851_v1 = vld [vmem:[%s2209_s2 + $0x2] sm:$0x3] (!%p255_p2)  ;;  %s1963_s17 = smov (!%p255_p2), 0  }
   0x6   : > { %258 = sbr.rel (%p255_p2) target bundleno = 315 (0x13b), region = 44  ;;  %p301_p3 = scmp.lt.s32.totalorder (!%p255_p2), %s1535_s26, 63  ;;  %v1856_v2 = vld [vmem:[%s2209_s2 + $0x4] sm:$0x3] (!%p255_p2)  ;;  %v1861_v3 = vld [vmem:[%s2209_s2 + $0x6] sm:$0x3] (!%p255_p2) }
   0x7   : > { %v1866_v4 = vld [vmem:[%s2209_s2 + $0x8] sm:$0x3] (!%p255_p2)  ;;  %v1871_v5 = vld [vmem:[%s2209_s2 + $0xa] sm:$0x3] (!%p255_p2)  ;;  %v1876_v6 = vld [vmem:[%s2209_s2 + $0xc] sm:$0x3] (!%p255_p2) }
   0x8   : > { %v1881_v7 = vld [vmem:[%s2209_s2 + $0xe] sm:$0x3] (!%p255_p2)  ;;  %v1886_v8 = vld [vmem:[%s2209_s2 + $0x10] sm:$0x3] (!%p255_p2)  ;;  %v1891_v9 = vld [vmem:[%s2210_s3] sm:$0x3] (!%p255_p2) }
   0x9   : > { %v1896_v10 = vld [vmem:[%s2210_s3 + $0x2] sm:$0x3] (!%p255_p2)  ;;  %v1901_v11 = vld [vmem:[%s2210_s3 + $0x4] sm:$0x3] (!%p255_p2)  ;;  %v1906_v12 = vld [vmem:[%s2210_s3 + $0x6] sm:$0x3] (!%p255_p2) }
   0xa   : > { %v1911_v13 = vld [vmem:[%s2210_s3 + $0x8] sm:$0x3] (!%p255_p2)  ;;  %v1926_v14 = vld [vmem:[%s2210_s3 + $0xa] sm:$0x3] (!%p255_p2)  ;;  %v1931_v15 = vld [vmem:[%s2210_s3 + $0xc] sm:$0x3] (!%p255_p2) }
   0xb   : > { %v1936_v16 = vld [vmem:[%s2210_s3 + $0xe] sm:$0x3] (!%p255_p2)  ;;  %v1951_v17 = vld [vmem:[%s2210_s3 + $0x10] sm:$0x3] (!%p255_p2)  ;;  %v1956_v18 = vld [vmem:[%s2211_s4] ss:$0 sm:$0xff] (!%p255_p2) }
   0xc   : > { %v1961_v19 = vld [vmem:[%s2212_s5] ss:$0 sm:$0xff] (!%p255_p2) }
   0xd   : > { %s2216_s26 = smov (!%p301_p3, %s1535_s26), 63 }
   0xe   : > { %s1752_s30 = smul.u32 12, %s2216_s26  ;;  %s1598_s8 = sshll.u32 %s2216_s26, 3 }
   0xf   : > { %s1916_s15 = scalar_lea.vmem %s2213_s6, %s1598_s8  ;;  %s1921_s18 = scalar_lea.vmem %s2214_s7, %s1598_s8 }
  0x10   : > { %s1941_s28 = scalar_lea.vmem %s2207_s0, %s1752_s30  ;;  %s1946_s9 = scalar_lea.vmem %s2208_s1, %s1752_s30 }
  0x11 LB: >> { %vm407_vm0 = vcmask 1041408   ;;  %v1793_v20 = vmov 0.0   ;;  %vm1794_vm1 = vmmov 0   ;;  %s1600_s30 = smul.u32 12, %s1791_s17  ;;  %vm403_vm2 = vcmask 31744   ;;  %s1604_s20 = sshll.u32 %s1791_s17, 3  ;;  %s1791_s17 = sphi %s1963_s17, %s370_s17  }
  0x12   : >> { %1650 = vmatprep.subr.bf16.mxu1 %v1793_v20  ;;  %v455_v21 = vsel %vm407_vm0, %v1846_v0, 0  ;;  %1652 = vmatprep.mubr.msk.bf16.mxu1 %vm1794_vm1, %v1793_v20  ;;  %v409_v22 = vsel %vm407_vm0, %v1851_v1, 0  ;;  %v568_v23 = vsel %vm407_vm0, %v1891_v9, 0  ;;  %vm390_vm3 = vsmask.f32 7424  ;;  %s1408_s21 = scalar_lea.vmem %s1921_s18, %s1604_s20  ;;  %s1387_s22 = scalar_lea.vmem %s1916_s15, %s1604_s20 }
  0x13   : >> { %1651 = vmatpush3.bf16.msra.mxu1 %v455_v21  ;;  %1644 = vmatprep.subr.bf16.mxu0 %v1793_v20  ;;  %s373_s26 = scalar_lea.vmem %s1941_s28, %s1600_s30  ;;  %s378_s19 = scalar_lea.vmem %s1946_s9, %s1600_s30  ;;  %v522_v45 = vsel %vm407_vm0, %v1896_v10, 0  ;;  %v671_v47 = vsel %vm407_vm0, %v1901_v11, 0  ;;  %vm611_vm4 = vcmask 1046528   ;;  %v619_v54 = vsel %vm407_vm0, %v1856_v2, 0 }
  0x14   : >> { %1645 = vmatpush3.bf16.msra.mxu0 %v409_v22  ;;  %1662 = vmatprep.subr.bf16.mxu1 %v1793_v20  ;;  %v374_v24 = vld [vmem:[%s373_s26] sm:$0xf]  ;;  %v1985_v25 = vld [vmem:[%s373_s26 + $0x4] sm:$0xf]  ;;  %v1987_v26 = vld [vmem:[%s373_s26 + $0x8] sm:$0xf] }
  0x15   : >> { %1646 = vmatprep.mubr.msk.bf16.mxu0 %vm1794_vm1, %v1793_v20  ;;  %1656 = vmatprep.subr.bf16.mxu0 %v1793_v20  ;;  %v1990_v27 = vcombine.low %v374_v24, %v1985_v25  ;;  %v1994_v28 = vcombine.low %v1987_v26, %v1987_v26  ;;  %v379_v29 = vld [vmem:[%s378_s19] sm:$0xf]  ;;  %v1996_v30 = vld [vmem:[%s378_s19 + $0x4] sm:$0xf]  ;;  %v1998_v31 = vld [vmem:[%s378_s19 + $0x8] sm:$0xf]  ;;  %v1583_v32 = vcombine.low %v1985_v25, %v1987_v26 }
  0x16   : >> { %v2003_v33 = vcombine.low %v379_v29, %v1996_v30  ;;  %v2018_v37 = vcombine.low %v1998_v31, %v1998_v31  ;;  %v788_v60 = vsel %vm407_vm0, %v1906_v12, 0  ;;  %vm716_vm5 = vsmask.f32 6400  ;;  %s370_s17 = sadd.s32 1, %s1791_s17  }
  0x17   : >> { %1653 = vmatmul.mubr.msk.bf16.vlgmr.msra.gmra.mrb[0].mxu1 %vm403_vm2, %v1990_v27  ;;  %v2008_v34 = vshrl.u32 %v1990_v27, 16  ;;  %v2011_v35 = vshll.u32 %v1990_v27, 16  ;;  %v2014_v36 = vshll.u32 %v1994_v28, 16  ;;  %v612_v61 = vrot.slane %v1990_v27, 1  ;;  %p367_p4 = scmp.ge.s32.totalorder %s370_s17, 16  }
  0x18   : >> { %1663 = vmatpush3.bf16.msra.mxu1 %v568_v23  ;;  %1664 = vmatprep.mubr.msk.bf16.mxu1 %vm1794_vm1, %v1793_v20  ;;  %v2023_v38 = vshll.u32 %v2003_v33, 16  ;;  %v2030_v42 = vshrl.u32 %v2003_v33, 16  ;;  %v2034_v44 = vshll.u32 %v2018_v37, 16  ;;  %v664_v50 = vrot.slane %v2003_v33, 1 }
  0x19   : >> { %v396_v39 = vrot.slane %v2011_v35, 1  ;;  %v401_v40 = vrot.slane %v2014_v36, 1  ;;  %1674 = vmatprep.subr.bf16.mxu1 %v1793_v20  ;;  %v665_v51 = vrot.slane %v2018_v37, 1  ;;  %v2051_v52 = vshrl.u32 %v2018_v37, 16 }
  0x1a   : >> { %v511_v43 = vrot.slane %v2023_v38, 1  ;;  %v516_v49 = vrot.slane %v2034_v44, 1  ;;  %v775_v55 = vrot.slane %v2030_v42, 1  ;;  %v776_v57 = vrot.slane %v2023_v38, 2 }
  0x1b   : >> { %v397_v41 = vor.u32 %v396_v39, %v2008_v34  ;;  %v666_v56 = vsel %vm611_vm4, %v664_v50, %v665_v51  ;;  %v780_v58 = vrot.slane %v2051_v52, 1  ;;  %v781_v59 = vrot.slane %v2034_v44, 2 }
  0x1c   : >> { %v512_v48 = vor.u32 %v511_v43, %v2030_v42  ;;  %v613_v62 = vrot.slane %v1994_v28, 1  ;;  %v2072_v63 = vshrl.u32 %v1994_v28, 16  ;;  %v777_v21 = vor.u32 %v776_v57, %v775_v55 }
  0x1d   : >> { %v402_v46 = vsel %vm390_vm3, %v397_v41, %v401_v40  ;;  %v782_v22 = vor.u32 %v781_v59, %v780_v58  ;;  %v717_v24 = vrot.slane %v2008_v34, 1  ;;  %v718_v29 = vrot.slane %v2011_v35, 2 }
  0x1e   : >> { %1647 = vmatmul.mubr.msk.bf16.vlgmr.msra.gmra.mrb[0].mxu0 %vm403_vm2, %v402_v46  ;;  %v517_v53 = vsel %vm390_vm3, %v512_v48, %v516_v49  ;;  %v614_v23 = vsel %vm611_vm4, %v612_v61, %v613_v62  ;;  %v722_v39 = vrot.slane %v2072_v63, 1  ;;  %v723_v40 = vrot.slane %v2014_v36, 2 }
  0x1f   : >> { %1657 = vmatpush3.bf16.msra.mxu0 %v522_v45  ;;  %1665 = vmatmul.mubr.msk.bf16.vlgmr.msra.gmra.mrb[4].mxu1 %vm403_vm2, %v2003_v33  ;;  %v730_v41 = vsel %vm407_vm0, %v1861_v3, 0  ;;  %v783_v43 = vsel %vm716_vm5, %v777_v21, %v782_v22  ;;  %v893_v45 = vsel %vm407_vm0, %v1911_v13, 0  ;;  %v719_v46 = vor.u32 %v718_v29, %v717_v24 }
  0x20   : >> { %1675 = vmatpush3.bf16.msra.mxu1 %v671_v47  ;;  %1658 = vmatprep.mubr.msk.bf16.mxu0 %vm1794_vm1, %v1793_v20  ;;  %v724_v47 = vor.u32 %v723_v40, %v722_v39  ;;  %v886_v48 = vrot.slane %v2003_v33, 2  ;;  %v887_v49 = vrot.slane %v2018_v37, 2  ;;  %vm833_vm6 = vcmask 1045504  }
  0x21   : >> { %1668 = vmatprep.subr.bf16.mxu0 %v1793_v20  ;;  %1676 = vmatprep.mubr.msk.bf16.mxu1 %vm1794_vm1, %v1793_v20  ;;  %v841_v51 = vsel %vm407_vm0, %v1866_v4, 0  ;;  %v996_v55 = vrot.slane %v2023_v38, 3  ;;  %v999_v57 = vrot.slane %v2034_v44, 3  ;;  %v1006_v58 = vsel %vm407_vm0, %v1926_v14, 0 }
  0x22   : >> { %1686 = vmatprep.subr.bf16.mxu1 %v1793_v20  ;;  %v725_v50 = vsel %vm716_vm5, %v719_v46, %v724_v47  ;;  %v834_v59 = vrot.slane %v1990_v27, 2  ;;  %vm938_vm7 = vsmask.f32 5376  ;;  %v939_v22 = vrot.slane %v2008_v34, 2 }
  0x23   : >> { %v942_v24 = vrot.slane %v2072_v63, 2  ;;  %v943_v29 = vrot.slane %v2014_v36, 3  ;;  %v950_v39 = vsel %vm407_vm0, %v1871_v5, 0  ;;  %v1104_v46 = vrot.slane %v2003_v33, 3 }
  0x24   : >> { %v1105_v47 = vrot.slane %v2018_v37, 3  ;;  %vm1051_vm8 = vcmask 1044480   ;;  %v1213_v37 = vrot.slane %v2030_v42, 3  ;;  %vm1156_vm9 = vsmask.f32 4352 }
  0x25   : >> { %vm1388_vm10 = vcmask 27648  }
  0x26   : >> { %1659 = vmatmul.mubr.msk.bf16.vlgmr.msra.gmra.mrb[4].mxu0 %vm403_vm2, %v517_v53  ;;  %v888_v53 = vsel %vm833_vm6, %v886_v48, %v887_v49  ;;  %v1059_v49 = vsel %vm407_vm0, %v1876_v6, 0  ;;  %v1106_v33 = vsel %vm1051_vm8, %v1104_v46, %v1105_v47 }
  0x27   : >> { %1669 = vmatpush3.bf16.msra.mxu0 %v619_v54  ;;  %1677 = vmatmul.mubr.msk.bf16.vlgmr.msra.gmra.mrb[8].mxu1 %vm403_vm2, %v666_v56  ;;  %v995_v54 = vrot.slane %v2030_v42, 2  ;;  %v998_v56 = vrot.slane %v2051_v52, 2 }
  0x28   : >> { %1687 = vmatpush3.bf16.msra.mxu1 %v788_v60  ;;  %1670 = vmatprep.mubr.msk.bf16.mxu0 %vm1794_vm1, %v1793_v20  ;;  %v835_v60 = vrot.slane %v1994_v28, 2 }
  0x29   : >> { %1680 = vmatprep.subr.bf16.mxu0 %v1793_v20  ;;  %1688 = vmatprep.mubr.msk.bf16.mxu1 %vm1794_vm1, %v1793_v20  ;;  %v997_v61 = vor.u32 %v996_v55, %v995_v54  ;;  %v1000_v62 = vor.u32 %v999_v57, %v998_v56  ;;  %v1224_v54 = vsel %vm407_vm0, %v1936_v16, 0  ;;  %v1052_v55 = vrot.slane %v1990_v27, 3 }
  0x2a   : >> { %1698 = vmatprep.subr.bf16.mxu1 %v1793_v20  ;;  %v836_v21 = vsel %vm833_vm6, %v834_v59, %v835_v60  ;;  %v1053_v56 = vrot.slane %v1994_v28, 3  ;;  %v1157_v27 = vrot.slane %v2008_v34, 3  ;;  %v1158_v28 = vrot.slane %v2011_v35, 4 }
  0x2b   : >> { %v1001_v40 = vsel %vm938_vm7, %v997_v61, %v1000_v62  ;;  %v1161_v57 = vrot.slane %v2014_v36, 4  ;;  %v1324_v60 = vsel %vm407_vm0, %v1951_v17, 0  ;;  %v1585_v36 = vcombine.low %v1996_v30, %v1998_v31 }
  0x2c   : >> { %v1159_v34 = vor.u32 %v1158_v28, %v1157_v27 }
  0x2e   : >> { %1671 = vmatmul.mubr.msk.bf16.vlgmr.msra.gmra.mrb[8].mxu0 %vm403_vm2, %v614_v23  ;;  %v940_v23 = vrot.slane %v2011_v35, 3 }
  0x2f   : >> { %1681 = vmatpush3.bf16.msra.mxu0 %v730_v41  ;;  %1689 = vmatmul.mubr.msk.bf16.vlgmr.msra.gmra.mrb[12].mxu1 %vm403_vm2, %v783_v43  ;;  %v1111_v41 = vsel %vm407_vm0, %v1931_v15, 0 }
  0x30   : >> { %1699 = vmatpush3.bf16.msra.mxu1 %v893_v45  ;;  %1682 = vmatprep.mubr.msk.bf16.mxu0 %vm1794_vm1, %v1793_v20  ;;  %v941_v43 = vor.u32 %v940_v23, %v939_v22  ;;  %v944_v45 = vor.u32 %v943_v29, %v942_v24 }
  0x31   : >> { %1692 = vmatprep.subr.bf16.mxu0 %v1793_v20  ;;  %1700 = vmatprep.mubr.msk.bf16.mxu1 %vm1794_vm1, %v1793_v20 }
  0x32   : >> { %1710 = vmatprep.subr.bf16.mxu1 %v1793_v20  ;;  %v945_v48 = vsel %vm938_vm7, %v941_v43, %v944_v45 }
  0x36   : >> { %1683 = vmatmul.mubr.msk.bf16.vlgmr.msra.gmra.mrb[12].mxu0 %vm403_vm2, %v725_v50  ;;  %v1214_v50 = vrot.slane %v2023_v38, 4 }
  0x37   : >> { %1693 = vmatpush3.bf16.msra.mxu0 %v841_v51  ;;  %1701 = vmatmul.mubr.msk.bf16.vlgmr.msra.gmra.mrb[16].mxu1 %vm403_vm2, %v888_v53  ;;  %v1216_v51 = vrot.slane %v2051_v52, 3  ;;  %v1217_v53 = vrot.slane %v2034_v44, 4  ;;  %v1054_v44 = vsel %vm1051_vm8, %v1052_v55, %v1053_v56  ;;  %v1160_v52 = vrot.slane %v2072_v63, 3 }
  0x38   : >> { %1711 = vmatpush3.bf16.msra.mxu1 %v1006_v58  ;;  %1694 = vmatprep.mubr.msk.bf16.mxu0 %vm1794_vm1, %v1793_v20  ;;  %v1215_v38 = vor.u32 %v1214_v50, %v1213_v37  ;;  %v1168_v58 = vsel %vm407_vm0, %v1881_v7, 0  ;;  %v1274_v63 = vsel %vm407_vm0, %v1886_v8, 0 }
  0x39   : >> { %1704 = vmatprep.subr.bf16.mxu0 %v1793_v20  ;;  %1712 = vmatprep.mubr.msk.bf16.mxu1 %vm1794_vm1, %v1793_v20  ;;  %v1218_v42 = vor.u32 %v1217_v53, %v1216_v51  ;;  %v1162_v61 = vor.u32 %v1161_v57, %v1160_v52 }
  0x3a   : >> { %1722 = vmatprep.subr.bf16.mxu1 %v1793_v20 }
  0x3b   : >> { %v1219_v59 = vsel %vm1156_vm9, %v1215_v38, %v1218_v42  ;;  %v1163_v35 = vsel %vm1156_vm9, %v1159_v34, %v1162_v61 }
  0x3e   : >> { %1695 = vmatmul.mubr.msk.bf16.vlgmr.msra.gmra.mrb[16].mxu0 %vm403_vm2, %v836_v21 }
  0x3f   : >> { %1705 = vmatpush3.bf16.msra.mxu0 %v950_v39  ;;  %1713 = vmatmul.mubr.msk.bf16.vlgmr.msra.gmra.mrb[20].mxu1 %vm403_vm2, %v1001_v40 }
  0x40   : >> { %1723 = vmatpush3.bf16.msra.mxu1 %v1111_v41  ;;  %1706 = vmatprep.mubr.msk.bf16.mxu0 %vm1794_vm1, %v1793_v20 }
  0x41   : >> { %1716 = vmatprep.subr.bf16.mxu0 %v1793_v20  ;;  %1724 = vmatprep.mubr.msk.bf16.mxu1 %vm1794_vm1, %v1793_v20 }
  0x42   : >> { %1734 = vmatprep.subr.bf16.mxu1 %v1793_v20 }
  0x46   : >> { %1707 = vmatmul.mubr.msk.bf16.vlgmr.msra.gmra.mrb[20].mxu0 %vm403_vm2, %v945_v48 }
  0x47   : >> { %1717 = vmatpush3.bf16.msra.mxu0 %v1059_v49  ;;  %1725 = vmatmul.mubr.msk.bf16.vlgmr.msra.gmra.mrb[24].mxu1 %vm403_vm2, %v1106_v33 }
  0x48   : >> { %1735 = vmatpush3.bf16.msra.mxu1 %v1224_v54  ;;  %1718 = vmatprep.mubr.msk.bf16.mxu0 %vm1794_vm1, %v1793_v20 }
  0x49   : >> { %1728 = vmatprep.subr.bf16.mxu0 %v1793_v20  ;;  %1736 = vmatprep.mubr.msk.bf16.mxu1 %vm1794_vm1, %v1793_v20 }
  0x4a   : >> { %1746 = vmatprep.subr.bf16.mxu1 %v1793_v20 }
  0x4e   : >> { %1719 = vmatmul.mubr.msk.bf16.vlgmr.msra.gmra.mrb[24].mxu0 %vm403_vm2, %v1054_v44 }
  0x4f   : >> { %1729 = vmatpush3.bf16.msra.mxu0 %v1168_v58  ;;  %1737 = vmatmul.mubr.msk.bf16.vlgmr.msra.gmra.mrb[28].mxu1 %vm403_vm2, %v1219_v59 }
  0x50   : >> { %1747 = vmatpush3.bf16.msra.mxu1 %v1324_v60  ;;  %1730 = vmatprep.mubr.msk.bf16.mxu0 %vm1794_vm1, %v1793_v20 }
  0x51   : >> { %1740 = vmatprep.subr.bf16.mxu0 %v1793_v20  ;;  %1748 = vmatprep.mubr.msk.bf16.mxu1 %vm1794_vm1, %v1793_v20 }
  0x56   : >> { %1731 = vmatmul.mubr.msk.bf16.vlgmr.msra.gmra.mrb[28].mxu0 %vm403_vm2, %v1163_v35 }
  0x57   : >> { %1741 = vmatpush3.bf16.msra.mxu0 %v1274_v63  ;;  %1749 = vmatmul.mubr.msk.bf16.vlgmr.msra.gmra.mrb[32].mxu1 %vm403_vm2, %v1585_v36 }
  0x58   : >> { %1742 = vmatprep.mubr.msk.bf16.mxu0 %vm1794_vm1, %v1793_v20 }
  0x5e   : >> { %1743 = vmatmul.mubr.msk.bf16.vlgmr.msra.gmra.mrb[32].mxu0 %vm403_vm2, %v1583_v32 }
  0xea   : >> { %v491_v62 = vpop.f32.mrb[0].mxu1 }
  0xeb   : >> { %v1654_v21 = vpop.f32.mrb[1].mxu1 }
  0xec   : >> { %v494_v22 = vpop.f32.mrb[2].mxu1 }
  0xed   : >> { %v1655_v30 = vpop.f32.mrb[3].mxu1 }
  0xf1   : >> { %v445_v31 = vpop.f32.mrb[0].mxu0 }
  0xf2   : >> { %v492_v23 = vadd.f32 %v491_v62, %v445_v31  ;;  %v1648_v24 = vpop.f32.mrb[1].mxu0  ;;  %v604_v29 = vpop.f32.mrb[4].mxu1 }
  0xf3   : >> { %v448_v39 = vpop.f32.mrb[2].mxu0  ;;  %v1666_v40 = vpop.f32.mrb[5].mxu1 }
  0xf4   : >> { %v495_v41 = vadd.f32 %v494_v22, %v448_v39  ;;  %v1649_v43 = vpop.f32.mrb[3].mxu0  ;;  %v607_v45 = vpop.f32.mrb[6].mxu1 }
  0xf5   : >> { %v1667_v46 = vpop.f32.mrb[7].mxu1 }
  0xf9   : >> { %v558_v20 = vpop.f32.mrb[4].mxu0 }
  0xfa   : >> { %v605_v47 = vadd.f32 %v604_v29, %v558_v20  ;;  %v1660_v48 = vpop.f32.mrb[5].mxu0  ;;  %v707_v25 = vpop.f32.mrb[8].mxu1 }
  0xfb   : >> { %v561_v26 = vpop.f32.mrb[6].mxu0  ;;  %v1678_v32 = vpop.f32.mrb[9].mxu1 }
  0xfc   : >> { %v608_v49 = vadd.f32 %v607_v45, %v561_v26  ;;  %v714_v33 = vadd.f32 %v707_v25, %v605_v47  ;;  %v1661_v37 = vpop.f32.mrb[7].mxu0  ;;  %v710_v50 = vpop.f32.mrb[10].mxu1 }
  0xfd   : >> { %v1679_v51 = vpop.f32.mrb[11].mxu1 }
  0xfe   : >> { %v715_v53 = vadd.f32 %v710_v50, %v608_v49 }
 0x101   : >> { %v655_v54 = vpop.f32.mrb[8].mxu0 }
 0x102   : >> { %v662_v55 = vadd.f32 %v655_v54, %v492_v23  ;;  %v1672_v56 = vpop.f32.mrb[9].mxu0  ;;  %v824_v38 = vpop.f32.mrb[12].mxu1 }
 0x103   : >> { %v831_v42 = vadd.f32 %v824_v38, %v714_v33  ;;  %v658_v44 = vpop.f32.mrb[10].mxu0  ;;  %v1690_v27 = vpop.f32.mrb[13].mxu1 }
 0x104   : >> { %v663_v28 = vadd.f32 %v658_v44, %v495_v41  ;;  %v1673_v52 = vpop.f32.mrb[11].mxu0  ;;  %v827_v57 = vpop.f32.mrb[14].mxu1 }
 0x105   : >> { %v832_v58 = vadd.f32 %v827_v57, %v715_v53  ;;  %v1691_v59 = vpop.f32.mrb[15].mxu1 }
 0x109   : >> { %v766_v60 = vpop.f32.mrb[12].mxu0 }
 0x10a   : >> { %v773_v34 = vadd.f32 %v766_v60, %v662_v55  ;;  %v1684_v61 = vpop.f32.mrb[13].mxu0  ;;  %v929_v35 = vpop.f32.mrb[16].mxu1 }
 0x10b   : >> { %v936_v36 = vadd.f32 %v929_v35, %v831_v42  ;;  %v769_v63 = vpop.f32.mrb[14].mxu0  ;;  %v1702_v62 = vpop.f32.mrb[17].mxu1 }
 0x10c   : >> { %v774_v21 = vadd.f32 %v769_v63, %v663_v28  ;;  %v1685_v22 = vpop.f32.mrb[15].mxu0  ;;  %v932_v30 = vpop.f32.mrb[18].mxu1 }
 0x10d   : >> { %v937_v31 = vadd.f32 %v932_v30, %v832_v58  ;;  %v1703_v23 = vpop.f32.mrb[19].mxu1 }
 0x111   : >> { %v877_v24 = vpop.f32.mrb[16].mxu0 }
 0x112   : >> { %v884_v29 = vadd.f32 %v877_v24, %v773_v34  ;;  %v1696_v39 = vpop.f32.mrb[17].mxu0  ;;  %v1042_v40 = vpop.f32.mrb[20].mxu1 }
 0x113   : >> { %v1049_v41 = vadd.f32 %v1042_v40, %v936_v36  ;;  %v880_v43 = vpop.f32.mrb[18].mxu0  ;;  %v1714_v45 = vpop.f32.mrb[21].mxu1 }
 0x114   : >> { %v885_v46 = vadd.f32 %v880_v43, %v774_v21  ;;  %v1697_v20 = vpop.f32.mrb[19].mxu0  ;;  %v1045_v47 = vpop.f32.mrb[22].mxu1 }
 0x115   : >> { %v1050_v48 = vadd.f32 %v1045_v47, %v937_v31  ;;  %v1715_v25 = vpop.f32.mrb[23].mxu1 }
 0x119   : >> { %v986_v26 = vpop.f32.mrb[20].mxu0 }
 0x11a   : >> { %v993_v32 = vadd.f32 %v986_v26, %v884_v29  ;;  %v1708_v49 = vpop.f32.mrb[21].mxu0  ;;  %v1147_v33 = vpop.f32.mrb[24].mxu1 }
 0x11b   : >> { %v1154_v37 = vadd.f32 %v1147_v33, %v1049_v41  ;;  %v989_v50 = vpop.f32.mrb[22].mxu0  ;;  %v1726_v51 = vpop.f32.mrb[25].mxu1 }
 0x11c   : >> { %v994_v53 = vadd.f32 %v989_v50, %v885_v46  ;;  %v1709_v54 = vpop.f32.mrb[23].mxu0  ;;  %v1150_v55 = vpop.f32.mrb[26].mxu1 }
 0x11d   : >> { %v1155_v56 = vadd.f32 %v1150_v55, %v1050_v48  ;;  %v1727_v38 = vpop.f32.mrb[27].mxu1 }
 0x121   : >> { %v1095_v42 = vpop.f32.mrb[24].mxu0 }
 0x122   : >> { %v1102_v44 = vadd.f32 %v1095_v42, %v993_v32  ;;  %v1720_v27 = vpop.f32.mrb[25].mxu0  ;;  %v1260_v28 = vpop.f32.mrb[28].mxu1 }
 0x123   : >> { %v1267_v52 = vadd.f32 %v1260_v28, %v1154_v37  ;;  %v1098_v57 = vpop.f32.mrb[26].mxu0  ;;  %v1738_v58 = vpop.f32.mrb[29].mxu1 }
 0x124   : >> { %v1103_v59 = vadd.f32 %v1098_v57, %v994_v53  ;;  %v1721_v60 = vpop.f32.mrb[27].mxu0  ;;  %v1263_v34 = vpop.f32.mrb[30].mxu1 }
 0x125   : >> { %v1268_v61 = vadd.f32 %v1263_v34, %v1155_v56  ;;  %v1739_v35 = vpop.f32.mrb[31].mxu1 }
 0x129   : >> { %v1204_v36 = vpop.f32.mrb[28].mxu0 }
 0x12a   : >> { %v1211_v63 = vadd.f32 %v1204_v36, %v1102_v44  ;;  %v1732_v62 = vpop.f32.mrb[29].mxu0  ;;  %v1360_v21 = vpop.f32.mrb[32].mxu1 }
 0x12b   : >> { %v1367_v22 = vadd.f32 %v1360_v21, %v1267_v52  ;;  %v1207_v30 = vpop.f32.mrb[30].mxu0  ;;  %v1750_v31 = vpop.f32.mrb[33].mxu1 }
 0x12c   : >> { %v1212_v23 = vadd.f32 %v1207_v30, %v1103_v59  ;;  %v1733_v24 = vpop.f32.mrb[31].mxu0  ;;  %v1363_v29 = vpop.f32.mrb[34].mxu1 }
 0x12d   : >> { %v1397_v39 = vadd.f32 %v1961_v19, %v1367_v22  ;;  %v1368_v40 = vadd.f32 %v1363_v29, %v1268_v61  ;;  %v1751_v41 = vpop.f32.mrb[35].mxu1 }
 0x12f   : >> { %v1605_v43 = vpack.c.bf16 %v1397_v39, %v1397_v39  ;;  %v1398_v45 = vadd.f32 %v1961_v19, %v1368_v40 }
 0x131   : >> { %1409 = vst.msk [vmem:[%s1408_s21] sm:$0xf] %vm1388_vm10, %v1605_v43  ;;  %v1606_v46 = vpack.c.bf16 %v1398_v45, %v1398_v45  ;;  %v1310_v20 = vpop.f32.mrb[32].mxu0 }
 0x132   : >> { %v1317_v47 = vadd.f32 %v1310_v20, %v1211_v63  ;;  %v1744_v48 = vpop.f32.mrb[33].mxu0 }
 0x133   : >> { %1410 = vst.msk [vmem:[%s1408_s21 + $0x4] sm:$0xf] %vm1388_vm10, %v1606_v46  ;;  %v1313_v25 = vpop.f32.mrb[34].mxu0 }
 0x134   : >> { %v1375_v26 = vadd.f32 %v1956_v18, %v1317_v47  ;;  %v1318_v32 = vadd.f32 %v1313_v25, %v1212_v23  ;;  %v1745_v49 = vpop.f32.mrb[35].mxu0  ;;  %369 = sbr.rel (!%p367_p4) target bundleno = 17 (0x11), region = 116 }
 0x136   : >> { %v1602_v33 = vpack.c.bf16 %v1375_v26, %v1375_v26  ;;  %v1376_v37 = vadd.f32 %v1956_v18, %v1318_v32 }
 0x138   : >> { %1389 = vst.msk [vmem:[%s1387_s22] sm:$0xf] %vm1388_vm10, %v1602_v33  ;;  %v1603_v50 = vpack.c.bf16 %v1376_v37, %v1376_v37 }
 0x13a   : >> { %1390 = vst.msk [vmem:[%s1387_s22 + $0x4] sm:$0xf] %vm1388_vm10, %v1603_v50 }
 0x13b PF: > { %s18_s24 = sadd.s32 1, %s1787_s24  }
 0x13c   : > { %p15_p5 = scmp.ge.s32.totalorder %s18_s24, 6  }
 0x13e   :  { %17 = sbr.rel (!%p15_p5) target bundleno = 1 (0x1), region = 127 }

// kernel: mcif_forward.3
= control target key start
LH: loop header
LB: loop body
LE: loop exit
PB: predicated region body
PF: predicated region fallthrough
CT: control target
= control target key end

     0   :  { %s1835_s24 = smov 0   ;;  %s2207_s0 = inlined_call_operand.vmem [shape: bf16[32,24,4], index: 0, kind: input, shape index: {}]   ;;  %s2208_s1 = inlined_call_operand.vmem [shape: bf16[32,24,4], index: 1, kind: input, shape index: {}]   ;;  %s2209_s2 = inlined_call_operand.vmem [shape: bf16[9,4,4], index: 2, kind: input, shape index: {}]   ;;  %s2210_s3 = inlined_call_operand.vmem [shape: bf16[9,4,4], index: 3, kind: input, shape index: {}]   ;;  %s2211_s4 = inlined_call_operand.vmem [shape: f32[1,4], index: 4, kind: input, shape index: {}]   ;;  %s2212_s5 = inlined_call_operand.vmem [shape: f32[1,4], index: 5, kind: input, shape index: {}]   ;;  %s2213_s6 = inlined_call_operand.vmem [shape: bf16[32,16,4], index: 6, kind: output, shape index: {0}]   ;;  %s2214_s7 = inlined_call_operand.vmem [shape: bf16[32,16,4], index: 7, kind: output, shape index: {1}]  }
   0x1 LB: > { %s1530_s25 = sadd.s32 4294967295, %s1787_s24   ;;  %p1534_p0 = scmp.ge.s32.totalorder %s1787_s24, 1  ;;  %s1787_s24 = sphi %s1835_s24, %s18_s24  }
   0x2   : > { %p254_p1 = scmp.lt.s32.totalorder %s1787_s24, 5 }
   0x4   : > { %p255_p2 = pnand %p1534_p0, %p254_p1 }
   0x5   : > { %s1535_s26 = sshll.u32 (!%p255_p2), %s1530_s25, 3  ;;  %v1846_v0 = vld [vmem:[%s2209_s2] sm:$0x3] (!%p255_p2)  ;;  %v1851_v1 = vld [vmem:[%s2209_s2 + $0x2] sm:$0x3] (!%p255_p2)  ;;  %s1963_s17 = smov (!%p255_p2), 0  }
   0x6   : > { %258 = sbr.rel (%p255_p2) target bundleno = 315 (0x13b), region = 44  ;;  %p301_p3 = scmp.lt.s32.totalorder (!%p255_p2), %s1535_s26, 31  ;;  %v1856_v2 = vld [vmem:[%s2209_s2 + $0x4] sm:$0x3] (!%p255_p2)  ;;  %v1861_v3 = vld [vmem:[%s2209_s2 + $0x6] sm:$0x3] (!%p255_p2) }
   0x7   : > { %v1866_v4 = vld [vmem:[%s2209_s2 + $0x8] sm:$0x3] (!%p255_p2)  ;;  %v1871_v5 = vld [vmem:[%s2209_s2 + $0xa] sm:$0x3] (!%p255_p2)  ;;  %v1876_v6 = vld [vmem:[%s2209_s2 + $0xc] sm:$0x3] (!%p255_p2) }
   0x8   : > { %v1881_v7 = vld [vmem:[%s2209_s2 + $0xe] sm:$0x3] (!%p255_p2)  ;;  %v1886_v8 = vld [vmem:[%s2209_s2 + $0x10] sm:$0x3] (!%p255_p2)  ;;  %v1891_v9 = vld [vmem:[%s2210_s3] sm:$0x3] (!%p255_p2) }
   0x9   : > { %v1896_v10 = vld [vmem:[%s2210_s3 + $0x2] sm:$0x3] (!%p255_p2)  ;;  %v1901_v11 = vld [vmem:[%s2210_s3 + $0x4] sm:$0x3] (!%p255_p2)  ;;  %v1906_v12 = vld [vmem:[%s2210_s3 + $0x6] sm:$0x3] (!%p255_p2) }
   0xa   : > { %v1911_v13 = vld [vmem:[%s2210_s3 + $0x8] sm:$0x3] (!%p255_p2)  ;;  %v1926_v14 = vld [vmem:[%s2210_s3 + $0xa] sm:$0x3] (!%p255_p2)  ;;  %v1931_v15 = vld [vmem:[%s2210_s3 + $0xc] sm:$0x3] (!%p255_p2) }
   0xb   : > { %v1936_v16 = vld [vmem:[%s2210_s3 + $0xe] sm:$0x3] (!%p255_p2)  ;;  %v1951_v17 = vld [vmem:[%s2210_s3 + $0x10] sm:$0x3] (!%p255_p2)  ;;  %v1956_v18 = vld [vmem:[%s2211_s4] ss:$0 sm:$0xff] (!%p255_p2) }
   0xc   : > { %v1961_v19 = vld [vmem:[%s2212_s5] ss:$0 sm:$0xff] (!%p255_p2) }
   0xd   : > { %s2216_s26 = smov (!%p301_p3, %s1535_s26), 31 }
   0xe   : > { %s1752_s30 = smul.u32 12, %s2216_s26  ;;  %s1598_s8 = sshll.u32 %s2216_s26, 3 }
   0xf   : > { %s1916_s15 = scalar_lea.vmem %s2213_s6, %s1598_s8  ;;  %s1921_s18 = scalar_lea.vmem %s2214_s7, %s1598_s8 }
  0x10   : > { %s1941_s28 = scalar_lea.vmem %s2207_s0, %s1752_s30  ;;  %s1946_s9 = scalar_lea.vmem %s2208_s1, %s1752_s30 }
  0x11 LB: >> { %vm407_vm0 = vcmask 1041408   ;;  %v1793_v20 = vmov 0.0   ;;  %vm1794_vm1 = vmmov 0   ;;  %s1600_s30 = smul.u32 12, %s1791_s17  ;;  %vm403_vm2 = vcmask 31744   ;;  %s1604_s20 = sshll.u32 %s1791_s17, 3  ;;  %s1791_s17 = sphi %s1963_s17, %s370_s17  }
  0x12   : >> { %1650 = vmatprep.subr.bf16.mxu1 %v1793_v20  ;;  %v455_v21 = vsel %vm407_vm0, %v1846_v0, 0  ;;  %1652 = vmatprep.mubr.msk.bf16.mxu1 %vm1794_vm1, %v1793_v20  ;;  %v409_v22 = vsel %vm407_vm0, %v1851_v1, 0  ;;  %v568_v23 = vsel %vm407_vm0, %v1891_v9, 0  ;;  %vm390_vm3 = vsmask.f32 7424  ;;  %s1408_s21 = scalar_lea.vmem %s1921_s18, %s1604_s20  ;;  %s1387_s22 = scalar_lea.vmem %s1916_s15, %s1604_s20 }
  0x13   : >> { %1651 = vmatpush3.bf16.msra.mxu1 %v455_v21  ;;  %1644 = vmatprep.subr.bf16.mxu0 %v1793_v20  ;;  %s373_s26 = scalar_lea.vmem %s1941_s28, %s1600_s30  ;;  %s378_s19 = scalar_lea.vmem %s1946_s9, %s1600_s30  ;;  %v522_v45 = vsel %vm407_vm0, %v1896_v10, 0  ;;  %v671_v47 = vsel %vm407_vm0, %v1901_v11, 0  ;;  %vm611_vm4 = vcmask 1046528   ;;  %v619_v54 = vsel %vm407_vm0, %v1856_v2, 0 }
  0x14   : >> { %1645 = vmatpush3.bf16.msra.mxu0 %v409_v22  ;;  %1662 = vmatprep.subr.bf16.mxu1 %v1793_v20  ;;  %v374_v24 = vld [vmem:[%s373_s26] sm:$0xf]  ;;  %v1985_v25 = vld [vmem:[%s373_s26 + $0x4] sm:$0xf]  ;;  %v1987_v26 = vld [vmem:[%s373_s26 + $0x8] sm:$0xf] }
  0x15   : >> { %1646 = vmatprep.mubr.msk.bf16.mxu0 %vm1794_vm1, %v1793_v20  ;;  %1656 = vmatprep.subr.bf16.mxu0 %v1793_v20  ;;  %v1990_v27 = vcombine.low %v374_v24, %v1985_v25  ;;  %v1994_v28 = vcombine.low %v1987_v26, %v1987_v26  ;;  %v379_v29 = vld [vmem:[%s378_s19] sm:$0xf]  ;;  %v1996_v30 = vld [vmem:[%s378_s19 + $0x4] sm:$0xf]  ;;  %v1998_v31 = vld [vmem:[%s378_s19 + $0x8] sm:$0xf]  ;;  %v1583_v32 = vcombine.low %v1985_v25, %v1987_v26 }
  0x16   : >> { %v2003_v33 = vcombine.low %v379_v29, %v1996_v30  ;;  %v2018_v37 = vcombine.low %v1998_v31, %v1998_v31  ;;  %v788_v60 = vsel %vm407_vm0, %v1906_v12, 0  ;;  %vm716_vm5 = vsmask.f32 6400  ;;  %s370_s17 = sadd.s32 1, %s1791_s17  }
  0x17   : >> { %1653 = vmatmul.mubr.msk.bf16.vlgmr.msra.gmra.mrb[0].mxu1 %vm403_vm2, %v1990_v27  ;;  %v2008_v34 = vshrl.u32 %v1990_v27, 16  ;;  %v2011_v35 = vshll.u32 %v1990_v27, 16  ;;  %v2014_v36 = vshll.u32 %v1994_v28, 16  ;;  %v612_v61 = vrot.slane %v1990_v27, 1  ;;  %p367_p4 = scmp.ge.s32.totalorder %s370_s17, 8  }
  0x18   : >> { %1663 = vmatpush3.bf16.msra.mxu1 %v568_v23  ;;  %1664 = vmatprep.mubr.msk.bf16.mxu1 %vm1794_vm1, %v1793_v20  ;;  %v2023_v38 = vshll.u32 %v2003_v33, 16  ;;  %v2030_v42 = vshrl.u32 %v2003_v33, 16  ;;  %v2034_v44 = vshll.u32 %v2018_v37, 16  ;;  %v664_v50 = vrot.slane %v2003_v33, 1 }
  0x19   : >> { %v396_v39 = vrot.slane %v2011_v35, 1  ;;  %v401_v40 = vrot.slane %v2014_v36, 1  ;;  %1674 = vmatprep.subr.bf16.mxu1 %v1793_v20  ;;  %v665_v51 = vrot.slane %v2018_v37, 1  ;;  %v2051_v52 = vshrl.u32 %v2018_v37, 16 }
  0x1a   : >> { %v511_v43 = vrot.slane %v2023_v38, 1  ;;  %v516_v49 = vrot.slane %v2034_v44, 1  ;;  %v775_v55 = vrot.slane %v2030_v42, 1  ;;  %v776_v57 = vrot.slane %v2023_v38, 2 }
  0x1b   : >> { %v397_v41 = vor.u32 %v396_v39, %v2008_v34  ;;  %v666_v56 = vsel %vm611_vm4, %v664_v50, %v665_v51  ;;  %v780_v58 = vrot.slane %v2051_v52, 1  ;;  %v781_v59 = vrot.slane %v2034_v44, 2 }
  0x1c   : >> { %v512_v48 = vor.u32 %v511_v43, %v2030_v42  ;;  %v613_v62 = vrot.slane %v1994_v28, 1  ;;  %v2072_v63 = vshrl.u32 %v1994_v28, 16  ;;  %v777_v21 = vor.u32 %v776_v57, %v775_v55 }
  0x1d   : >> { %v402_v46 = vsel %vm390_vm3, %v397_v41, %v401_v40  ;;  %v782_v22 = vor.u32 %v781_v59, %v780_v58  ;;  %v717_v24 = vrot.slane %v2008_v34, 1  ;;  %v718_v29 = vrot.slane %v2011_v35, 2 }
  0x1e   : >> { %1647 = vmatmul.mubr.msk.bf16.vlgmr.msra.gmra.mrb[0].mxu0 %vm403_vm2, %v402_v46  ;;  %v517_v53 = vsel %vm390_vm3, %v512_v48, %v516_v49  ;;  %v614_v23 = vsel %vm611_vm4, %v612_v61, %v613_v62  ;;  %v722_v39 = vrot.slane %v2072_v63, 1  ;;  %v723_v40 = vrot.slane %v2014_v36, 2 }
  0x1f   : >> { %1657 = vmatpush3.bf16.msra.mxu0 %v522_v45  ;;  %1665 = vmatmul.mubr.msk.bf16.vlgmr.msra.gmra.mrb[4].mxu1 %vm403_vm2, %v2003_v33  ;;  %v730_v41 = vsel %vm407_vm0, %v1861_v3, 0  ;;  %v783_v43 = vsel %vm716_vm5, %v777_v21, %v782_v22  ;;  %v893_v45 = vsel %vm407_vm0, %v1911_v13, 0  ;;  %v719_v46 = vor.u32 %v718_v29, %v717_v24 }
  0x20   : >> { %1675 = vmatpush3.bf16.msra.mxu1 %v671_v47  ;;  %1658 = vmatprep.mubr.msk.bf16.mxu0 %vm1794_vm1, %v1793_v20  ;;  %v724_v47 = vor.u32 %v723_v40, %v722_v39  ;;  %v886_v48 = vrot.slane %v2003_v33, 2  ;;  %v887_v49 = vrot.slane %v2018_v37, 2  ;;  %vm833_vm6 = vcmask 1045504  }
  0x21   : >> { %1668 = vmatprep.subr.bf16.mxu0 %v1793_v20  ;;  %1676 = vmatprep.mubr.msk.bf16.mxu1 %vm1794_vm1, %v1793_v20  ;;  %v841_v51 = vsel %vm407_vm0, %v1866_v4, 0  ;;  %v996_v55 = vrot.slane %v2023_v38, 3  ;;  %v999_v57 = vrot.slane %v2034_v44, 3  ;;  %v1006_v58 = vsel %vm407_vm0, %v1926_v14, 0 }
  0x22   : >> { %1686 = vmatprep.subr.bf16.mxu1 %v1793_v20  ;;  %v725_v50 = vsel %vm716_vm5, %v719_v46, %v724_v47  ;;  %v834_v59 = vrot.slane %v1990_v27, 2  ;;  %vm938_vm7 = vsmask.f32 5376  ;;  %v939_v22 = vrot.slane %v2008_v34, 2 }
  0x23   : >> { %v942_v24 = vrot.slane %v2072_v63, 2  ;;  %v943_v29 = vrot.slane %v2014_v36, 3  ;;  %v950_v39 = vsel %vm407_vm0, %v1871_v5, 0  ;;  %v1104_v46 = vrot.slane %v2003_v33, 3 }
  0x24   : >> { %v1105_v47 = vrot.slane %v2018_v37, 3  ;;  %vm1051_vm8 = vcmask 1044480   ;;  %v1213_v37 = vrot.slane %v2030_v42, 3  ;;  %vm1156_vm9 = vsmask.f32 4352 }
  0x25   : >> { %vm1388_vm10 = vcmask 27648  }
  0x26   : >> { %1659 = vmatmul.mubr.msk.bf16.vlgmr.msra.gmra.mrb[4].mxu0 %vm403_vm2, %v517_v53  ;;  %v888_v53 = vsel %vm833_vm6, %v886_v48, %v887_v49  ;;  %v1059_v49 = vsel %vm407_vm0, %v1876_v6, 0  ;;  %v1106_v33 = vsel %vm1051_vm8, %v1104_v46, %v1105_v47 }
  0x27   : >> { %1669 = vmatpush3.bf16.msra.mxu0 %v619_v54  ;;  %1677 = vmatmul.mubr.msk.bf16.vlgmr.msra.gmra.mrb[8].mxu1 %vm403_vm2, %v666_v56  ;;  %v995_v54 = vrot.slane %v2030_v42, 2  ;;  %v998_v56 = vrot.slane %v2051_v52, 2 }
  0x28   : >> { %1687 = vmatpush3.bf16.msra.mxu1 %v788_v60  ;;  %1670 = vmatprep.mubr.msk.bf16.mxu0 %vm1794_vm1, %v1793_v20  ;;  %v835_v60 = vrot.slane %v1994_v28, 2 }
  0x29   : >> { %1680 = vmatprep.subr.bf16.mxu0 %v1793_v20  ;;  %1688 = vmatprep.mubr.msk.bf16.mxu1 %vm1794_vm1, %v1793_v20  ;;  %v997_v61 = vor.u32 %v996_v55, %v995_v54  ;;  %v1000_v62 = vor.u32 %v999_v57, %v998_v56  ;;  %v1224_v54 = vsel %vm407_vm0, %v1936_v16, 0  ;;  %v1052_v55 = vrot.slane %v1990_v27, 3 }
  0x2a   : >> { %1698 = vmatprep.subr.bf16.mxu1 %v1793_v20  ;;  %v836_v21 = vsel %vm833_vm6, %v834_v59, %v835_v60  ;;  %v1053_v56 = vrot.slane %v1994_v28, 3  ;;  %v1157_v27 = vrot.slane %v2008_v34, 3  ;;  %v1158_v28 = vrot.slane %v2011_v35, 4 }
  0x2b   : >> { %v1001_v40 = vsel %vm938_vm7, %v997_v61, %v1000_v62  ;;  %v1161_v57 = vrot.slane %v2014_v36, 4  ;;  %v1324_v60 = vsel %vm407_vm0, %v1951_v17, 0  ;;  %v1585_v36 = vcombine.low %v1996_v30, %v1998_v31 }
  0x2c   : >> { %v1159_v34 = vor.u32 %v1158_v28, %v1157_v27 }
  0x2e   : >> { %1671 = vmatmul.mubr.msk.bf16.vlgmr.msra.gmra.mrb[8].mxu0 %vm403_vm2, %v614_v23  ;;  %v940_v23 = vrot.slane %v2011_v35, 3 }
  0x2f   : >> { %1681 = vmatpush3.bf16.msra.mxu0 %v730_v41  ;;  %1689 = vmatmul.mubr.msk.bf16.vlgmr.msra.gmra.mrb[12].mxu1 %vm403_vm2, %v783_v43  ;;  %v1111_v41 = vsel %vm407_vm0, %v1931_v15, 0 }
  0x30   : >> { %1699 = vmatpush3.bf16.msra.mxu1 %v893_v45  ;;  %1682 = vmatprep.mubr.msk.bf16.mxu0 %vm1794_vm1, %v1793_v20  ;;  %v941_v43 = vor.u32 %v940_v23, %v939_v22  ;;  %v944_v45 = vor.u32 %v943_v29, %v942_v24 }
  0x31   : >> { %1692 = vmatprep.subr.bf16.mxu0 %v1793_v20  ;;  %1700 = vmatprep.mubr.msk.bf16.mxu1 %vm1794_vm1, %v1793_v20 }
  0x32   : >> { %1710 = vmatprep.subr.bf16.mxu1 %v1793_v20  ;;  %v945_v48 = vsel %vm938_vm7, %v941_v43, %v944_v45 }
  0x36   : >> { %1683 = vmatmul.mubr.msk.bf16.vlgmr.msra.gmra.mrb[12].mxu0 %vm403_vm2, %v725_v50  ;;  %v1214_v50 = vrot.slane %v2023_v38, 4 }
  0x37   : >> { %1693 = vmatpush3.bf16.msra.mxu0 %v841_v51  ;;  %1701 = vmatmul.mubr.msk.bf16.vlgmr.msra.gmra.mrb[16].mxu1 %vm403_vm2, %v888_v53  ;;  %v1216_v51 = vrot.slane %v2051_v52, 3  ;;  %v1217_v53 = vrot.slane %v2034_v44, 4  ;;  %v1054_v44 = vsel %vm1051_vm8, %v1052_v55, %v1053_v56  ;;  %v1160_v52 = vrot.slane %v2072_v63, 3 }
  0x38   : >> { %1711 = vmatpush3.bf16.msra.mxu1 %v1006_v58  ;;  %1694 = vmatprep.mubr.msk.bf16.mxu0 %vm1794_vm1, %v1793_v20  ;;  %v1215_v38 = vor.u32 %v1214_v50, %v1213_v37  ;;  %v1168_v58 = vsel %vm407_vm0, %v1881_v7, 0  ;;  %v1274_v63 = vsel %vm407_vm0, %v1886_v8, 0 }
  0x39   : >> { %1704 = vmatprep.subr.bf16.mxu0 %v1793_v20  ;;  %1712 = vmatprep.mubr.msk.bf16.mxu1 %vm1794_vm1, %v1793_v20  ;;  %v1218_v42 = vor.u32 %v1217_v53, %v1216_v51  ;;  %v1162_v61 = vor.u32 %v1161_v57, %v1160_v52 }
  0x3a   : >> { %1722 = vmatprep.subr.bf16.mxu1 %v1793_v20 }
  0x3b   : >> { %v1219_v59 = vsel %vm1156_vm9, %v1215_v38, %v1218_v42  ;;  %v1163_v35 = vsel %vm1156_vm9, %v1159_v34, %v1162_v61 }
  0x3e   : >> { %1695 = vmatmul.mubr.msk.bf16.vlgmr.msra.gmra.mrb[16].mxu0 %vm403_vm2, %v836_v21 }
  0x3f   : >> { %1705 = vmatpush3.bf16.msra.mxu0 %v950_v39  ;;  %1713 = vmatmul.mubr.msk.bf16.vlgmr.msra.gmra.mrb[20].mxu1 %vm403_vm2, %v1001_v40 }
  0x40   : >> { %1723 = vmatpush3.bf16.msra.mxu1 %v1111_v41  ;;  %1706 = vmatprep.mubr.msk.bf16.mxu0 %vm1794_vm1, %v1793_v20 }
  0x41   : >> { %1716 = vmatprep.subr.bf16.mxu0 %v1793_v20  ;;  %1724 = vmatprep.mubr.msk.bf16.mxu1 %vm1794_vm1, %v1793_v20 }
  0x42   : >> { %1734 = vmatprep.subr.bf16.mxu1 %v1793_v20 }
  0x46   : >> { %1707 = vmatmul.mubr.msk.bf16.vlgmr.msra.gmra.mrb[20].mxu0 %vm403_vm2, %v945_v48 }
  0x47   : >> { %1717 = vmatpush3.bf16.msra.mxu0 %v1059_v49  ;;  %1725 = vmatmul.mubr.msk.bf16.vlgmr.msra.gmra.mrb[24].mxu1 %vm403_vm2, %v1106_v33 }
  0x48   : >> { %1735 = vmatpush3.bf16.msra.mxu1 %v1224_v54  ;;  %1718 = vmatprep.mubr.msk.bf16.mxu0 %vm1794_vm1, %v1793_v20 }
  0x49   : >> { %1728 = vmatprep.subr.bf16.mxu0 %v1793_v20  ;;  %1736 = vmatprep.mubr.msk.bf16.mxu1 %vm1794_vm1, %v1793_v20 }
  0x4a   : >> { %1746 = vmatprep.subr.bf16.mxu1 %v1793_v20 }
  0x4e   : >> { %1719 = vmatmul.mubr.msk.bf16.vlgmr.msra.gmra.mrb[24].mxu0 %vm403_vm2, %v1054_v44 }
  0x4f   : >> { %1729 = vmatpush3.bf16.msra.mxu0 %v1168_v58  ;;  %1737 = vmatmul.mubr.msk.bf16.vlgmr.msra.gmra.mrb[28].mxu1 %vm403_vm2, %v1219_v59 }
  0x50   : >> { %1747 = vmatpush3.bf16.msra.mxu1 %v1324_v60  ;;  %1730 = vmatprep.mubr.msk.bf16.mxu0 %vm1794_vm1, %v1793_v20 }
  0x51   : >> { %1740 = vmatprep.subr.bf16.mxu0 %v1793_v20  ;;  %1748 = vmatprep.mubr.msk.bf16.mxu1 %vm1794_vm1, %v1793_v20 }
  0x56   : >> { %1731 = vmatmul.mubr.msk.bf16.vlgmr.msra.gmra.mrb[28].mxu0 %vm403_vm2, %v1163_v35 }
  0x57   : >> { %1741 = vmatpush3.bf16.msra.mxu0 %v1274_v63  ;;  %1749 = vmatmul.mubr.msk.bf16.vlgmr.msra.gmra.mrb[32].mxu1 %vm403_vm2, %v1585_v36 }
  0x58   : >> { %1742 = vmatprep.mubr.msk.bf16.mxu0 %vm1794_vm1, %v1793_v20 }
  0x5e   : >> { %1743 = vmatmul.mubr.msk.bf16.vlgmr.msra.gmra.mrb[32].mxu0 %vm403_vm2, %v1583_v32 }
  0xea   : >> { %v491_v62 = vpop.f32.mrb[0].mxu1 }
  0xeb   : >> { %v1654_v21 = vpop.f32.mrb[1].mxu1 }
  0xec   : >> { %v494_v22 = vpop.f32.mrb[2].mxu1 }
  0xed   : >> { %v1655_v30 = vpop.f32.mrb[3].mxu1 }
  0xf1   : >> { %v445_v31 = vpop.f32.mrb[0].mxu0 }
  0xf2   : >> { %v492_v23 = vadd.f32 %v491_v62, %v445_v31  ;;  %v1648_v24 = vpop.f32.mrb[1].mxu0  ;;  %v604_v29 = vpop.f32.mrb[4].mxu1 }
  0xf3   : >> { %v448_v39 = vpop.f32.mrb[2].mxu0  ;;  %v1666_v40 = vpop.f32.mrb[5].mxu1 }
  0xf4   : >> { %v495_v41 = vadd.f32 %v494_v22, %v448_v39  ;;  %v1649_v43 = vpop.f32.mrb[3].mxu0  ;;  %v607_v45 = vpop.f32.mrb[6].mxu1 }
  0xf5   : >> { %v1667_v46 = vpop.f32.mrb[7].mxu1 }
  0xf9   : >> { %v558_v20 = vpop.f32.mrb[4].mxu0 }
  0xfa   : >> { %v605_v47 = vadd.f32 %v604_v29, %v558_v20  ;;  %v1660_v48 = vpop.f32.mrb[5].mxu0  ;;  %v707_v25 = vpop.f32.mrb[8].mxu1 }
  0xfb   : >> { %v561_v26 = vpop.f32.mrb[6].mxu0  ;;  %v1678_v32 = vpop.f32.mrb[9].mxu1 }
  0xfc   : >> { %v608_v49 = vadd.f32 %v607_v45, %v561_v26  ;;  %v714_v33 = vadd.f32 %v707_v25, %v605_v47  ;;  %v1661_v37 = vpop.f32.mrb[7].mxu0  ;;  %v710_v50 = vpop.f32.mrb[10].mxu1 }
  0xfd   : >> { %v1679_v51 = vpop.f32.mrb[11].mxu1 }
  0xfe   : >> { %v715_v53 = vadd.f32 %v710_v50, %v608_v49 }
 0x101   : >> { %v655_v54 = vpop.f32.mrb[8].mxu0 }
 0x102   : >> { %v662_v55 = vadd.f32 %v655_v54, %v492_v23  ;;  %v1672_v56 = vpop.f32.mrb[9].mxu0  ;;  %v824_v38 = vpop.f32.mrb[12].mxu1 }
 0x103   : >> { %v831_v42 = vadd.f32 %v824_v38, %v714_v33  ;;  %v658_v44 = vpop.f32.mrb[10].mxu0  ;;  %v1690_v27 = vpop.f32.mrb[13].mxu1 }
 0x104   : >> { %v663_v28 = vadd.f32 %v658_v44, %v495_v41  ;;  %v1673_v52 = vpop.f32.mrb[11].mxu0  ;;  %v827_v57 = vpop.f32.mrb[14].mxu1 }
 0x105   : >> { %v832_v58 = vadd.f32 %v827_v57, %v715_v53  ;;  %v1691_v59 = vpop.f32.mrb[15].mxu1 }
 0x109   : >> { %v766_v60 = vpop.f32.mrb[12].mxu0 }
 0x10a   : >> { %v773_v34 = vadd.f32 %v766_v60, %v662_v55  ;;  %v1684_v61 = vpop.f32.mrb[13].mxu0  ;;  %v929_v35 = vpop.f32.mrb[16].mxu1 }
 0x10b   : >> { %v936_v36 = vadd.f32 %v929_v35, %v831_v42  ;;  %v769_v63 = vpop.f32.mrb[14].mxu0  ;;  %v1702_v62 = vpop.f32.mrb[17].mxu1 }
 0x10c   : >> { %v774_v21 = vadd.f32 %v769_v63, %v663_v28  ;;  %v1685_v22 = vpop.f32.mrb[15].mxu0  ;;  %v932_v30 = vpop.f32.mrb[18].mxu1 }
 0x10d   : >> { %v937_v31 = vadd.f32 %v932_v30, %v832_v58  ;;  %v1703_v23 = vpop.f32.mrb[19].mxu1 }
 0x111   : >> { %v877_v24 = vpop.f32.mrb[16].mxu0 }
 0x112   : >> { %v884_v29 = vadd.f32 %v877_v24, %v773_v34  ;;  %v1696_v39 = vpop.f32.mrb[17].mxu0  ;;  %v1042_v40 = vpop.f32.mrb[20].mxu1 }
 0x113   : >> { %v1049_v41 = vadd.f32 %v1042_v40, %v936_v36  ;;  %v880_v43 = vpop.f32.mrb[18].mxu0  ;;  %v1714_v45 = vpop.f32.mrb[21].mxu1 }
 0x114   : >> { %v885_v46 = vadd.f32 %v880_v43, %v774_v21  ;;  %v1697_v20 = vpop.f32.mrb[19].mxu0  ;;  %v1045_v47 = vpop.f32.mrb[22].mxu1 }
 0x115   : >> { %v1050_v48 = vadd.f32 %v1045_v47, %v937_v31  ;;  %v1715_v25 = vpop.f32.mrb[23].mxu1 }
 0x119   : >> { %v986_v26 = vpop.f32.mrb[20].mxu0 }
 0x11a   : >> { %v993_v32 = vadd.f32 %v986_v26, %v884_v29  ;;  %v1708_v49 = vpop.f32.mrb[21].mxu0  ;;  %v1147_v33 = vpop.f32.mrb[24].mxu1 }
 0x11b   : >> { %v1154_v37 = vadd.f32 %v1147_v33, %v1049_v41  ;;  %v989_v50 = vpop.f32.mrb[22].mxu0  ;;  %v1726_v51 = vpop.f32.mrb[25].mxu1 }
 0x11c   : >> { %v994_v53 = vadd.f32 %v989_v50, %v885_v46  ;;  %v1709_v54 = vpop.f32.mrb[23].mxu0  ;;  %v1150_v55 = vpop.f32.mrb[26].mxu1 }
 0x11d   : >> { %v1155_v56 = vadd.f32 %v1150_v55, %v1050_v48  ;;  %v1727_v38 = vpop.f32.mrb[27].mxu1 }
 0x121   : >> { %v1095_v42 = vpop.f32.mrb[24].mxu0 }
 0x122   : >> { %v1102_v44 = vadd.f32 %v1095_v42, %v993_v32  ;;  %v1720_v27 = vpop.f32.mrb[25].mxu0  ;;  %v1260_v28 = vpop.f32.mrb[28].mxu1 }
 0x123   : >> { %v1267_v52 = vadd.f32 %v1260_v28, %v1154_v37  ;;  %v1098_v57 = vpop.f32.mrb[26].mxu0  ;;  %v1738_v58 = vpop.f32.mrb[29].mxu1 }
 0x124   : >> { %v1103_v59 = vadd.f32 %v1098_v57, %v994_v53  ;;  %v1721_v60 = vpop.f32.mrb[27].mxu0  ;;  %v1263_v34 = vpop.f32.mrb[30].mxu1 }
 0x125   : >> { %v1268_v61 = vadd.f32 %v1263_v34, %v1155_v56  ;;  %v1739_v35 = vpop.f32.mrb[31].mxu1 }
 0x129   : >> { %v1204_v36 = vpop.f32.mrb[28].mxu0 }
 0x12a   : >> { %v1211_v63 = vadd.f32 %v1204_v36, %v1102_v44  ;;  %v1732_v62 = vpop.f32.mrb[29].mxu0  ;;  %v1360_v21 = vpop.f32.mrb[32].mxu1 }
 0x12b   : >> { %v1367_v22 = vadd.f32 %v1360_v21, %v1267_v52  ;;  %v1207_v30 = vpop.f32.mrb[30].mxu0  ;;  %v1750_v31 = vpop.f32.mrb[33].mxu1 }
 0x12c   : >> { %v1212_v23 = vadd.f32 %v1207_v30, %v1103_v59  ;;  %v1733_v24 = vpop.f32.mrb[31].mxu0  ;;  %v1363_v29 = vpop.f32.mrb[34].mxu1 }
 0x12d   : >> { %v1397_v39 = vadd.f32 %v1961_v19, %v1367_v22  ;;  %v1368_v40 = vadd.f32 %v1363_v29, %v1268_v61  ;;  %v1751_v41 = vpop.f32.mrb[35].mxu1 }
 0x12f   : >> { %v1605_v43 = vpack.c.bf16 %v1397_v39, %v1397_v39  ;;  %v1398_v45 = vadd.f32 %v1961_v19, %v1368_v40 }
 0x131   : >> { %1409 = vst.msk [vmem:[%s1408_s21] sm:$0xf] %vm1388_vm10, %v1605_v43  ;;  %v1606_v46 = vpack.c.bf16 %v1398_v45, %v1398_v45  ;;  %v1310_v20 = vpop.f32.mrb[32].mxu0 }
 0x132   : >> { %v1317_v47 = vadd.f32 %v1310_v20, %v1211_v63  ;;  %v1744_v48 = vpop.f32.mrb[33].mxu0 }
 0x133   : >> { %1410 = vst.msk [vmem:[%s1408_s21 + $0x4] sm:$0xf] %vm1388_vm10, %v1606_v46  ;;  %v1313_v25 = vpop.f32.mrb[34].mxu0 }
 0x134   : >> { %v1375_v26 = vadd.f32 %v1956_v18, %v1317_v47  ;;  %v1318_v32 = vadd.f32 %v1313_v25, %v1212_v23  ;;  %v1745_v49 = vpop.f32.mrb[35].mxu0  ;;  %369 = sbr.rel (!%p367_p4) target bundleno = 17 (0x11), region = 116 }
 0x136   : >> { %v1602_v33 = vpack.c.bf16 %v1375_v26, %v1375_v26  ;;  %v1376_v37 = vadd.f32 %v1956_v18, %v1318_v32 }
 0x138   : >> { %1389 = vst.msk [vmem:[%s1387_s22] sm:$0xf] %vm1388_vm10, %v1602_v33  ;;  %v1603_v50 = vpack.c.bf16 %v1376_v37, %v1376_v37 }
 0x13a   : >> { %1390 = vst.msk [vmem:[%s1387_s22 + $0x4] sm:$0xf] %vm1388_vm10, %v1603_v50 }
 0x13b PF: > { %s18_s24 = sadd.s32 1, %s1787_s24  }
 0x13c   : > { %p15_p5 = scmp.ge.s32.totalorder %s18_s24, 6  }
 0x13e   :  { %17 = sbr.rel (!%p15_p5) target bundleno = 1 (0x1), region = 127 }

// kernel: mcif_forward.5
= control target key start
LH: loop header
LB: loop body
LE: loop exit
PB: predicated region body
PF: predicated region fallthrough
CT: control target
= control target key end

     0   :  { %s2571_s30 = smov 0   ;;  %s3255_s0 = inlined_call_operand.vmem [shape: bf16[512,4], index: 0, kind: input, shape index: {}]   ;;  %s3256_s1 = inlined_call_operand.vmem [shape: bf16[512,4], index: 1, kind: input, shape index: {}]   ;;  %s3257_s2 = inlined_call_operand.vmem [shape: bf16[512,4], index: 2, kind: input, shape index: {}]   ;;  %s3258_s3 = inlined_call_operand.vmem [shape: bf16[512,4], index: 3, kind: input, shape index: {}]   ;;  %s3259_s4 = inlined_call_operand.vmem [shape: bf16[512,4], index: 4, kind: input, shape index: {}]   ;;  %s3260_s5 = inlined_call_operand.vmem [shape: bf16[4,4,4], index: 5, kind: input, shape index: {}]   ;;  %s3261_s6 = inlined_call_operand.vmem [shape: f32[1,4], index: 6, kind: input, shape index: {}]   ;;  %s3262_s7 = inlined_call_operand.vmem [shape: f32[1,4], index: 7, kind: input, shape index: {}]   ;;  %s3263_s8 = inlined_call_operand.vmem [shape: f32[1,4], index: 8, kind: input, shape index: {}]   ;;  %s3264_s9 = inlined_call_operand.vmem [shape: f32[512,4], index: 9, kind: output, shape index: {}]  }
   0x1 LB: > { %s2076_s10 = sadd.s32 4294967295, %s2519_s30   ;;  %p2080_p0 = scmp.ge.s32.totalorder %s2519_s30, 1  ;;  %s2519_s30 = sphi %s2571_s30, %s19_s30  }
   0x2   : > { %p332_p1 = scmp.lt.s32.totalorder %s2519_s30, 5 }
   0x4   : > { %p333_p2 = pnand %p2080_p0, %p332_p1 }
   0x5   : > { %v425_v0 = vld [vmem:[%s3260_s5] sm:$0x3] (!%p333_p2)  ;;  %vm565_vm0 = vcmask (!%p333_p2), 1041408   ;;  %v427_v1 = vld [vmem:[%s3260_s5 + $0x4] sm:$0x3] (!%p333_p2)  ;;  %s2081_s15 = sshll.u32 (!%p333_p2), %s2076_s10, 4 }
   0x6   : > { %336 = sbr.rel (%p333_p2) target bundleno = 720 (0x2d0), region = 56  ;;  %2373 = vmatprep.subr.msk.bf16.mxu1 (!%p333_p2), %vm565_vm0, %v425_v0  ;;  %v567_v2 = vsel (!%p333_p2), %vm565_vm0, %v425_v0, 0  ;;  %2375 = vmatprep.subr.msk.bf16.mxu0 (!%p333_p2), %vm565_vm0, %v427_v1  ;;  %v959_v3 = vsel (!%p333_p2), %vm565_vm0, %v427_v1, 0  ;;  %p389_p3 = scmp.lt.s32.totalorder (!%p333_p2), %s2081_s15, 63  ;;  %v426_v4 = vld [vmem:[%s3260_s5 + $0x2] sm:$0x3] (!%p333_p2) }
   0x7   : > { %2238 = vmatpush3.bf16.msra.mxu1 (!%p333_p2), %v567_v2  ;;  %2274 = vmatpush3.bf16.msra.mxu0 (!%p333_p2), %v959_v3  ;;  %v428_v5 = vld [vmem:[%s3260_s5 + $0x6] sm:$0x3] (!%p333_p2)  ;;  %vm540_vm1 = vcmask (!%p333_p2), 31744   ;;  %v763_v9 = vsel (!%p333_p2), %vm565_vm0, %v426_v4, 0  ;;  %v2703_v43 = vld [vmem:[%s3261_s6] ss:$0 sm:$0xff] (!%p333_p2) }
   0x8   : > { %2374 = vmatprep.subr.msk.bf16.mxu1 (!%p333_p2), %vm565_vm0, %v426_v4  ;;  %2376 = vmatprep.subr.msk.bf16.mxu0 (!%p333_p2), %vm565_vm0, %v428_v5  ;;  %v1155_v11 = vsel (!%p333_p2), %vm565_vm0, %v428_v5, 0 }
   0xd   : > { %s3266_s15 = smov (!%p389_p3, %s2081_s15), 63 }
   0xe   : > { %s2600_s20 = sshll.u32 %s3266_s15, 2 }
   0xf   : > { %s2606_s23 = scalar_lea.vmem %s3255_s0, %s2600_s20  ;;  %s2613_s26 = scalar_lea.vmem %s3257_s2, %s2600_s20 }
  0x10   : > { %v2385_v6 = vld [vmem:[%s2606_s23] sm:$0xff]   ;;  %v2387_v8 = vld [vmem:[%s2606_s23 + $0x8] sm:$0xff]   ;;  %v2389_v12 = vld [vmem:[%s2606_s23 + $0x10] sm:$0xff]   ;;  %s2641_s29 = scalar_lea.vmem %s3256_s1, %s2600_s20  ;;  %s2648_s12 = scalar_lea.vmem %s3258_s3, %s2600_s20 }
  0x11   : > { %v2386_v7 = vld [vmem:[%s2613_s26] sm:$0xff]   ;;  %2239 = vmatprep.mubr.msk.bf16.mxu1 %vm540_vm1, %v2385_v6  ;;  %v2388_v10 = vld [vmem:[%s2613_s26 + $0x8] sm:$0xff]   ;;  %v2390_v13 = vld [vmem:[%s2613_s26 + $0x10] sm:$0xff]   ;;  %s2696_s16 = scalar_lea.vmem %s3259_s4, %s2600_s20 }
  0x12   : > { %2275 = vmatprep.mubr.msk.bf16.mxu0 %vm540_vm1, %v2386_v7  ;;  %2240 = vmatmul.mubr.msk.bf16.vlgmr.msra.gmra.mrb[0].mxu1 %vm540_vm1, %v2387_v8  ;;  %v2391_v14 = vld [vmem:[%s2606_s23 + $0x18] sm:$0xff]   ;;  %v2393_v16 = vld [vmem:[%s2606_s23 + $0x20] sm:$0xff]   ;;  %v2395_v18 = vld [vmem:[%s2606_s23 + $0x28] sm:$0xff]  }
  0x13   : > { %2256 = vmatpush3.bf16.msra.mxu1 %v763_v9  ;;  %2276 = vmatmul.mubr.msk.bf16.vlgmr.msra.gmra.mrb[0].mxu0 %vm540_vm1, %v2388_v10  ;;  %v2392_v15 = vld [vmem:[%s2613_s26 + $0x18] sm:$0xff]   ;;  %v2394_v17 = vld [vmem:[%s2613_s26 + $0x20] sm:$0xff]   ;;  %v2396_v19 = vld [vmem:[%s2613_s26 + $0x28] sm:$0xff]  }
  0x14   : > { %2292 = vmatpush3.bf16.msra.mxu0 %v1155_v11  ;;  %2243 = vmatprep.mubr.msk.bf16.mxu1 %vm540_vm1, %v2389_v12  ;;  %v2397_v20 = vld [vmem:[%s2606_s23 + $0x30] sm:$0xff]   ;;  %v2399_v22 = vld [vmem:[%s2606_s23 + $0x38] sm:$0xff]   ;;  %v2401_v24 = vld [vmem:[%s2641_s29] sm:$0xff]   ;;  %s2092_s23 = sshll.u32 %s3266_s15, 3 }
  0x15   : > { %2279 = vmatprep.mubr.msk.bf16.mxu0 %vm540_vm1, %v2390_v13  ;;  %v2398_v21 = vld [vmem:[%s2613_s26 + $0x30] sm:$0xff]   ;;  %v2400_v23 = vld [vmem:[%s2613_s26 + $0x38] sm:$0xff]   ;;  %v2402_v25 = vld [vmem:[%s2648_s12] sm:$0xff]   ;;  %s3052_s25 = scalar_lea.vmem %s3264_s9, %s2092_s23 }
  0x16   : > { %v2403_v26 = vld [vmem:[%s2641_s29 + $0x8] sm:$0xff]   ;;  %v2405_v28 = vld [vmem:[%s2641_s29 + $0x10] sm:$0xff]   ;;  %v2407_v30 = vld [vmem:[%s2641_s29 + $0x18] sm:$0xff]  }
  0x17   : > { %v2404_v27 = vld [vmem:[%s2648_s12 + $0x8] sm:$0xff]   ;;  %v2406_v29 = vld [vmem:[%s2648_s12 + $0x10] sm:$0xff]   ;;  %v2408_v31 = vld [vmem:[%s2648_s12 + $0x18] sm:$0xff]  }
  0x18   : > { %v2409_v32 = vld [vmem:[%s2641_s29 + $0x20] sm:$0xff]   ;;  %v2411_v34 = vld [vmem:[%s2641_s29 + $0x28] sm:$0xff]   ;;  %v2413_v36 = vld [vmem:[%s2641_s29 + $0x30] sm:$0xff]  }
  0x19   : > { %v2410_v33 = vld [vmem:[%s2648_s12 + $0x20] sm:$0xff]   ;;  %v2412_v35 = vld [vmem:[%s2648_s12 + $0x28] sm:$0xff]   ;;  %v2414_v37 = vld [vmem:[%s2648_s12 + $0x30] sm:$0xff]  }
  0x1a   : > { %2244 = vmatmul.mubr.msk.bf16.gmra.mrb[4].mxu1 %vm540_vm1, %v2391_v14  ;;  %v2415_v38 = vld [vmem:[%s2641_s29 + $0x38] sm:$0xff]   ;;  %v2194_v40 = vld [vmem:[%s2696_s16 + $0x8] sm:$0xff]   ;;  %v2163_v41 = vld [vmem:[%s2696_s16] sm:$0xff]  }
  0x1b   : > { %2280 = vmatmul.mubr.msk.bf16.gmra.mrb[4].mxu0 %vm540_vm1, %v2392_v15  ;;  %2247 = vmatprep.mubr.msk.bf16.mxu1 %vm540_vm1, %v2393_v16  ;;  %v2416_v39 = vld [vmem:[%s2648_s12 + $0x38] sm:$0xff]   ;;  %v2168_v42 = vunpack.c.l.bf16 %v2194_v40  ;;  %v2164_v44 = vunpack.c.l.bf16 %v2163_v41  ;;  %v2169_v45 = vunpack.c.h.bf16 %v2194_v40  ;;  %v2165_v46 = vunpack.c.h.bf16 %v2163_v41  ;;  %v2195_v51 = vld [vmem:[%s2696_s16 + $0x10] sm:$0xff]   ;;  %v2198_v13 = vld [vmem:[%s2696_s16 + $0x28] sm:$0xff]  }
  0x1c   : > { %2283 = vmatprep.mubr.msk.bf16.mxu0 %vm540_vm1, %v2394_v17  ;;  %v2196_v49 = vld [vmem:[%s2696_s16 + $0x18] sm:$0xff]   ;;  %v2172_v61 = vunpack.c.l.bf16 %v2195_v51  ;;  %v2173_v6 = vunpack.c.h.bf16 %v2195_v51  ;;  %v2197_v15 = vld [vmem:[%s2696_s16 + $0x20] sm:$0xff]  }
  0x1d   : > { %v470_v47 = vadd.f32 %v2168_v42, %v2703_v43  ;;  %v468_v48 = vadd.f32 %v2164_v44, %v2703_v43  ;;  %v471_v50 = vadd.f32 %v2169_v45, %v2703_v43  ;;  %v469_v53 = vadd.f32 %v2165_v46, %v2703_v43  ;;  %v2200_v42 = vld [vmem:[%s2696_s16 + $0x38] sm:$0xff]   ;;  %v2199_v46 = vld [vmem:[%s2696_s16 + $0x30] sm:$0xff]  }
  0x1e   : > { %v2176_v57 = vunpack.c.l.bf16 %v2196_v49  ;;  %v2177_v2 = vunpack.c.h.bf16 %v2196_v49  ;;  %v472_v12 = vadd.f32 %v2172_v61, %v2703_v43  ;;  %v473_v17 = vadd.f32 %v2173_v6, %v2703_v43 }
  0x20   : > { %v474_v9 = vadd.f32 %v2176_v57, %v2703_v43  ;;  %v475_v14 = vadd.f32 %v2177_v2, %v2703_v43  ;;  %v2188_v57 = vunpack.c.l.bf16 %v2199_v46 }
  0x22   : > { %2248 = vmatmul.mubr.msk.bf16.gmra.mrb[8].mxu1 %vm540_vm1, %v2395_v18 }
  0x23   : > { %2284 = vmatmul.mubr.msk.bf16.gmra.mrb[8].mxu0 %vm540_vm1, %v2396_v19  ;;  %2251 = vmatprep.mubr.msk.bf16.mxu1 %vm540_vm1, %v2397_v20 }
  0x24   : > { %2287 = vmatprep.mubr.msk.bf16.mxu0 %vm540_vm1, %v2398_v21 }
  0x2a   : > { %2252 = vmatmul.mubr.msk.bf16.gmra.mrb[12].mxu1 %vm540_vm1, %v2399_v22  ;;  %v2184_v22 = vunpack.c.l.bf16 %v2198_v13 }
  0x2b   : > { %2288 = vmatmul.mubr.msk.bf16.gmra.mrb[12].mxu0 %vm540_vm1, %v2400_v23  ;;  %2257 = vmatprep.mubr.msk.bf16.mxu1 %vm540_vm1, %v2401_v24 }
  0x2c   : > { %2293 = vmatprep.mubr.msk.bf16.mxu0 %vm540_vm1, %v2402_v25 }
  0x32   : > { %2258 = vmatmul.mubr.msk.bf16.vlgmr.msra.gmra.mrb[0].mxu1 %vm540_vm1, %v2403_v26 }
  0x33   : > { %2294 = vmatmul.mubr.msk.bf16.vlgmr.msra.gmra.mrb[0].mxu0 %vm540_vm1, %v2404_v27  ;;  %2261 = vmatprep.mubr.msk.bf16.mxu1 %vm540_vm1, %v2405_v28  ;;  %v2180_v27 = vunpack.c.l.bf16 %v2197_v15 }
  0x34   : > { %2297 = vmatprep.mubr.msk.bf16.mxu0 %vm540_vm1, %v2406_v29 }
  0x35   : > { %v476_v40 = vadd.f32 %v2180_v27, %v2703_v43 }
  0x3a   : > { %2262 = vmatmul.mubr.msk.bf16.gmra.mrb[4].mxu1 %vm540_vm1, %v2407_v30 }
  0x3b   : > { %2298 = vmatmul.mubr.msk.bf16.gmra.mrb[4].mxu0 %vm540_vm1, %v2408_v31  ;;  %2265 = vmatprep.mubr.msk.bf16.mxu1 %vm540_vm1, %v2409_v32  ;;  %v2185_v32 = vunpack.c.h.bf16 %v2198_v13 }
  0x3c   : > { %2301 = vmatprep.mubr.msk.bf16.mxu0 %vm540_vm1, %v2410_v33 }
  0x3d   : > { %v479_v45 = vadd.f32 %v2185_v32, %v2703_v43 }
  0x42   : > { %2266 = vmatmul.mubr.msk.bf16.gmra.mrb[8].mxu1 %vm540_vm1, %v2411_v34 }
  0x43   : > { %2302 = vmatmul.mubr.msk.bf16.gmra.mrb[8].mxu0 %vm540_vm1, %v2412_v35  ;;  %2269 = vmatprep.mubr.msk.bf16.mxu1 %vm540_vm1, %v2413_v36  ;;  %v2181_v36 = vunpack.c.h.bf16 %v2197_v15 }
  0x44   : > { %2305 = vmatprep.mubr.msk.bf16.mxu0 %vm540_vm1, %v2414_v37 }
  0x4a   : > { %2270 = vmatmul.mubr.msk.bf16.gmra.mrb[12].mxu1 %vm540_vm1, %v2415_v38 }
  0x4b   : > { %2306 = vmatmul.mubr.msk.bf16.gmra.mrb[12].mxu0 %vm540_vm1, %v2416_v39  ;;  %v478_v39 = vadd.f32 %v2184_v22, %v2703_v43 }
 0x105   : > { %v2259_v52 = vpop.f32.mrb[0].mxu1 }
 0x106   : > { %v2309_v54 = vadd.f32 %v2259_v52, %v470_v47  ;;  %v2295_v55 = vpop.f32.mrb[0].mxu0  ;;  %v799_v56 = vpop.f32.mrb[1].mxu1  ;;  %v2192_v52 = vunpack.c.l.bf16 %v2200_v42 }
 0x107   : > { %v2311_v58 = vadd.f32 %v799_v56, %v468_v48  ;;  %v1191_v59 = vpop.f32.mrb[1].mxu0  ;;  %v2260_v60 = vpop.f32.mrb[2].mxu1  ;;  %v477_v48 = vadd.f32 %v2181_v36, %v2703_v43 }
 0x108   : > { %v2711_v62 = vadd.f32 %v2309_v54, %v2295_v55  ;;  %v2313_v63 = vadd.f32 %v2260_v60, %v471_v50  ;;  %v2296_v0 = vpop.f32.mrb[2].mxu0  ;;  %v802_v1 = vpop.f32.mrb[3].mxu1 }
 0x109   : > { %v2713_v3 = vadd.f32 %v2311_v58, %v1191_v59  ;;  %v2315_v4 = vadd.f32 %v802_v1, %v469_v53  ;;  %v1194_v5 = vpop.f32.mrb[3].mxu0 }
 0x10a   : > { %v2715_v7 = vadd.f32 %v2313_v63, %v2296_v0  ;;  %v1276_v8 = vsel %vm540_vm1, %v2711_v62, 0.0  ;;  %v2193_v0 = vunpack.c.h.bf16 %v2200_v42 }
 0x10b   : > { %v2720_v10 = vadd.f32 %v2315_v4, %v1194_v5  ;;  %1277 = vadd.xlane.f32.xlu1 %v1276_v8  ;;  %v1270_v11 = vsel %vm540_vm1, %v2713_v3, 0.0  ;;  %v2189_v5 = vunpack.c.h.bf16 %v2199_v46 }
 0x10c   : > { %1271 = vadd.xlane.f32.xlu0 %v1270_v11  ;;  %v1279_v21 = vsel %vm540_vm1, %v2715_v7, 0.0  ;;  %v480_v11 = vadd.f32 %v2188_v57, %v2703_v43 }
 0x10d   : > { %v2263_v16 = vpop.f32.mrb[4].mxu1  ;;  %v1273_v26 = vsel %vm540_vm1, %v2720_v10, 0.0 }
 0x10e   : > { %v2317_v18 = vadd.f32 %v2263_v16, %v474_v9  ;;  %v2299_v19 = vpop.f32.mrb[4].mxu0  ;;  %v815_v20 = vpop.f32.mrb[5].mxu1  ;;  %v482_v9 = vadd.f32 %v2192_v52, %v2703_v43  ;;  %v481_v16 = vadd.f32 %v2189_v5, %v2703_v43 }
 0x10f   : > { %v2319_v23 = vadd.f32 %v815_v20, %v472_v12  ;;  %v1207_v24 = vpop.f32.mrb[5].mxu0  ;;  %1280 = vadd.xlane.f32.xlu1 %v1279_v21  ;;  %v2264_v25 = vpop.f32.mrb[6].mxu1 }
 0x110   : > { %v2733_v28 = vadd.f32 %v2317_v18, %v2299_v19  ;;  %v2300_v29 = vpop.f32.mrb[6].mxu0  ;;  %v2321_v30 = vadd.f32 %v2264_v25, %v475_v14  ;;  %1274 = vadd.xlane.f32.xlu0 %v1273_v26  ;;  %v818_v31 = vpop.f32.mrb[7].mxu1  ;;  %v483_v14 = vadd.f32 %v2193_v0, %v2703_v43 }
 0x111   : > { %v2735_v33 = vadd.f32 %v2319_v23, %v1207_v24  ;;  %v1210_v34 = vpop.f32.mrb[7].mxu0  ;;  %v2323_v35 = vadd.f32 %v818_v31, %v473_v17 }
 0x112   : > { %v1288_v37 = vsel %vm540_vm1, %v2733_v28, 0.0  ;;  %v2739_v38 = vadd.f32 %v2321_v30, %v2300_v29 }
 0x113   : > { %v2743_v41 = vadd.f32 %v2323_v35, %v1210_v34  ;;  %v1282_v56 = vsel %vm540_vm1, %v2735_v33, 0.0 }
 0x114   : > { %1289 = vadd.xlane.f32.xlu0 %v1288_v37  ;;  %v1291_v44 = vsel %vm540_vm1, %v2739_v38, 0.0 }
 0x115   : > { %1292 = vadd.xlane.f32.xlu1 %v1291_v44  ;;  %v2267_v47 = vpop.f32.mrb[8].mxu1  ;;  %v1285_v61 = vsel %vm540_vm1, %v2743_v41, 0.0 }
 0x116   : > { %v2303_v49 = vpop.f32.mrb[8].mxu0  ;;  %v2325_v50 = vadd.f32 %v2267_v47, %v478_v39  ;;  %v831_v51 = vpop.f32.mrb[9].mxu1 }
 0x117   : > { %v2327_v53 = vadd.f32 %v831_v51, %v476_v40  ;;  %v1223_v54 = vpop.f32.mrb[9].mxu0  ;;  %v2268_v55 = vpop.f32.mrb[10].mxu1 }
 0x118   : > { %v2329_v58 = vadd.f32 %v2268_v55, %v479_v45  ;;  %v2304_v59 = vpop.f32.mrb[10].mxu0  ;;  %1283 = vadd.xlane.f32.xlu0 %v1282_v56  ;;  %v834_v60 = vpop.f32.mrb[11].mxu1  ;;  %v2755_v63 = vadd.f32 %v2325_v50, %v2303_v49 }
 0x119   : > { %v2757_v1 = vadd.f32 %v2327_v53, %v1223_v54  ;;  %v1226_v2 = vpop.f32.mrb[11].mxu0  ;;  %v2331_v4 = vadd.f32 %v834_v60, %v477_v48  ;;  %1286 = vadd.xlane.f32.xlu1 %v1285_v61 }
 0x11a   : > { %v2759_v6 = vadd.f32 %v2329_v58, %v2304_v59  ;;  %v1300_v8 = vsel %vm540_vm1, %v2755_v63, 0.0 }
 0x11b   : > { %v2765_v12 = vadd.f32 %v2331_v4, %v1226_v2  ;;  %v1294_v23 = vsel %vm540_vm1, %v2757_v1, 0.0 }
 0x11c   : > { %1301 = vadd.xlane.f32.xlu0 %v1300_v8  ;;  %v1303_v13 = vsel %vm540_vm1, %v2759_v6, 0.0 }
 0x11d   : > { %1304 = vadd.xlane.f32.xlu1 %v1303_v13  ;;  %v2271_v15 = vpop.f32.mrb[12].mxu1  ;;  %v1297_v27 = vsel %vm540_vm1, %v2765_v12, 0.0 }
 0x11e   : > { %v2307_v17 = vpop.f32.mrb[12].mxu0  ;;  %v2333_v18 = vadd.f32 %v2271_v15, %v482_v9  ;;  %v847_v19 = vpop.f32.mrb[13].mxu1 }
 0x11f   : > { %v2335_v20 = vadd.f32 %v847_v19, %v480_v11  ;;  %v1239_v21 = vpop.f32.mrb[13].mxu0  ;;  %v2272_v22 = vpop.f32.mrb[14].mxu1 }
 0x120   : > { %v2337_v24 = vadd.f32 %v2272_v22, %v483_v14  ;;  %v2308_v25 = vpop.f32.mrb[14].mxu0  ;;  %1295 = vadd.xlane.f32.xlu0 %v1294_v23  ;;  %v850_v26 = vpop.f32.mrb[15].mxu1  ;;  %v2775_v29 = vadd.f32 %v2333_v18, %v2307_v17 }
 0x121   : > { %v2777_v30 = vadd.f32 %v2335_v20, %v1239_v21  ;;  %v1242_v43 = vpop.f32.mrb[15].mxu0  ;;  %v2339_v31 = vadd.f32 %v850_v26, %v481_v16  ;;  %1298 = vadd.xlane.f32.xlu1 %v1297_v27 }
 0x122   : > { %v2779_v32 = vadd.f32 %v2337_v24, %v2308_v25  ;;  %v1312_v37 = vsel %vm540_vm1, %v2775_v29, 0.0 }
 0x123   : > { %v1306_v34 = vsel %vm540_vm1, %v2777_v30, 0.0  ;;  %v2783_v35 = vadd.f32 %v2339_v31, %v1242_v43 }
 0x124   : > { %1307 = vadd.xlane.f32.xlu0 %v1306_v34  ;;  %v1315_v39 = vsel %vm540_vm1, %v2779_v32, 0.0 }
 0x125   : > { %v1309_v36 = vsel %vm540_vm1, %v2783_v35, 0.0 }
 0x126   : > { %1310 = vadd.xlane.f32.xlu1 %v1309_v36 }
 0x128   : > { %1313 = vadd.xlane.f32.xlu0 %v1312_v37 }
 0x12a   : > { %1316 = vadd.xlane.f32.xlu1 %v1315_v39 }
 0x198   : > { %v1278_v40 = vpop.xlane.xlu1 %1277 }
 0x199   : > { %v1320_v42 = vmul.f32 0.25, %v1278_v40  ;;  %v1272_v44 = vpop.xlane.xlu0 %1271 }
 0x19a   : > { %v1318_v45 = vmul.f32 0.25, %v1272_v44 }
 0x19b   : > { %v2792_v46 = vsub.f32 %v2711_v62, %v1320_v42 }
 0x19c   : > { %v2795_v47 = vsub.f32 %v2713_v3, %v1318_v45  ;;  %v1281_v48 = vpop.xlane.xlu1 %1280 }
 0x19d   : > { %v1321_v49 = vmul.f32 0.25, %v1281_v48  ;;  %v1275_v50 = vpop.xlane.xlu0 %1274  ;;  %v1352_v51 = vmul.f32 %v2792_v46, %v2792_v46 }
 0x19e   : > { %v1319_v52 = vmul.f32 0.25, %v1275_v50  ;;  %v1350_v55 = vmul.f32 %v2795_v47, %v2795_v47 }
 0x19f   : > { %v2800_v53 = vsub.f32 %v2715_v7, %v1321_v49  ;;  %v1372_v54 = vsel %vm540_vm1, %v1352_v51, 0.0 }
 0x1a0   : > { %v2806_v62 = vsub.f32 %v2720_v10, %v1319_v52  ;;  %1373 = vadd.xlane.f32.xlu0 %v1372_v54  ;;  %v1366_v60 = vsel %vm540_vm1, %v1350_v55, 0.0 }
 0x1a1   : > { %v1290_v3 = vpop.xlane.xlu0 %1289  ;;  %v1353_v56 = vmul.f32 %v2800_v53, %v2800_v53 }
 0x1a2   : > { %v1324_v57 = vmul.f32 0.25, %v1290_v3  ;;  %v1293_v58 = vpop.xlane.xlu1 %1292  ;;  %v1351_v61 = vmul.f32 %v2806_v62, %v2806_v62 }
 0x1a3   : > { %v1325_v59 = vmul.f32 0.25, %v1293_v58  ;;  %v1375_v7 = vsel %vm540_vm1, %v1353_v56, 0.0 }
 0x1a4   : > { %v2815_v0 = vsub.f32 %v2733_v28, %v1324_v57  ;;  %1367 = vadd.xlane.f32.xlu0 %v1366_v60  ;;  %1376 = vadd.xlane.f32.xlu1 %v1375_v7  ;;  %v1369_v11 = vsel %vm540_vm1, %v1351_v61, 0.0 }
 0x1a5   : > { %v2818_v10 = vsub.f32 %v2739_v38, %v1325_v59  ;;  %v1284_v2 = vpop.xlane.xlu0 %1283 }
 0x1a6   : > { %v1322_v4 = vmul.f32 0.25, %v1284_v2  ;;  %v1287_v5 = vpop.xlane.xlu1 %1286  ;;  %v1356_v8 = vmul.f32 %v2815_v0, %v2815_v0 }
 0x1a7   : > { %v1323_v9 = vmul.f32 0.25, %v1287_v5  ;;  %v1357_v13 = vmul.f32 %v2818_v10, %v2818_v10 }
 0x1a8   : > { %v2826_v28 = vsub.f32 %v2735_v33, %v1322_v4  ;;  %1370 = vadd.xlane.f32.xlu1 %v1369_v11  ;;  %v1384_v14 = vsel %vm540_vm1, %v1356_v8, 0.0 }
 0x1a9   : > { %v2830_v38 = vsub.f32 %v2743_v41, %v1323_v9  ;;  %v1302_v15 = vpop.xlane.xlu0 %1301  ;;  %1385 = vadd.xlane.f32.xlu0 %v1384_v14  ;;  %v1387_v20 = vsel %vm540_vm1, %v1357_v13, 0.0 }
 0x1aa   : > { %v1328_v16 = vmul.f32 0.25, %v1302_v15  ;;  %v1305_v17 = vpop.xlane.xlu1 %1304  ;;  %v1354_v18 = vmul.f32 %v2826_v28, %v2826_v28 }
 0x1ab   : > { %v1329_v19 = vmul.f32 0.25, %v1305_v17  ;;  %v1355_v33 = vmul.f32 %v2830_v38, %v2830_v38 }
 0x1ac   : > { %v2838_v21 = vsub.f32 %v2755_v63, %v1328_v16  ;;  %1388 = vadd.xlane.f32.xlu1 %v1387_v20  ;;  %v1378_v41 = vsel %vm540_vm1, %v1354_v18, 0.0 }
 0x1ad   : > { %v2842_v22 = vsub.f32 %v2759_v6, %v1329_v19  ;;  %v1296_v23 = vpop.xlane.xlu0 %1295  ;;  %1379 = vadd.xlane.f32.xlu0 %v1378_v41  ;;  %v1381_v43 = vsel %vm540_vm1, %v1355_v33, 0.0 }
 0x1ae   : > { %v1326_v24 = vmul.f32 0.25, %v1296_v23  ;;  %v1299_v25 = vpop.xlane.xlu1 %1298  ;;  %v1360_v26 = vmul.f32 %v2838_v21, %v2838_v21  ;;  %v2890_v23 = vld [vmem:[%s3262_s7] ss:$0 sm:$0xff] }
 0x1af   : > { %v1327_v27 = vmul.f32 0.25, %v1299_v25  ;;  %v1361_v63 = vmul.f32 %v2842_v22, %v2842_v22 }
 0x1b0   : > { %v2850_v31 = vsub.f32 %v2757_v1, %v1326_v24  ;;  %1382 = vadd.xlane.f32.xlu1 %v1381_v43  ;;  %v1396_v6 = vsel %vm540_vm1, %v1360_v26, 0.0 }
 0x1b1   : > { %v2854_v34 = vsub.f32 %v2765_v12, %v1327_v27  ;;  %1397 = vadd.xlane.f32.xlu0 %v1396_v6  ;;  %v1308_v36 = vpop.xlane.xlu0 %1307  ;;  %v1399_v42 = vsel %vm540_vm1, %v1361_v63, 0.0  ;;  %v2896_v27 = vld [vmem:[%s3263_s8] ss:$0 sm:$0xff] }
 0x1b2   : > { %v1330_v37 = vmul.f32 0.25, %v1308_v36  ;;  %v1358_v39 = vmul.f32 %v2850_v31, %v2850_v31 }
 0x1b3   : > { %v1311_v40 = vpop.xlane.xlu1 %1310  ;;  %v1359_v44 = vmul.f32 %v2854_v34, %v2854_v34 }
 0x1b4   : > { %v2862_v1 = vsub.f32 %v2777_v30, %v1330_v37  ;;  %v1331_v45 = vmul.f32 0.25, %v1311_v40  ;;  %1400 = vadd.xlane.f32.xlu1 %v1399_v42  ;;  %v1390_v12 = vsel %vm540_vm1, %v1358_v39, 0.0 }
 0x1b5   : > { %1391 = vadd.xlane.f32.xlu0 %v1390_v12  ;;  %v1314_v48 = vpop.xlane.xlu0 %1313  ;;  %v1393_v54 = vsel %vm540_vm1, %v1359_v44, 0.0 }
 0x1b6   : > { %v2866_v49 = vsub.f32 %v2783_v35, %v1331_v45  ;;  %v1332_v50 = vmul.f32 0.25, %v1314_v48  ;;  %v1362_v51 = vmul.f32 %v2862_v1, %v2862_v1 }
 0x1b7   : > { %v1317_v52 = vpop.xlane.xlu1 %1316 }
 0x1b8   : > { %v2872_v55 = vsub.f32 %v2775_v29, %v1332_v50  ;;  %v1333_v30 = vmul.f32 0.25, %v1317_v52  ;;  %1394 = vadd.xlane.f32.xlu1 %v1393_v54  ;;  %v1402_v3 = vsel %vm540_vm1, %v1362_v51, 0.0  ;;  %v1363_v56 = vmul.f32 %v2866_v49, %v2866_v49 }
 0x1b9   : > { %1403 = vadd.xlane.f32.xlu0 %v1402_v3 }
 0x1ba   : > { %v2878_v35 = vsub.f32 %v2779_v32, %v1333_v30  ;;  %v1405_v57 = vsel %vm540_vm1, %v1363_v56, 0.0  ;;  %v1364_v58 = vmul.f32 %v2872_v55, %v2872_v55 }
 0x1bc   : > { %1406 = vadd.xlane.f32.xlu1 %v1405_v57  ;;  %v1408_v29 = vsel %vm540_vm1, %v1364_v58, 0.0  ;;  %v1365_v59 = vmul.f32 %v2878_v35, %v2878_v35 }
 0x1bd   : > { %1409 = vadd.xlane.f32.xlu0 %v1408_v29 }
 0x1be   : > { %v1411_v60 = vsel %vm540_vm1, %v1365_v59, 0.0 }
 0x1c0   : > { %1412 = vadd.xlane.f32.xlu1 %v1411_v60 }
 0x22d   : > { %v1374_v7 = vpop.xlane.xlu0 %1373 }
 0x22e   : > { %v1416_v61 = vmul.f32 0.25, %v1374_v7 }
 0x230   : > { %v1432_v2 = vadd.f32 1e-06, %v1416_v61 }
 0x231   : > { %v1368_v32 = vpop.xlane.xlu0 %1367  ;;  %v1377_v4 = vpop.xlane.xlu1 %1376 }
 0x232   : > { %2417 = vrsqrt.f32 %v1432_v2  ;;  %v1414_v5 = vmul.f32 0.25, %v1368_v32  ;;  %v1417_v8 = vmul.f32 0.25, %v1377_v4 }
 0x234   : > { %v1430_v9 = vadd.f32 1e-06, %v1414_v5  ;;  %v1433_v11 = vadd.f32 1e-06, %v1417_v8 }
 0x235   : > { %v1371_v13 = vpop.xlane.xlu1 %1370 }
 0x236   : > { %2419 = vrsqrt.f32 %v1430_v9  ;;  %v1415_v14 = vmul.f32 0.25, %v1371_v13  ;;  %v1386_v15 = vpop.xlane.xlu0 %1385 }
 0x237   : > { %2421 = vrsqrt.f32 %v1433_v11  ;;  %v1420_v16 = vmul.f32 0.25, %v1386_v15 }
 0x238   : > { %v1431_v17 = vadd.f32 1e-06, %v1415_v14 }
 0x239   : > { %v1436_v18 = vadd.f32 1e-06, %v1420_v16  ;;  %v1389_v19 = vpop.xlane.xlu1 %1388 }
 0x23a   : > { %2423 = vrsqrt.f32 %v1431_v17  ;;  %v1421_v20 = vmul.f32 0.25, %v1389_v19  ;;  %v1380_v33 = vpop.xlane.xlu0 %1379 }
 0x23b   : > { %2425 = vrsqrt.f32 %v1436_v18  ;;  %v1418_v24 = vmul.f32 0.25, %v1380_v33 }
 0x23c   : > { %v2418_v41 = vpop.eup %2417  ;;  %v1437_v43 = vadd.f32 1e-06, %v1421_v20 }
 0x23d   : > { %v1464_v25 = vmul.f32 %v2418_v41, %v2792_v46  ;;  %v1383_v26 = vpop.xlane.xlu1 %1382  ;;  %v1434_v37 = vadd.f32 1e-06, %v1418_v24 }
 0x23e   : > { %v1419_v63 = vmul.f32 0.25, %v1383_v26  ;;  %2427 = vrsqrt.f32 %v1437_v43  ;;  %v1398_v45 = vpop.xlane.xlu0 %1397 }
 0x23f   : > { %v1487_v6 = vmul.f32 %v2890_v23, %v1464_v25  ;;  %2429 = vrsqrt.f32 %v1434_v37 }
 0x240   : > { %v2420_v36 = vpop.eup %2419  ;;  %v1435_v46 = vadd.f32 1e-06, %v1419_v63 }
 0x241   : > { %v2422_v39 = vpop.eup %2421  ;;  %v1510_v40 = vadd.f32 %v2896_v27, %v1487_v6  ;;  %v1462_v42 = vmul.f32 %v2420_v36, %v2795_v47  ;;  %v1401_v50 = vpop.xlane.xlu1 %1400 }
 0x242   : > { %v1465_v44 = vmul.f32 %v2422_v39, %v2800_v53  ;;  %v1424_v53 = vmul.f32 0.25, %v1398_v45  ;;  %2431 = vrsqrt.f32 %v1435_v46  ;;  %v1425_v58 = vmul.f32 0.25, %v1401_v50  ;;  %v1392_v9 = vpop.xlane.xlu0 %1391 }
 0x243   : > { %v2902_v12 = vmul.f32 0.70710677, %v1510_v40  ;;  %v1485_v48 = vmul.f32 %v2890_v23, %v1462_v42  ;;  %v1422_v20 = vmul.f32 0.25, %v1392_v9  ;;  %v2932_v26 = vmul.f32 0.5, %v1510_v40 }
 0x244   : > { %v2424_v51 = vpop.eup %2423  ;;  %v1488_v52 = vmul.f32 %v2890_v23, %v1465_v44  ;;  %v1440_v32 = vadd.f32 1e-06, %v1424_v53  ;;  %v1441_v8 = vadd.f32 1e-06, %v1425_v58 }
 0x245   : > { %v2426_v54 = vpop.eup %2425  ;;  %v1558_v30 = vand.u32 2147483647, %v2902_v12  ;;  %v1508_v3 = vadd.f32 %v2896_v27, %v1485_v48  ;;  %v1463_v47 = vmul.f32 %v2424_v51, %v2806_v62  ;;  %v2940_v45 = vadd.f32 1e-06, %v1422_v20 }
 0x246   : > { %v2910_v56 = vadd.f32 %v2896_v27, %v1488_v52  ;;  %v1468_v57 = vmul.f32 %v2426_v54, %v2815_v0  ;;  %vm1878_vm2 = vcmp.ge.f32.partialorder %v2902_v12, 0.0 }
 0x247   : > { %v1574_v29 = vmul.f32 0.3275911, %v1558_v30  ;;  %v2913_v59 = vmul.f32 0.70710677, %v1508_v3  ;;  %v1486_v7 = vmul.f32 %v2890_v23, %v1463_v47  ;;  %v1782_v4 = vsub.f32 0.0, %v1558_v30 }
 0x248   : > { %v2916_v60 = vmul.f32 0.70710677, %v2910_v56  ;;  %v1491_v61 = vmul.f32 %v2890_v23, %v1468_v57  ;;  %v2428_v14 = vpop.eup %2427  ;;  %v2947_v47 = vmul.f32 0.5, %v1508_v3 }
 0x249   : > { %v1590_v2 = vadd.f32 1.0, %v1574_v29  ;;  %v1556_v62 = vand.u32 2147483647, %v2913_v59  ;;  %v2923_v0 = vadd.f32 %v2896_v27, %v1486_v7  ;;  %v2430_v33 = vpop.eup %2429  ;;  %v1798_v41 = vmul.f32 %v1782_v4, %v1558_v30 }
 0x24a   : > { %v1559_v5 = vand.u32 2147483647, %v2916_v60  ;;  %v2926_v13 = vadd.f32 %v2896_v27, %v1491_v61  ;;  %v1469_v63 = vmul.f32 %v2428_v14, %v2818_v10  ;;  %v1466_v51 = vmul.f32 %v2430_v33, %v2826_v28 }
 0x24b   : > { %2433 = vrcp.f32 %v1590_v2  ;;  %v1572_v11 = vmul.f32 0.3275911, %v1556_v62  ;;  %v1780_v15 = vsub.f32 0.0, %v1556_v62  ;;  %v2929_v17 = vmul.f32 0.70710677, %v2923_v0 }
 0x24c   : > { %v1575_v16 = vmul.f32 0.3275911, %v1559_v5  ;;  %v1783_v19 = vsub.f32 0.0, %v1559_v5  ;;  %2435 = vrsqrt.f32 %v1440_v32  ;;  %v2935_v43 = vmul.f32 0.70710677, %v2926_v13  ;;  %v2432_v6 = vpop.eup %2431 }
 0x24d   : > { %v1588_v18 = vadd.f32 1.0, %v1572_v11  ;;  %v1557_v25 = vand.u32 2147483647, %v2929_v17  ;;  %2437 = vrsqrt.f32 %v1441_v8  ;;  %v1796_v36 = vmul.f32 %v1780_v15, %v1556_v62 }
 0x24e   : > { %v1591_v24 = vadd.f32 1.0, %v1575_v16  ;;  %v1799_v42 = vmul.f32 %v1783_v19, %v1559_v5  ;;  %v1562_v44 = vand.u32 2147483647, %v2935_v43  ;;  %v1492_v46 = vmul.f32 %v2890_v23, %v1469_v63 }
 0x24f   : > { %2439 = vrcp.f32 %v1588_v18  ;;  %v1573_v37 = vmul.f32 0.3275911, %v1557_v25  ;;  %v1781_v39 = vsub.f32 0.0, %v1557_v25  ;;  %v1816_v40 = vmul.f32 1.442695, %v1798_v41 }
 0x250   : > { %2441 = vrcp.f32 %v1591_v24  ;;  %v1578_v52 = vmul.f32 0.3275911, %v1562_v44  ;;  %v1786_v54 = vsub.f32 0.0, %v1562_v44  ;;  %v2944_v10 = vadd.f32 %v2896_v27, %v1492_v46 }
 0x251   : > { %v1589_v48 = vadd.f32 1.0, %v1573_v37  ;;  %v1797_v50 = vmul.f32 %v1781_v39, %v1557_v25  ;;  %v1467_v30 = vmul.f32 %v2432_v6, %v2830_v38  ;;  %v1812_v53 = vmul.f32 1.442695, %v1796_v36 }
 0x252   : > { %v1489_v57 = vmul.f32 %v2890_v23, %v1466_v51  ;;  %v1818_v29 = vmul.f32 1.442695, %v1799_v42  ;;  %v1594_v7 = vadd.f32 1.0, %v1578_v52  ;;  %v1802_v61 = vmul.f32 %v1786_v54, %v1562_v44 }
 0x253   : > { %2443 = vrcp.f32 %v1589_v48  ;;  %v2953_v28 = vmul.f32 0.70710677, %v2944_v10  ;;  %v1490_v38 = vmul.f32 %v2890_v23, %v1467_v30  ;;  %v2961_v32 = vmul.f32 0.5, %v2910_v56 }
 0x254   : > { %2445 = vpow2.f32 %v1816_v40  ;;  %v2957_v62 = vadd.f32 %v2896_v27, %v1489_v57  ;;  %v1814_v4 = vmul.f32 1.442695, %v1797_v50  ;;  %v1824_v11 = vmul.f32 1.442695, %v1802_v61 }
 0x255   : > { %v2950_v58 = vpop.eup %2433  ;;  %2447 = vrcp.f32 %v1594_v7  ;;  %v1563_v5 = vand.u32 2147483647, %v2953_v28  ;;  %v2970_v16 = vmul.f32 0.5, %v2923_v0  ;;  %v2978_v24 = vadd.f32 %v2896_v27, %v1490_v38 }
 0x256   : > { %v1638_v2 = vmul.f32 1.0614054, %v2950_v58  ;;  %v2436_v3 = vpop.eup %2435  ;;  %2449 = vpow2.f32 %v1812_v53  ;;  %v2965_v14 = vmul.f32 0.70710677, %v2957_v62  ;;  %vm1876_vm3 = vcmp.ge.f32.partialorder %v2913_v59, 0.0 }
 0x257   : > { %v2438_v8 = vpop.eup %2437  ;;  %2451 = vpow2.f32 %v1818_v29  ;;  %v1579_v18 = vmul.f32 0.3275911, %v1563_v5  ;;  %v1787_v56 = vsub.f32 0.0, %v1563_v5  ;;  %v1472_v44 = vmul.f32 %v2436_v3, %v2838_v21 }
 0x258   : > { %v1654_v9 = vadd.f32 -1.4531521, %v1638_v2  ;;  %v1560_v41 = vand.u32 2147483647, %v2965_v14  ;;  %2453 = vpow2.f32 %v1814_v4  ;;  %v2987_v51 = vmul.f32 0.70710677, %v2978_v24 }
 0x259   : > { %v2967_v15 = vpop.eup %2439  ;;  %v1595_v63 = vadd.f32 1.0, %v1579_v18  ;;  %v1803_v6 = vmul.f32 %v1787_v56, %v1563_v5  ;;  %2455 = vpow2.f32 %v1824_v11  ;;  %v1495_v4 = vmul.f32 %v2890_v23, %v1472_v44 }
 0x25a   : > { %v2972_v19 = vpop.eup %2441  ;;  %v1670_v20 = vmul.f32 %v2950_v58, %v1654_v9  ;;  %v1636_v33 = vmul.f32 1.0614054, %v2967_v15  ;;  %v1576_v37 = vmul.f32 0.3275911, %v1560_v41  ;;  %v1784_v42 = vsub.f32 0.0, %v1560_v41 }
 0x25b   : > { %v1639_v25 = vmul.f32 1.0614054, %v2972_v19  ;;  %2457 = vrcp.f32 %v1595_v63  ;;  %v1826_v30 = vmul.f32 1.442695, %v1803_v6  ;;  %v1561_v21 = vand.u32 2147483647, %v2987_v51 }
 0x25c   : > { %v1686_v0 = vadd.f32 1.4214138, %v1670_v20  ;;  %v1652_v36 = vadd.f32 -1.4531521, %v1636_v33  ;;  %v1592_v50 = vadd.f32 1.0, %v1576_v37  ;;  %v1800_v53 = vmul.f32 %v1784_v42, %v1560_v41 }
 0x25d   : > { %v1655_v39 = vadd.f32 -1.4531521, %v1639_v25  ;;  %v2982_v46 = vpop.eup %2443  ;;  %v1577_v56 = vmul.f32 0.3275911, %v1561_v21  ;;  %v1785_v25 = vsub.f32 0.0, %v1561_v21  ;;  %vm1879_vm4 = vcmp.ge.f32.partialorder %v2916_v60, 0.0 }
 0x25e   : > { %v1702_v40 = vmul.f32 %v2950_v58, %v1686_v0  ;;  %v1668_v48 = vmul.f32 %v2967_v15, %v1652_v36  ;;  %v1637_v54 = vmul.f32 1.0614054, %v2982_v46  ;;  %v2446_v57 = vpop.eup %2445  ;;  %2459 = vrcp.f32 %v1592_v50 }
 0x25f   : > { %v1671_v52 = vmul.f32 %v2972_v19, %v1655_v39  ;;  %v2992_v61 = vpop.eup %2447  ;;  %v1820_v3 = vmul.f32 1.442695, %v1800_v53  ;;  %2461 = vpow2.f32 %v1826_v30  ;;  %v1473_v36 = vmul.f32 %v2438_v8, %v2842_v22 }
 0x260   : > { %v1718_v29 = vadd.f32 -0.28449672, %v1702_v40  ;;  %v1684_v7 = vadd.f32 1.4214138, %v1668_v48  ;;  %v1653_v38 = vadd.f32 -1.4531521, %v1637_v54  ;;  %v2450_v5 = vpop.eup %2449  ;;  %v1801_v40 = vmul.f32 %v1785_v25, %v1561_v21 }
 0x261   : > { %v1687_v2 = vadd.f32 1.4214138, %v1671_v52  ;;  %v1642_v18 = vmul.f32 1.0614054, %v2992_v61  ;;  %v2452_v20 = vpop.eup %2451  ;;  %v1593_v44 = vadd.f32 1.0, %v1577_v56  ;;  %2463 = vpow2.f32 %v1820_v3 }
 0x262   : > { %v1734_v9 = vmul.f32 %v2950_v58, %v1718_v29  ;;  %v1700_v11 = vmul.f32 %v2967_v15, %v1684_v7  ;;  %v1669_v41 = vmul.f32 %v2982_v46, %v1653_v38  ;;  %v3001_v37 = vpop.eup %2453  ;;  %v3014_v53 = vadd.f32 %v2896_v27, %v1495_v4 }
 0x263   : > { %v1703_v33 = vmul.f32 %v2972_v19, %v1687_v2  ;;  %v1658_v0 = vadd.f32 -1.4531521, %v1642_v18  ;;  %v3004_v48 = vpop.eup %2455  ;;  %2465 = vrcp.f32 %v1593_v44  ;;  %v3018_v3 = vmul.f32 1.442695, %v1801_v40 }
 0x264   : > { %v1750_v63 = vadd.f32 0.2548296, %v1734_v9  ;;  %v1716_v6 = vadd.f32 -0.28449672, %v1700_v11  ;;  %v1685_v42 = vadd.f32 1.4214138, %v1669_v41  ;;  %v3021_v9 = vmul.f32 %v2890_v23, %v1473_v36 }
 0x265   : > { %v1719_v39 = vadd.f32 -0.28449672, %v1703_v33  ;;  %v1674_v54 = vmul.f32 %v2992_v61, %v1658_v0  ;;  %v3009_v30 = vpop.eup %2457  ;;  %vm1877_vm5 = vcmp.ge.f32.partialorder %v2929_v17, 0.0  ;;  %vm1882_vm6 = vcmp.ge.f32.partialorder %v2935_v43, 0.0 }
 0x266   : > { %v1766_v50 = vmul.f32 %v2950_v58, %v1750_v63  ;;  %v1732_v52 = vmul.f32 %v2967_v15, %v1716_v6  ;;  %v1701_v8 = vmul.f32 %v2982_v46, %v1685_v42  ;;  %v1643_v58 = vmul.f32 1.0614054, %v3009_v30 }
 0x267   : > { %v1735_v22 = vmul.f32 %v2972_v19, %v1719_v39  ;;  %v1690_v21 = vadd.f32 1.4214138, %v1674_v54  ;;  %v3032_v63 = vmul.f32 0.70710677, %v3014_v53  ;;  %v3087_v17 = vadd.f32 %v2896_v27, %v3021_v9 }
 0x268   : > { %v1846_v29 = vmul.f32 %v2446_v57, %v1766_v50  ;;  %v1748_v7 = vadd.f32 0.2548296, %v1732_v52  ;;  %v1717_v38 = vadd.f32 -0.28449672, %v1701_v8  ;;  %v3023_v11 = vpop.eup %2459  ;;  %v1659_v56 = vadd.f32 -1.4531521, %v1643_v58 }
 0x269   : > { %v1751_v2 = vadd.f32 0.2548296, %v1735_v22  ;;  %v1706_v57 = vmul.f32 %v2992_v61, %v1690_v21  ;;  %v1640_v25 = vmul.f32 1.0614054, %v3023_v11  ;;  %v3036_v39 = vpop.eup %2461  ;;  %vm1883_vm7 = vcmp.ge.f32.partialorder %v2953_v28, 0.0 }
 0x26a   : > { %v1862_v18 = vsub.f32 1.0, %v1846_v29  ;;  %v1764_v4 = vmul.f32 %v2967_v15, %v1748_v7  ;;  %v1733_v41 = vmul.f32 %v2982_v46, %v1717_v38  ;;  %v1675_v15 = vmul.f32 %v3009_v30, %v1659_v56 }
 0x26b   : > { %v1767_v33 = vmul.f32 %v2972_v19, %v1751_v2  ;;  %v1722_v36 = vadd.f32 -0.28449672, %v1706_v57  ;;  %v1656_v40 = vadd.f32 -1.4531521, %v1640_v25  ;;  %v3039_v19 = vand.u32 2147483647, %v3032_v63  ;;  %v3047_v7 = vpop.eup %2463 }
 0x26c   : > { %v1894_v6 = vsub.f32 0.0, %v1862_v18  ;;  %v1844_v0 = vmul.f32 %v2450_v5, %v1764_v4  ;;  %v1749_v44 = vadd.f32 0.2548296, %v1733_v41  ;;  %v1691_v5 = vadd.f32 1.4214138, %v1675_v15 }
 0x26d   : > { %v1847_v42 = vmul.f32 %v2452_v20, %v1767_v33  ;;  %v1738_v54 = vmul.f32 %v2992_v61, %v1722_v36  ;;  %v1672_v20 = vmul.f32 %v3023_v11, %v1656_v40  ;;  %v1582_v2 = vmul.f32 0.3275911, %v3039_v19  ;;  %v3056_v38 = vpop.eup %2465 }
 0x26e   : > { %v1910_v50 = vsel %vm1878_vm2, %v1862_v18, %v1894_v6  ;;  %v1860_v52 = vsub.f32 1.0, %v1844_v0  ;;  %v1765_v29 = vmul.f32 %v2982_v46, %v1749_v44  ;;  %v1707_v58 = vmul.f32 %v3009_v30, %v1691_v5 }
 0x26f   : > { %v1926_v22 = vadd.f32 1.0, %v1910_v50  ;;  %v1863_v8 = vsub.f32 1.0, %v1847_v42  ;;  %v1754_v21 = vadd.f32 0.2548296, %v1738_v54  ;;  %v1688_v57 = vadd.f32 1.4214138, %v1672_v20 }
 0x270   : > { %v1892_v12 = vsub.f32 0.0, %v1860_v52  ;;  %v1845_v4 = vmul.f32 %v3001_v37, %v1765_v29  ;;  %v1723_v41 = vadd.f32 -0.28449672, %v1707_v58  ;;  %v1641_v25 = vmul.f32 1.0614054, %v3056_v38 }
 0x271   : > { %v1942_v46 = vmul.f32 %v1926_v22, %v2932_v26  ;;  %v1895_v18 = vsub.f32 0.0, %v1863_v8  ;;  %v1770_v33 = vmul.f32 %v2992_v61, %v1754_v21  ;;  %v1704_v36 = vmul.f32 %v3023_v11, %v1688_v57  ;;  %v1395_v22 = vpop.xlane.xlu1 %1394 }
 0x272   : > { %v1908_v56 = vsel %vm1876_vm3, %v1860_v52, %v1892_v12  ;;  %v1861_v26 = vsub.f32 1.0, %v1845_v4  ;;  %v1739_v59 = vmul.f32 %v3009_v30, %v1723_v41  ;;  %v1657_v61 = vadd.f32 -1.4531521, %v1641_v25 }
 0x273   : > { %1958 = vst.msk [vmem:[%s3052_s25 + $0x10] sm:$0xff] %vm540_vm1, %v1942_v46  ;;  %v1924_v6 = vadd.f32 1.0, %v1908_v56  ;;  %v1911_v0 = vsel %vm1879_vm4, %v1863_v8, %v1895_v18  ;;  %v1850_v15 = vmul.f32 %v3004_v48, %v1770_v33  ;;  %v1720_v40 = vadd.f32 -0.28449672, %v1704_v36 }
 0x274   : > { %v1927_v37 = vadd.f32 1.0, %v1911_v0  ;;  %v1893_v44 = vsub.f32 0.0, %v1861_v26  ;;  %v1598_v50 = vadd.f32 1.0, %v1582_v2  ;;  %v1755_v54 = vadd.f32 0.2548296, %v1739_v59 }
 0x275   : > { %v1940_v42 = vmul.f32 %v1924_v6, %v2947_v47  ;;  %v1866_v60 = vsub.f32 1.0, %v1850_v15  ;;  %v1673_v5 = vmul.f32 %v3056_v38, %v1657_v61  ;;  %v1530_v8 = vmul.f32 0.5, %v2926_v13 }
 0x276   : > { %v1943_v52 = vmul.f32 %v1927_v37, %v2961_v32  ;;  %v1909_v48 = vsel %vm1877_vm5, %v1861_v26, %v1893_v44  ;;  %v1736_v29 = vmul.f32 %v3023_v11, %v1720_v40  ;;  %2467 = vrcp.f32 %v1598_v50 }
 0x277   : > { %1956 = vst.msk [vmem:[%s3052_s25] sm:$0xff] %vm540_vm1, %v1940_v42  ;;  %v1925_v47 = vadd.f32 1.0, %v1909_v48  ;;  %v1898_v32 = vsub.f32 0.0, %v1866_v60  ;;  %v1771_v20 = vmul.f32 %v3009_v30, %v1755_v54  ;;  %v1689_v12 = vadd.f32 1.4214138, %v1673_v5 }
 0x278   : > { %1959 = vst.msk [vmem:[%s3052_s25 + $0x18] sm:$0xff] %vm540_vm1, %v1943_v52  ;;  %v1752_v21 = vadd.f32 0.2548296, %v1736_v29  ;;  %2469 = vpow2.f32 %v3018_v3  ;;  %v1531_v30 = vmul.f32 0.5, %v2944_v10  ;;  %v1790_v43 = vsub.f32 0.0, %v3039_v19 }
 0x279   : > { %v1941_v13 = vmul.f32 %v1925_v47, %v2970_v16  ;;  %v1914_v58 = vsel %vm1882_vm6, %v1866_v60, %v1898_v32  ;;  %v1851_v2 = vmul.f32 %v3036_v39, %v1771_v20  ;;  %v1705_v46 = vmul.f32 %v3056_v38, %v1689_v12  ;;  %v1404_v16 = vpop.xlane.xlu0 %1403  ;;  %v1407_v39 = vpop.xlane.xlu1 %1406 }
 0x27a   : > { %v1930_v18 = vadd.f32 1.0, %v1914_v58  ;;  %v1768_v4 = vmul.f32 %v3023_v11, %v1752_v21  ;;  %v3098_v57 = vmul.f32 0.70710677, %v3087_v17  ;;  %2471 = vrsqrt.f32 %v2940_v45 }
 0x27b   : > { %1957 = vst.msk [vmem:[%s3052_s25 + $0x8] sm:$0xff] %vm540_vm1, %v1941_v13  ;;  %v1867_v3 = vsub.f32 1.0, %v1851_v2  ;;  %v1721_v9 = vadd.f32 -0.28449672, %v1705_v46  ;;  %v1423_v11 = vmul.f32 0.25, %v1395_v22  ;;  %v1528_v41 = vmul.f32 0.5, %v2957_v62 }
 0x27c   : > { %v1946_v56 = vmul.f32 %v1930_v18, %v1530_v8  ;;  %v1848_v10 = vmul.f32 %v3047_v7, %v1768_v4  ;;  %v3106_v6 = vand.u32 2147483647, %v3098_v57  ;;  %v1426_v26 = vmul.f32 0.25, %v1404_v16 }
 0x27d   : > { %v1899_v33 = vsub.f32 0.0, %v1867_v3  ;;  %v1737_v25 = vmul.f32 %v3056_v38, %v1721_v9  ;;  %v1439_v45 = vadd.f32 1e-06, %v1423_v11  ;;  %v1427_v36 = vmul.f32 0.25, %v1407_v39  ;;  %v1410_v52 = vpop.xlane.xlu0 %1409  ;;  %v1413_v12 = vpop.xlane.xlu1 %1412 }
 0x27e   : > { %1962 = vst.msk [vmem:[%s3052_s25 + $0x30] sm:$0xff] %vm540_vm1, %v1946_v56  ;;  %v1864_v0 = vsub.f32 1.0, %v1848_v10  ;;  %v1806_v28 = vmul.f32 %v1790_v43, %v3039_v19  ;;  %v1583_v7 = vmul.f32 0.3275911, %v3106_v6  ;;  %v1442_v42 = vadd.f32 1e-06, %v1426_v26 }
 0x27f   : > { %v1915_v37 = vsel %vm1883_vm7, %v1867_v3, %v1899_v33  ;;  %v1753_v15 = vadd.f32 0.2548296, %v1737_v25  ;;  %2473 = vrsqrt.f32 %v1439_v45  ;;  %vm1880_vm8 = vcmp.ge.f32.partialorder %v2965_v14, 0.0 }
 0x280   : > { %v3112_v59 = vpop.eup %2467  ;;  %v1931_v62 = vadd.f32 1.0, %v1915_v37  ;;  %v1896_v61 = vsub.f32 0.0, %v1864_v0  ;;  %v1599_v50 = vadd.f32 1.0, %v1583_v7  ;;  %2475 = vrsqrt.f32 %v1442_v42 }
 0x281   : > { %v1769_v44 = vmul.f32 %v3056_v38, %v1753_v15  ;;  %v1646_v40 = vmul.f32 1.0614054, %v3112_v59  ;;  %v1443_v5 = vadd.f32 1e-06, %v1427_v36  ;;  %v1832_v29 = vmul.f32 1.442695, %v1806_v28 }
 0x282   : > { %v2470_v60 = vpop.eup %2469  ;;  %v1947_v54 = vmul.f32 %v1931_v62, %v1531_v30  ;;  %v1912_v19 = vsel %vm1880_vm8, %v1864_v0, %v1896_v61  ;;  %2477 = vrcp.f32 %v1599_v50  ;;  %v1428_v14 = vmul.f32 0.25, %v1410_v52 }
 0x283   : > { %v1928_v22 = vadd.f32 1.0, %v1912_v19  ;;  %v1849_v48 = vmul.f32 %v2470_v60, %v1769_v44  ;;  %v1662_v8 = vadd.f32 -1.4531521, %v1646_v40  ;;  %2479 = vrsqrt.f32 %v1443_v5 }
 0x284   : > { %1963 = vst.msk [vmem:[%s3052_s25 + $0x38] sm:$0xff] %vm540_vm1, %v1947_v54  ;;  %v2472_v38 = vpop.eup %2471  ;;  %v1444_v2 = vadd.f32 1e-06, %v1428_v14  ;;  %vm1881_vm9 = vcmp.ge.f32.partialorder %v2987_v51, 0.0  ;;  %2481 = vpow2.f32 %v1832_v29  ;;  %v1429_v18 = vmul.f32 0.25, %v1413_v12 }
 0x285   : > { %v1944_v47 = vmul.f32 %v1928_v22, %v1528_v41  ;;  %v1865_v32 = vsub.f32 1.0, %v1849_v48  ;;  %v1678_v20 = vmul.f32 %v3112_v59, %v1662_v8  ;;  %v1470_v21 = vmul.f32 %v2472_v38, %v2850_v31 }
 0x286   : > { %v1791_v43 = vsub.f32 0.0, %v3106_v6  ;;  %v1529_v9 = vmul.f32 0.5, %v2978_v24  ;;  %2483 = vrsqrt.f32 %v1444_v2  ;;  %v1445_v33 = vadd.f32 1e-06, %v1429_v18 }
 0x287   : > { %1960 = vst.msk [vmem:[%s3052_s25 + $0x20] sm:$0xff] %vm540_vm1, %v1944_v47  ;;  %v1897_v13 = vsub.f32 0.0, %v1865_v32  ;;  %v1694_v58 = vadd.f32 1.4214138, %v1678_v20  ;;  %v1493_v46 = vmul.f32 %v2890_v23, %v1470_v21  ;;  %vm1886_vm10 = vcmp.ge.f32.partialorder %v3032_v63, 0.0 }
 0x288   : > { %v1807_v24 = vmul.f32 %v1791_v43, %v3106_v6  ;;  %2485 = vrsqrt.f32 %v1445_v33  ;;  %vm1887_vm11 = vcmp.ge.f32.partialorder %v3098_v57, 0.0 }
 0x289   : > { %v1913_v30 = vsel %vm1881_vm9, %v1865_v32, %v1897_v13  ;;  %v1710_v4 = vmul.f32 %v3112_v59, %v1694_v58  ;;  %v2474_v3 = vpop.eup %2473  ;;  %v3129_v16 = vadd.f32 %v2896_v27, %v1493_v46  ;;  %v1534_v46 = vmul.f32 0.5, %v3014_v53 }
 0x28a   : > { %v1929_v31 = vadd.f32 1.0, %v1913_v30  ;;  %v1471_v51 = vmul.f32 %v2474_v3, %v2854_v34  ;;  %v2476_v56 = vpop.eup %2475  ;;  %v1834_v61 = vmul.f32 1.442695, %v1807_v24 }
 0x28b   : > { %v1726_v39 = vadd.f32 -0.28449672, %v1710_v4  ;;  %v3133_v11 = vmul.f32 0.70710677, %v3129_v16  ;;  %v1474_v45 = vmul.f32 %v2476_v56, %v2862_v1 }
 0x28c   : > { %v1945_v10 = vmul.f32 %v1929_v31, %v1529_v9  ;;  %v3135_v41 = vpop.eup %2477  ;;  %v1494_v0 = vmul.f32 %v2890_v23, %v1471_v51 }
 0x28d   : > { %v1742_v25 = vmul.f32 %v3112_v59, %v1726_v39  ;;  %v2480_v26 = vpop.eup %2479  ;;  %v1647_v34 = vmul.f32 1.0614054, %v3135_v41  ;;  %v1564_v36 = vand.u32 2147483647, %v3133_v11  ;;  %v1497_v28 = vmul.f32 %v2890_v23, %v1474_v45 }
 0x28e   : > { %1961 = vst.msk [vmem:[%s3052_s25 + $0x28] sm:$0xff] %vm540_vm1, %v1945_v10  ;;  %v3146_v15 = vadd.f32 %v2896_v27, %v1494_v0  ;;  %v1475_v7 = vmul.f32 %v2480_v26, %v2866_v49  ;;  %v2482_v40 = vpop.eup %2481  ;;  %vm1884_vm12 = vcmp.ge.f32.partialorder %v3133_v11, 0.0 }
 0x28f   : > { %v1758_v37 = vadd.f32 0.2548296, %v1742_v25  ;;  %v1663_v6 = vadd.f32 -1.4531521, %v1647_v34  ;;  %v1580_v62 = vmul.f32 0.3275911, %v1564_v36  ;;  %v3155_v44 = vadd.f32 %v2896_v27, %v1497_v28 }
 0x290   : > { %v3152_v42 = vmul.f32 0.70710677, %v3146_v15  ;;  %v1498_v60 = vmul.f32 %v2890_v23, %v1475_v7  ;;  %v2484_v5 = vpop.eup %2483  ;;  %v1788_v20 = vsub.f32 0.0, %v1564_v36 }
 0x291   : > { %v1774_v1 = vmul.f32 %v3112_v59, %v1758_v37  ;;  %v1679_v50 = vmul.f32 %v3135_v41, %v1663_v6  ;;  %v1596_v52 = vadd.f32 1.0, %v1580_v62  ;;  %v3161_v59 = vmul.f32 0.70710677, %v3155_v44 }
 0x292   : > { %v1565_v49 = vand.u32 2147483647, %v3152_v42  ;;  %v3164_v8 = vadd.f32 %v2896_v27, %v1498_v60  ;;  %v1476_v21 = vmul.f32 %v2484_v5, %v2872_v55  ;;  %v2486_v2 = vpop.eup %2485  ;;  %v1804_v55 = vmul.f32 %v1788_v20, %v1564_v36 }
 0x293   : > { %v1854_v54 = vmul.f32 %v2482_v40, %v1774_v1  ;;  %v1695_v19 = vadd.f32 1.4214138, %v1679_v50  ;;  %2487 = vrcp.f32 %v1596_v52  ;;  %v1568_v14 = vand.u32 2147483647, %v3161_v59 }
 0x294   : > { %2489 = vpow2.f32 %v1834_v61  ;;  %v1581_v48 = vmul.f32 0.3275911, %v1565_v49  ;;  %v3171_v58 = vmul.f32 0.70710677, %v3164_v8  ;;  %v1499_v43 = vmul.f32 %v2890_v23, %v1476_v21 }
 0x295   : > { %v1870_v22 = vsub.f32 1.0, %v1854_v54  ;;  %v1711_v29 = vmul.f32 %v3135_v41, %v1695_v19  ;;  %v1584_v12 = vmul.f32 0.3275911, %v1568_v14  ;;  %v1789_v31 = vsub.f32 0.0, %v1565_v49 }
 0x296   : > { %v1597_v47 = vadd.f32 1.0, %v1581_v48  ;;  %v1569_v4 = vand.u32 2147483647, %v3171_v58  ;;  %v3178_v51 = vadd.f32 %v2896_v27, %v1499_v43  ;;  %v1477_v56 = vmul.f32 %v2486_v2, %v2878_v35 }
 0x297   : > { %v1902_v38 = vsub.f32 0.0, %v1870_v22  ;;  %v1727_v32 = vadd.f32 -0.28449672, %v1711_v29  ;;  %v1600_v63 = vadd.f32 1.0, %v1584_v12  ;;  %v1828_v45 = vmul.f32 1.442695, %v1804_v55 }
 0x298   : > { %2491 = vrcp.f32 %v1597_v47  ;;  %v1585_v39 = vmul.f32 0.3275911, %v1569_v4  ;;  %v3188_v26 = vmul.f32 0.70710677, %v3178_v51  ;;  %v1500_v34 = vmul.f32 %v2890_v23, %v1477_v56 }
 0x299   : > { %v1918_v13 = vsel %vm1886_vm10, %v1870_v22, %v1902_v38  ;;  %v1743_v30 = vmul.f32 %v3135_v41, %v1727_v32  ;;  %2493 = vrcp.f32 %v1600_v63  ;;  %v1805_v37 = vmul.f32 %v1789_v31, %v1565_v49 }
 0x29a   : > { %v1934_v18 = vadd.f32 1.0, %v1918_v13  ;;  %v1601_v24 = vadd.f32 1.0, %v1585_v39  ;;  %v1792_v35 = vsub.f32 0.0, %v1568_v14  ;;  %v1570_v7 = vand.u32 2147483647, %v3188_v26 }
 0x29b   : > { %v1759_v9 = vadd.f32 0.2548296, %v1743_v30  ;;  %v1535_v62 = vmul.f32 0.5, %v3087_v17  ;;  %v1830_v52 = vmul.f32 1.442695, %v1805_v37  ;;  %v1793_v5 = vsub.f32 0.0, %v1569_v4 }
 0x29c   : > { %v1950_v3 = vmul.f32 %v1934_v18, %v1534_v46  ;;  %2495 = vrcp.f32 %v1601_v24  ;;  %v1586_v40 = vmul.f32 0.3275911, %v1570_v7  ;;  %v1808_v60 = vmul.f32 %v1792_v35, %v1568_v14 }
 0x29d   : > { %v3181_v53 = vpop.eup %2487  ;;  %v1775_v10 = vmul.f32 %v3135_v41, %v1759_v9  ;;  %v3193_v41 = vadd.f32 %v2896_v27, %v1500_v34  ;;  %2497 = vpow2.f32 %v1828_v45  ;;  %v1809_v13 = vmul.f32 %v1793_v5, %v1569_v4 }
 0x29e   : > { %1966 = vst.msk [vmem:[%s3052_s25 + $0x50] sm:$0xff] %vm540_vm1, %v1950_v3  ;;  %v2490_v33 = vpop.eup %2489  ;;  %v1644_v25 = vmul.f32 1.0614054, %v3181_v53  ;;  %v1602_v17 = vadd.f32 1.0, %v1586_v40  ;;  %v1836_v21 = vmul.f32 1.442695, %v1808_v60 }
 0x29f   : > { %v1855_v0 = vmul.f32 %v2490_v33, %v1775_v10  ;;  %v3199_v54 = vmul.f32 0.70710677, %v3193_v41  ;;  %v1794_v3 = vsub.f32 0.0, %v1570_v7  ;;  %v1838_v56 = vmul.f32 1.442695, %v1809_v13 }
 0x2a0   : > { %v1660_v36 = vadd.f32 -1.4531521, %v1644_v25  ;;  %2499 = vrcp.f32 %v1602_v17  ;;  %vm1885_vm13 = vcmp.ge.f32.partialorder %v3152_v42, 0.0  ;;  %vm1888_vm14 = vcmp.ge.f32.partialorder %v3161_v59, 0.0 }
 0x2a1   : > { %v1871_v28 = vsub.f32 1.0, %v1855_v0  ;;  %v1571_v29 = vand.u32 2147483647, %v3199_v54  ;;  %2501 = vpow2.f32 %v1830_v52  ;;  %v1810_v0 = vmul.f32 %v1794_v3, %v1570_v7 }
 0x2a2   : > { %v2492_v6 = vpop.eup %2491  ;;  %v1676_v1 = vmul.f32 %v3181_v53, %v1660_v36  ;;  %vm1889_vm15 = vcmp.ge.f32.partialorder %v3171_v58, 0.0  ;;  %vm1890_vm0 = vcmp.ge.f32.partialorder %v3188_v26, 0.0  ;;  %vm1891_vm2 = vcmp.ge.f32.partialorder %v3199_v54, 0.0 }
 0x2a3   : > { %v1903_v61 = vsub.f32 0.0, %v1871_v28  ;;  %v1645_v23 = vmul.f32 1.0614054, %v2492_v6  ;;  %v3201_v49 = vpop.eup %2493  ;;  %v1587_v20 = vmul.f32 0.3275911, %v1571_v29 }
 0x2a4   : > { %v1692_v50 = vadd.f32 1.4214138, %v1676_v1  ;;  %v1648_v48 = vmul.f32 1.0614054, %v3201_v49  ;;  %v1840_v40 = vmul.f32 1.442695, %v1810_v0 }
 0x2a5   : > { %v1919_v27 = vsel %vm1887_vm11, %v1871_v28, %v1903_v61  ;;  %v1661_v19 = vadd.f32 -1.4531521, %v1645_v23  ;;  %v1603_v30 = vadd.f32 1.0, %v1587_v20  ;;  %v1795_v61 = vsub.f32 0.0, %v1571_v29 }
 0x2a6   : > { %v1935_v57 = vadd.f32 1.0, %v1919_v27  ;;  %v1708_v22 = vmul.f32 %v3181_v53, %v1692_v50  ;;  %v1664_v32 = vadd.f32 -1.4531521, %v1648_v48  ;;  %v3206_v2 = vpop.eup %2495  ;;  %v1532_v27 = vmul.f32 0.5, %v3129_v16 }
 0x2a7   : > { %v1677_v38 = vmul.f32 %v2492_v6, %v1661_v19  ;;  %v1649_v43 = vmul.f32 1.0614054, %v3206_v2  ;;  %2503 = vrcp.f32 %v1603_v30  ;;  %v2498_v31 = vpop.eup %2497 }
 0x2a8   : > { %v1951_v14 = vmul.f32 %v1935_v57, %v1535_v62  ;;  %v1724_v47 = vadd.f32 -0.28449672, %v1708_v22  ;;  %v1680_v18 = vmul.f32 %v3201_v49, %v1664_v32  ;;  %2505 = vpow2.f32 %v1836_v21 }
 0x2a9   : > { %v1693_v12 = vadd.f32 1.4214138, %v1677_v38  ;;  %v1665_v4 = vadd.f32 -1.4531521, %v1649_v43  ;;  %2507 = vpow2.f32 %v1838_v56 }
 0x2aa   : > { %1967 = vst.msk [vmem:[%s3052_s25 + $0x58] sm:$0xff] %vm540_vm1, %v1951_v14  ;;  %v1740_v46 = vmul.f32 %v3181_v53, %v1724_v47  ;;  %v1696_v55 = vadd.f32 1.4214138, %v1680_v18  ;;  %v3216_v36 = vpop.eup %2499  ;;  %2509 = vpow2.f32 %v1840_v40 }
 0x2ab   : > { %v1709_v63 = vmul.f32 %v2492_v6, %v1693_v12  ;;  %v1681_v24 = vmul.f32 %v3206_v2, %v1665_v4  ;;  %v1650_v1 = vmul.f32 1.0614054, %v3216_v36  ;;  %v2502_v50 = vpop.eup %2501 }
 0x2ac   : > { %v1756_v9 = vadd.f32 0.2548296, %v1740_v46  ;;  %v1712_v33 = vmul.f32 %v3201_v49, %v1696_v55 }
 0x2ad   : > { %v1725_v39 = vadd.f32 -0.28449672, %v1709_v63  ;;  %v1697_v35 = vadd.f32 1.4214138, %v1681_v24  ;;  %v1666_v60 = vadd.f32 -1.4531521, %v1650_v1 }
 0x2ae   : > { %v1772_v10 = vmul.f32 %v3181_v53, %v1756_v9  ;;  %v1728_v34 = vadd.f32 -0.28449672, %v1712_v33  ;;  %v1533_v9 = vmul.f32 0.5, %v3146_v15 }
 0x2af   : > { %v1741_v25 = vmul.f32 %v2492_v6, %v1725_v39  ;;  %v1713_v23 = vmul.f32 %v3206_v2, %v1697_v35  ;;  %v1682_v48 = vmul.f32 %v3216_v36, %v1666_v60  ;;  %v1538_v60 = vmul.f32 0.5, %v3178_v51 }
 0x2b0   : > { %v1852_v45 = vmul.f32 %v2498_v31, %v1772_v10  ;;  %v1744_v62 = vmul.f32 %v3201_v49, %v1728_v34 }
 0x2b1   : > { %v1757_v37 = vadd.f32 0.2548296, %v1741_v25  ;;  %v1729_v5 = vadd.f32 -0.28449672, %v1713_v23  ;;  %v2504_v17 = vpop.eup %2503  ;;  %v1698_v16 = vadd.f32 1.4214138, %v1682_v48 }
 0x2b2   : > { %v1868_v28 = vsub.f32 1.0, %v1852_v45  ;;  %v1760_v7 = vadd.f32 0.2548296, %v1744_v62  ;;  %v2506_v38 = vpop.eup %2505  ;;  %v1651_v20 = vmul.f32 1.0614054, %v2504_v17  ;;  %v1536_v25 = vmul.f32 0.5, %v3155_v44 }
 0x2b3   : > { %v1773_v53 = vmul.f32 %v2492_v6, %v1757_v37  ;;  %v1811_v6 = vmul.f32 %v1795_v61, %v1571_v29  ;;  %v1745_v32 = vmul.f32 %v3206_v2, %v1729_v5  ;;  %v1714_v18 = vmul.f32 %v3216_v36, %v1698_v16  ;;  %v2508_v30 = vpop.eup %2507 }
 0x2b4   : > { %v1900_v52 = vsub.f32 0.0, %v1868_v28  ;;  %v1776_v22 = vmul.f32 %v3201_v49, %v1760_v7  ;;  %v1667_v46 = vadd.f32 -1.4531521, %v1651_v20  ;;  %v2510_v37 = vpop.eup %2509  ;;  %v1537_v44 = vmul.f32 0.5, %v3164_v8 }
 0x2b5   : > { %v1853_v19 = vmul.f32 %v2502_v50, %v1773_v53  ;;  %v1761_v13 = vadd.f32 0.2548296, %v1745_v32  ;;  %v1842_v29 = vmul.f32 1.442695, %v1811_v6  ;;  %v1730_v39 = vadd.f32 -0.28449672, %v1714_v18 }
 0x2b6   : > { %v1916_v57 = vsel %vm1884_vm12, %v1868_v28, %v1900_v52  ;;  %v1856_v12 = vmul.f32 %v2506_v38, %v1776_v22  ;;  %v1683_v3 = vmul.f32 %v2504_v17, %v1667_v46 }
 0x2b7   : > { %v1932_v14 = vadd.f32 1.0, %v1916_v57  ;;  %v1869_v47 = vsub.f32 1.0, %v1853_v19  ;;  %v1777_v43 = vmul.f32 %v3206_v2, %v1761_v13  ;;  %v1746_v33 = vmul.f32 %v3216_v36, %v1730_v39 }
 0x2b8   : > { %v1872_v49 = vsub.f32 1.0, %v1856_v12  ;;  %v1699_v4 = vadd.f32 1.4214138, %v1683_v3  ;;  %2511 = vpow2.f32 %v1842_v29  ;;  %v1539_v57 = vmul.f32 0.5, %v3193_v41 }
 0x2b9   : > { %v1948_v11 = vmul.f32 %v1932_v14, %v1532_v27  ;;  %v1901_v21 = vsub.f32 0.0, %v1869_v47  ;;  %v1857_v42 = vmul.f32 %v2508_v30, %v1777_v43  ;;  %v1762_v15 = vadd.f32 0.2548296, %v1746_v33 }
 0x2ba   : > { %v1904_v31 = vsub.f32 0.0, %v1872_v49  ;;  %v1715_v0 = vmul.f32 %v2504_v17, %v1699_v4 }
 0x2bb   : > { %1964 = vst.msk [vmem:[%s3052_s25 + $0x40] sm:$0xff] %vm540_vm1, %v1948_v11  ;;  %v1917_v63 = vsel %vm1885_vm13, %v1869_v47, %v1901_v21  ;;  %v1873_v24 = vsub.f32 1.0, %v1857_v42  ;;  %v1778_v35 = vmul.f32 %v3216_v36, %v1762_v15 }
 0x2bc   : > { %v1933_v55 = vadd.f32 1.0, %v1917_v63  ;;  %v1920_v10 = vsel %vm1888_vm14, %v1872_v49, %v1904_v31  ;;  %v1731_v59 = vadd.f32 -0.28449672, %v1715_v0 }
 0x2bd   : > { %v1936_v2 = vadd.f32 1.0, %v1920_v10  ;;  %v1905_v34 = vsub.f32 0.0, %v1873_v24  ;;  %v1858_v61 = vmul.f32 %v2510_v37, %v1778_v35 }
 0x2be   : > { %v1949_v56 = vmul.f32 %v1933_v55, %v1533_v9  ;;  %v1747_v62 = vmul.f32 %v2504_v17, %v1731_v59 }
 0x2bf   : > { %v1952_v45 = vmul.f32 %v1936_v2, %v1536_v25  ;;  %v1921_v28 = vsel %vm1889_vm15, %v1873_v24, %v1905_v34  ;;  %v1874_v40 = vsub.f32 1.0, %v1858_v61 }
 0x2c0   : > { %1965 = vst.msk [vmem:[%s3052_s25 + $0x48] sm:$0xff] %vm540_vm1, %v1949_v56  ;;  %v1937_v1 = vadd.f32 1.0, %v1921_v28  ;;  %v1763_v53 = vadd.f32 0.2548296, %v1747_v62 }
 0x2c1   : > { %1968 = vst.msk [vmem:[%s3052_s25 + $0x60] sm:$0xff] %vm540_vm1, %v1952_v45  ;;  %v1906_v58 = vsub.f32 0.0, %v1874_v40 }
 0x2c2   : > { %v1953_v23 = vmul.f32 %v1937_v1, %v1537_v44  ;;  %v1779_v50 = vmul.f32 %v2504_v17, %v1763_v53  ;;  %v2512_v52 = vpop.eup %2511 }
 0x2c3   : > { %v1922_v7 = vsel %vm1890_vm0, %v1874_v40, %v1906_v58 }
 0x2c4   : > { %1969 = vst.msk [vmem:[%s3052_s25 + $0x68] sm:$0xff] %vm540_vm1, %v1953_v23  ;;  %v1859_v36 = vmul.f32 %v2512_v52, %v1779_v50  ;;  %v1938_v27 = vadd.f32 1.0, %v1922_v7 }
 0x2c6   : > { %v1875_v8 = vsub.f32 1.0, %v1859_v36  ;;  %v1954_v19 = vmul.f32 %v1938_v27, %v1538_v60 }
 0x2c8   : > { %v1907_v5 = vsub.f32 0.0, %v1875_v8  ;;  %1970 = vst.msk [vmem:[%s3052_s25 + $0x70] sm:$0xff] %vm540_vm1, %v1954_v19 }
 0x2ca   : > { %v1923_v17 = vsel %vm1891_vm2, %v1875_v8, %v1907_v5 }
 0x2cb   : > { %v1939_v22 = vadd.f32 1.0, %v1923_v17 }
 0x2cd   : > { %v1955_v48 = vmul.f32 %v1939_v22, %v1539_v57 }
 0x2cf   : > { %1971 = vst.msk [vmem:[%s3052_s25 + $0x78] sm:$0xff] %vm540_vm1, %v1955_v48 }
 0x2d0 PF: > { %s19_s30 = sadd.s32 1, %s2519_s30  }
 0x2d1   : > { %p16_p4 = scmp.ge.s32.totalorder %s19_s30, 6  }
 0x2d3   :  { %18 = sbr.rel (!%p16_p4) target bundleno = 1 (0x1), region = 98 }

</bundles_post_ra>
